<compile_context>
chip_gen: v5e
topology: v5e:2x2
jax: 0.10.0
libtpu: 0.0.40
codegen_flags: <defaults>
</compile_context>

<pallas_src>
import math

import jax
import jax.numpy as jnp
from jax import lax
from jax.experimental import pallas as pl
from jax.experimental.pallas import tpu as pltpu

_SUBLANE = 8
# Conservative per-tile working-set target (double-buffered gi inputs + fwd scratch +
# accumulators) so a tile fits comfortably on every generation, including v7x's 64 MiB VMEM.
_TILE_VMEM_BUDGET = 24 * 1024 * 1024
_VMEM_LIMIT_BYTES = 48 * 1024 * 1024   # above v5e's 16 MiB / v6e's 32 MiB scoped defaults


def _pick_ntile(T, H, N):
    """Pick the batch-tile size: full N if it fits, else the largest multiple of 8."""
    per_row = 4 * (4 * T * 3 * H   # gi_f/gi_b input blocks, double-buffered by the pipeline
                   + T * H         # forward sequence scratch
                   + 8 * H         # hidden states + online-softmax accumulators
                   + 4 * H)        # output block, double-buffered
    nt = (_TILE_VMEM_BUDGET // per_row) // _SUBLANE * _SUBLANE
    nt = max(nt, _SUBLANE)
    return N if nt >= N else nt


# ----------------------------------------------------------------------------
# Fused kernel (one grid step = one N-tile):
#   phase 1: forward GRU recurrence, outputs stored to (T, Nt, H) VMEM scratch
#   phase 2: backward GRU recurrence fused with online attention pooling
# ----------------------------------------------------------------------------
def _bigru_attn_kernel(gi_f_ref, gi_b_ref, whh_f_ref, whh_b_ref,
                       bhhn_f_ref, bhhn_b_ref, wat_f_ref, wat_b_ref, batt_ref,
                       out_ref,
                       hf_ref, hb_ref, seqf_ref, l_ref, accf_ref, accb_ref):
    """gi_{f,b}: (T, Nt, 3H) hoisted input projections (gate order r,z,n; r/z biases folded).
    whh_{f,b}: (H, 3H).  bhhn_{f,b}: (1, H) n-gate hidden bias (r-gated).
    wat_f/wat_b: (H, 2H) top/bottom halves of the attention weight.  batt: (1, 2H).
    out: (Nt, 2H).  Scratch: hf/hb (Nt,H), seqf (T,Nt,H), l (Nt,2H), accf/accb (Nt,H)."""
    T = gi_f_ref.shape[0]
    H = whh_f_ref.shape[0]
    Nt = hf_ref.shape[0]
    unroll = True if T <= 16 else 4   # full unroll only for short sequences

    # Loop-invariant loads / broadcasts hoisted out of the unrolled recurrences.
    whh_f = whh_f_ref[...]
    whh_b = whh_b_ref[...]
    wat_f = wat_f_ref[...]
    wat_b = wat_b_ref[...]
    bhhn_f = jnp.broadcast_to(bhhn_f_ref[...], (Nt, H))
    bhhn_b = jnp.broadcast_to(bhhn_b_ref[...], (Nt, H))
    batt = jnp.broadcast_to(batt_ref[...], (Nt, 2 * H))

    hf_ref[...] = jnp.zeros_like(hf_ref)
    hb_ref[...] = jnp.zeros_like(hb_ref)
    l_ref[...] = jnp.zeros_like(l_ref)
    accf_ref[...] = jnp.zeros_like(accf_ref)
    accb_ref[...] = jnp.zeros_like(accb_ref)

    def gru_cell(gi, h, whh, bhhn):
        # Only h @ Whh remains on the serial critical path (input projection hoisted).
        # Further opt (not applied): keep Whh resident via pltpu.matmul_push_rhs.
        gh = jnp.dot(h, whh, preferred_element_type=jnp.float32)
        r = jax.nn.sigmoid(gi[:, 0:H] + gh[:, 0:H])
        z = jax.nn.sigmoid(gi[:, H:2 * H] + gh[:, H:2 * H])
        n = jnp.tanh(gi[:, 2 * H:3 * H] + r * (gh[:, 2 * H:3 * H] + bhhn))
        return (1.0 - z) * n + z * h

    # ---- phase 1: forward direction ----
    def fwd_step(t, carry):
        h_f = gru_cell(gi_f_ref[t], hf_ref[...], whh_f, bhhn_f)
        hf_ref[...] = h_f
        seqf_ref[t] = h_f
        return carry

    lax.fori_loop(0, T, fwd_step, 0, unroll=unroll)

    # ---- phase 2: backward direction fused with online attention pooling ----
    # logits = tanh(seq @ Watt + b) are bounded in [-1, 1], so the softmax over the time
    # axis is computed without a running max: l += exp(logit); acc += exp(logit) * seq.
    def bwd_step(i, carry):
        tb = T - 1 - i
        h_b = gru_cell(gi_b_ref[tb], hb_ref[...], whh_b, bhhn_b)
        hb_ref[...] = h_b
        f_row = seqf_ref[tb]                                   # (Nt, H)
        logit = jnp.tanh(
            jnp.dot(f_row, wat_f, preferred_element_type=jnp.float32)
            + jnp.dot(h_b, wat_b, preferred_element_type=jnp.float32)
            + batt)                                            # (Nt, 2H)
        e = jnp.exp(logit)
        l_ref[...] += e
        accf_ref[...] += e[:, 0:H] * f_row
        accb_ref[...] += e[:, H:2 * H] * h_b
        return carry

    lax.fori_loop(0, T, bwd_step, 0, unroll=unroll)

    inv = pl.reciprocal(l_ref[...], approx=True)
    out_ref[:, 0:H] = accf_ref[...] * inv[:, 0:H]
    out_ref[:, H:2 * H] = accb_ref[...] * inv[:, H:2 * H]


# ----------------------------------------------------------------------------
# Wrapper: hoisted input projections + gridded, pipelined, megacore-parallel kernel.
# ----------------------------------------------------------------------------
def _fold_bias(bih, bhh, H):
    # Fold bih (all gates) + bhh (r and z only); bhh_n stays separate (applied inside r gate).
    return jnp.concatenate([bih[:, :2 * H] + bhh[:, :2 * H], bih[:, 2 * H:]], axis=-1)


def bigru_attention(x_seq, gru_p, att_w, att_b):
    """x_seq: (T, N, E) time-major -> attention-pooled (N, 2H)."""
    T, N, E = x_seq.shape
    H = gru_p["whh_f"].shape[0]

    # Hoisted input projection: one (T*N, E) x (E, 3H) XLA matmul per direction.
    gi_f = jnp.einsum("tne,eg->tng", x_seq, gru_p["wih_f"]) + _fold_bias(
        gru_p["bih_f"], gru_p["bhh_f"], H)
    gi_b = jnp.einsum("tne,eg->tng", x_seq, gru_p["wih_b"]) + _fold_bias(
        gru_p["bih_b"], gru_p["bhh_b"], H)
    bhhn_f = gru_p["bhh_f"][:, 2 * H:]
    bhhn_b = gru_p["bhh_b"][:, 2 * H:]
    wat_f = att_w[:H]                 # applied to the forward half of the GRU output
    wat_b = att_w[H:]                 # applied to the backward half
    batt = att_b.reshape(1, 2 * H)

    nt = _pick_ntile(T, H, N)         # full N, or a multiple of 8
    grid = (pl.cdiv(N, nt),)
    full = lambda n: (0, 0)

    return pl.pallas_call(
        _bigru_attn_kernel,
        out_shape=jax.ShapeDtypeStruct((N, 2 * H), jnp.float32),
        grid_spec=pltpu.PrefetchScalarGridSpec(
            num_scalar_prefetch=0,
            grid=grid,
            in_specs=[
                pl.BlockSpec((T, nt, 3 * H), lambda n: (0, n, 0)),   # gi_f
                pl.BlockSpec((T, nt, 3 * H), lambda n: (0, n, 0)),   # gi_b
                pl.BlockSpec((H, 3 * H), full),                      # whh_f
                pl.BlockSpec((H, 3 * H), full),                      # whh_b
                pl.BlockSpec((1, H), full),                          # bhhn_f
                pl.BlockSpec((1, H), full),                          # bhhn_b
                pl.BlockSpec((H, 2 * H), full),                      # wat_f
                pl.BlockSpec((H, 2 * H), full),                      # wat_b
                pl.BlockSpec((1, 2 * H), full),                      # batt
            ],
            out_specs=pl.BlockSpec((nt, 2 * H), lambda n: (n, 0)),
            scratch_shapes=[
                pltpu.VMEM((nt, H), jnp.float32),        # forward hidden state
                pltpu.VMEM((nt, H), jnp.float32),        # backward hidden state
                pltpu.VMEM((T, nt, H), jnp.float32),     # forward outputs (bwd is online)
                pltpu.VMEM((nt, 2 * H), jnp.float32),    # online softmax denominator
                pltpu.VMEM((nt, H), jnp.float32),        # weighted accumulator (fwd half)
                pltpu.VMEM((nt, H), jnp.float32),        # weighted accumulator (bwd half)
            ]),
        compiler_params=pltpu.CompilerParams(
            dimension_semantics=("parallel",),           # N-tiles are independent -> megacore
            vmem_limit_bytes=_VMEM_LIMIT_BYTES),
    )(gi_f, gi_b, gru_p["whh_f"], gru_p["whh_b"], bhhn_f, bhhn_b,
      wat_f, wat_b, batt)


# ----------------------------------------------------------------------------
# Parameter init (PyTorch-style uniform(-1/sqrt(H), 1/sqrt(H))); weights stored
# pre-transposed for right-multiplication (x @ W).
# ----------------------------------------------------------------------------
def _uniform(key, shape, scale):
    return jax.random.uniform(key, shape, jnp.float32, -scale, scale)


def init_bigru_params(key, input_dim, hidden_dim):
    k = 1.0 / math.sqrt(hidden_dim)
    ks = jax.random.split(key, 8)
    return {
        "wih_f": _uniform(ks[0], (input_dim, 3 * hidden_dim), k),
        "whh_f": _uniform(ks[1], (hidden_dim, 3 * hidden_dim), k),
        "bih_f": _uniform(ks[2], (1, 3 * hidden_dim), k),
        "bhh_f": _uniform(ks[3], (1, 3 * hidden_dim), k),
        "wih_b": _uniform(ks[4], (input_dim, 3 * hidden_dim), k),
        "whh_b": _uniform(ks[5], (hidden_dim, 3 * hidden_dim), k),
        "bih_b": _uniform(ks[6], (1, 3 * hidden_dim), k),
        "bhh_b": _uniform(ks[7], (1, 3 * hidden_dim), k),
    }


def init_sentgru_params(key, embd_dim, hidden_dim):
    k_lin = 1.0 / math.sqrt(2 * hidden_dim)
    k0, k1, k2, k3, k4, k5 = jax.random.split(key, 6)
    return {
        "word_gru": init_bigru_params(k0, embd_dim, hidden_dim),
        "word_att_w": _uniform(k1, (2 * hidden_dim, 2 * hidden_dim), k_lin),
        "word_att_b": _uniform(k2, (2 * hidden_dim,), k_lin),
        "sent_gru": init_bigru_params(k3, 2 * hidden_dim, hidden_dim),
        "sent_att_w": _uniform(k4, (2 * hidden_dim, 2 * hidden_dim), k_lin),
        "sent_att_b": _uniform(k5, (2 * hidden_dim,), k_lin),
    }


# ----------------------------------------------------------------------------
# Full forward pass: two Pallas kernel launches total (word level, sentence level).
# ----------------------------------------------------------------------------
def sent_gru_forward(x, params):
    """x: (S, T, B, E) -> (B, 2H)."""
    S, T, B, E = x.shape
    H = params["word_gru"]["whh_f"].shape[0]

    # Fold sentences into the batch dim: every sentence's word-GRU starts from h = 0,
    # so all S*B word sequences run in one gridded kernel launch.
    x_w = x.transpose(1, 0, 2, 3).reshape(T, S * B, E)                       # (T, S*B, E)
    sent_hid = bigru_attention(x_w, params["word_gru"],
                               params["word_att_w"], params["word_att_b"])   # (S*B, 2H)

    sent_seq = sent_hid.reshape(S, B, 2 * H)                                 # (S, B, 2H)
    return bigru_attention(sent_seq, params["sent_gru"],
                           params["sent_att_w"], params["sent_att_b"])       # (B, 2H)


# ----------------------------------------------------------------------------
# Pure-JAX reference (matches torch.nn.GRU semantics) for a tolerance check.
# ----------------------------------------------------------------------------
def _gru_dir_ref(x_seq, wih, whh, bih, bhh, reverse):
    H = whh.shape[0]

    def cell(h, x_t):
        gi = x_t @ wih + bih[0]
        gh = h @ whh
        r = jax.nn.sigmoid(gi[:, :H] + gh[:, :H] + bhh[0, :H])
        z = jax.nn.sigmoid(gi[:, H:2 * H] + gh[:, H:2 * H] + bhh[0, H:2 * H])
        n = jnp.tanh(gi[:, 2 * H:] + r * (gh[:, 2 * H:] + bhh[0, 2 * H:]))
        h_new = (1.0 - z) * n + z * h
        return h_new, h_new

    xs = x_seq[::-1] if reverse else x_seq
    h0 = jnp.zeros((x_seq.shape[1], H), jnp.float32)
    _, ys = lax.scan(cell, h0, xs)
    return ys[::-1] if reverse else ys


def _bigru_attention_ref(x_seq, gru_p, att_w, att_b):
    out_f = _gru_dir_ref(x_seq, gru_p["wih_f"], gru_p["whh_f"],
                         gru_p["bih_f"], gru_p["bhh_f"], False)
    out_b = _gru_dir_ref(x_seq, gru_p["wih_b"], gru_p["whh_b"],
                         gru_p["bih_b"], gru_p["bhh_b"], True)
    seq = jnp.concatenate([out_f, out_b], axis=-1)               # (T, N, 2H)
    logits = jnp.tanh(seq @ att_w + att_b)
    p = jax.nn.softmax(logits, axis=0)                           # legacy torch dim=0
    return jnp.sum(seq * p, axis=0)


def sent_gru_reference(x, params):
    S, T, B, E = x.shape
    H = params["word_gru"]["whh_f"].shape[0]
    x_w = x.transpose(1, 0, 2, 3).reshape(T, S * B, E)
    sent = _bigru_attention_ref(x_w, params["word_gru"],
                                params["word_att_w"], params["word_att_b"])
    sent_seq = sent.reshape(S, B, 2 * H)
    return _bigru_attention_ref(sent_seq, params["sent_gru"],
                                params["sent_att_w"], params["sent_att_b"])


if __name__ == "__main__":
    S, T, B, E, H = 3, 8, 2, 16, 32   # num_sents, words/sent, batch, embd_dim, hidden_dim

    root = jax.random.PRNGKey(0)
    k_x, k_p = jax.random.split(root)
    x = jax.random.normal(k_x, (S, T, B, E), jnp.float32)
    params = init_sentgru_params(k_p, E, H)

    out = jax.block_until_ready(jax.jit(sent_gru_forward)(x, params))
    ref = jax.block_until_ready(jax.jit(sent_gru_reference)(x, params))

    assert out.shape == (B, 2 * H), out.shape
    assert bool(jnp.all(jnp.isfinite(out)))
    # pl.reciprocal(approx=True) in the fused softmax -> small numeric drift allowed.
    assert bool(jnp.allclose(out, ref, rtol=5e-2, atol=5e-2)), (
        "max abs err %.3e" % float(jnp.max(jnp.abs(out - ref))))
    print("KERNEL_OK")
</pallas_src>

<mosaic_0001>
module attributes {stable_mosaic.version = 11 : i64} {
  func.func @_bigru_attn_kernel(%arg0: i32, %arg1: memref<8x6x96xf32, #tpu.memory_space<vmem>>, %arg2: memref<8x6x96xf32, #tpu.memory_space<vmem>>, %arg3: memref<32x96xf32, #tpu.memory_space<vmem>>, %arg4: memref<32x96xf32, #tpu.memory_space<vmem>>, %arg5: memref<1x32xf32, #tpu.memory_space<vmem>>, %arg6: memref<1x32xf32, #tpu.memory_space<vmem>>, %arg7: memref<32x64xf32, #tpu.memory_space<vmem>>, %arg8: memref<32x64xf32, #tpu.memory_space<vmem>>, %arg9: memref<1x64xf32, #tpu.memory_space<vmem>>, %arg10: memref<6x64xf32, #tpu.memory_space<vmem>>, %arg11: memref<6x32xf32, #tpu.memory_space<vmem>>, %arg12: memref<6x32xf32, #tpu.memory_space<vmem>>, %arg13: memref<8x6x32xf32, #tpu.memory_space<vmem>>, %arg14: memref<6x64xf32, #tpu.memory_space<vmem>>, %arg15: memref<6x32xf32, #tpu.memory_space<vmem>>, %arg16: memref<6x32xf32, #tpu.memory_space<vmem>>) attributes {dimension_semantics = [#tpu.dimension_semantics<parallel>], iteration_bounds = array<i64: 1>, scalar_prefetch = 0 : i64, scratch_operands = 6 : i64, tpu.core_type = #tpu.core_type<tc>, window_params = [{transform_indices = @transform_0, window_bounds = array<i64: 8, 6, 96>}, {transform_indices = @transform_1, window_bounds = array<i64: 8, 6, 96>}, {pipeline_mode = #tpu.pipeline_mode<synchronous>, transform_indices = @transform_2, window_bounds = array<i64: 32, 96>}, {pipeline_mode = #tpu.pipeline_mode<synchronous>, transform_indices = @transform_3, window_bounds = array<i64: 32, 96>}, {pipeline_mode = #tpu.pipeline_mode<synchronous>, transform_indices = @transform_4, window_bounds = array<i64: 1, 32>}, {pipeline_mode = #tpu.pipeline_mode<synchronous>, transform_indices = @transform_5, window_bounds = array<i64: 1, 32>}, {pipeline_mode = #tpu.pipeline_mode<synchronous>, transform_indices = @transform_6, window_bounds = array<i64: 32, 64>}, {pipeline_mode = #tpu.pipeline_mode<synchronous>, transform_indices = @transform_7, window_bounds = array<i64: 32, 64>}, {pipeline_mode = #tpu.pipeline_mode<synchronous>, transform_indices = @transform_8, window_bounds = array<i64: 1, 64>}, {transform_indices = @transform_9, window_bounds = array<i64: 6, 64>}]} {
    %c0 = arith.constant 0 : index
    %c0_0 = arith.constant 0 : index
    %0 = vector.load %arg3[%c0, %c0_0] : memref<32x96xf32, #tpu.memory_space<vmem>>, vector<32x96xf32>
    %c0_1 = arith.constant 0 : index
    %c0_2 = arith.constant 0 : index
    %1 = vector.load %arg4[%c0_1, %c0_2] : memref<32x96xf32, #tpu.memory_space<vmem>>, vector<32x96xf32>
    %c0_3 = arith.constant 0 : index
    %c0_4 = arith.constant 0 : index
    %2 = vector.load %arg7[%c0_3, %c0_4] : memref<32x64xf32, #tpu.memory_space<vmem>>, vector<32x64xf32>
    %c0_5 = arith.constant 0 : index
    %c0_6 = arith.constant 0 : index
    %3 = vector.load %arg8[%c0_5, %c0_6] : memref<32x64xf32, #tpu.memory_space<vmem>>, vector<32x64xf32>
    %c0_7 = arith.constant 0 : index
    %c0_8 = arith.constant 0 : index
    %4 = vector.load %arg5[%c0_7, %c0_8] : memref<1x32xf32, #tpu.memory_space<vmem>>, vector<1x32xf32>
    %5 = vector.shape_cast %4 : vector<1x32xf32> to vector<1x32xf32>
    %6 = vector.broadcast %5 : vector<1x32xf32> to vector<6x32xf32>
    %c0_9 = arith.constant 0 : index
    %c0_10 = arith.constant 0 : index
    %7 = vector.load %arg6[%c0_9, %c0_10] : memref<1x32xf32, #tpu.memory_space<vmem>>, vector<1x32xf32>
    %8 = vector.shape_cast %7 : vector<1x32xf32> to vector<1x32xf32>
    %9 = vector.broadcast %8 : vector<1x32xf32> to vector<6x32xf32>
    %c0_11 = arith.constant 0 : index
    %c0_12 = arith.constant 0 : index
    %10 = vector.load %arg9[%c0_11, %c0_12] : memref<1x64xf32, #tpu.memory_space<vmem>>, vector<1x64xf32>
    %11 = vector.shape_cast %10 : vector<1x64xf32> to vector<1x64xf32>
    %12 = vector.broadcast %11 : vector<1x64xf32> to vector<6x64xf32>
    %cst = arith.constant 0.000000e+00 : f32
    %13 = vector.broadcast %cst : f32 to vector<6x32xf32>
    %c0_13 = arith.constant 0 : index
    %c0_14 = arith.constant 0 : index
    %14 = vector.load %arg11[%c0_13, %c0_14] : memref<6x32xf32, #tpu.memory_space<vmem>>, vector<6x32xf32>
    tpu.vector_store %arg11[%c0_13, %c0_14], %13 {strides = array<i32>} : memref<6x32xf32, #tpu.memory_space<vmem>>, vector<6x32xf32>,
    %cst_15 = arith.constant 0.000000e+00 : f32
    %15 = vector.broadcast %cst_15 : f32 to vector<6x32xf32>
    %c0_16 = arith.constant 0 : index
    %c0_17 = arith.constant 0 : index
    %16 = vector.load %arg12[%c0_16, %c0_17] : memref<6x32xf32, #tpu.memory_space<vmem>>, vector<6x32xf32>
    tpu.vector_store %arg12[%c0_16, %c0_17], %15 {strides = array<i32>} : memref<6x32xf32, #tpu.memory_space<vmem>>, vector<6x32xf32>,
    %cst_18 = arith.constant 0.000000e+00 : f32
    %17 = vector.broadcast %cst_18 : f32 to vector<6x64xf32>
    %c0_19 = arith.constant 0 : index
    %c0_20 = arith.constant 0 : index
    %18 = vector.load %arg14[%c0_19, %c0_20] : memref<6x64xf32, #tpu.memory_space<vmem>>, vector<6x64xf32>
    tpu.vector_store %arg14[%c0_19, %c0_20], %17 {strides = array<i32>} : memref<6x64xf32, #tpu.memory_space<vmem>>, vector<6x64xf32>,
    %cst_21 = arith.constant 0.000000e+00 : f32
    %19 = vector.broadcast %cst_21 : f32 to vector<6x32xf32>
    %c0_22 = arith.constant 0 : index
    %c0_23 = arith.constant 0 : index
    %20 = vector.load %arg15[%c0_22, %c0_23] : memref<6x32xf32, #tpu.memory_space<vmem>>, vector<6x32xf32>
    tpu.vector_store %arg15[%c0_22, %c0_23], %19 {strides = array<i32>} : memref<6x32xf32, #tpu.memory_space<vmem>>, vector<6x32xf32>,
    %cst_24 = arith.constant 0.000000e+00 : f32
    %21 = vector.broadcast %cst_24 : f32 to vector<6x32xf32>
    %c0_25 = arith.constant 0 : index
    %c0_26 = arith.constant 0 : index
    %22 = vector.load %arg16[%c0_25, %c0_26] : memref<6x32xf32, #tpu.memory_space<vmem>>, vector<6x32xf32>
    tpu.vector_store %arg16[%c0_25, %c0_26], %21 {strides = array<i32>} : memref<6x32xf32, #tpu.memory_space<vmem>>, vector<6x32xf32>,
    %c0_i32 = arith.constant 0 : i32
    %23 = arith.index_cast %c0_i32 : i32 to index
    %c0_27 = arith.constant 0 : index
    %c0_28 = arith.constant 0 : index
    %24 = vector.load %arg1[%23, %c0_27, %c0_28] : memref<8x6x96xf32, #tpu.memory_space<vmem>>, vector<1x6x96xf32>
    %25 = vector.shape_cast %24 : vector<1x6x96xf32> to vector<6x96xf32>
    %c0_29 = arith.constant 0 : index
    %c0_30 = arith.constant 0 : index
    %26 = vector.load %arg11[%c0_29, %c0_30] : memref<6x32xf32, #tpu.memory_space<vmem>>, vector<6x32xf32>
    %cst_31 = arith.constant dense<0.000000e+00> : vector<6x96xf32>
    %27 = tpu.matmul %26, %0, %cst_31 {dimension_numbers = #tpu.dot_dimension_numbers<[1], [0], [0], [1], [0, 0, 1, 1], [], []>} : vector<6x32xf32>, vector<32x96xf32>, vector<6x96xf32> -> vector<6x96xf32>
    %28 = vector.extract_strided_slice %25 {offsets = [0, 0], sizes = [6, 32], strides = [1, 1]} : vector<6x96xf32> to vector<6x32xf32>
    %29 = vector.extract_strided_slice %27 {offsets = [0, 0], sizes = [6, 32], strides = [1, 1]} : vector<6x96xf32> to vector<6x32xf32>
    %30 = arith.addf %28, %29 : vector<6x32xf32>
    %31 = arith.negf %30 : vector<6x32xf32>
    %32 = math.exp %31 : vector<6x32xf32>
    %cst_32 = arith.constant 1.000000e+00 : f32
    %33 = vector.broadcast %cst_32 : f32 to vector<6x32xf32>
    %34 = arith.addf %33, %32 : vector<6x32xf32>
    %35 = arith.divf %33, %34 : vector<6x32xf32>
    %36 = vector.extract_strided_slice %25 {offsets = [0, 32], sizes = [6, 32], strides = [1, 1]} : vector<6x96xf32> to vector<6x32xf32>
    %37 = vector.extract_strided_slice %27 {offsets = [0, 32], sizes = [6, 32], strides = [1, 1]} : vector<6x96xf32> to vector<6x32xf32>
    %38 = arith.addf %36, %37 : vector<6x32xf32>
    %39 = arith.negf %38 : vector<6x32xf32>
    %40 = math.exp %39 : vector<6x32xf32>
    %cst_33 = arith.constant 1.000000e+00 : f32
    %41 = vector.broadcast %cst_33 : f32 to vector<6x32xf32>
    %42 = arith.addf %41, %40 : vector<6x32xf32>
    %43 = arith.divf %41, %42 : vector<6x32xf32>
    %44 = vector.extract_strided_slice %25 {offsets = [0, 64], sizes = [6, 32], strides = [1, 1]} : vector<6x96xf32> to vector<6x32xf32>
    %45 = vector.extract_strided_slice %27 {offsets = [0, 64], sizes = [6, 32], strides = [1, 1]} : vector<6x96xf32> to vector<6x32xf32>
    %46 = arith.addf %45, %6 : vector<6x32xf32>
    %47 = arith.mulf %35, %46 : vector<6x32xf32>
    %48 = arith.addf %44, %47 : vector<6x32xf32>
    %49 = math.tanh %48 : vector<6x32xf32>
    %cst_34 = arith.constant 1.000000e+00 : f32
    %50 = vector.broadcast %cst_34 : f32 to vector<6x32xf32>
    %51 = arith.subf %50, %43 : vector<6x32xf32>
    %52 = arith.mulf %51, %49 : vector<6x32xf32>
    %53 = arith.mulf %43, %26 : vector<6x32xf32>
    %54 = arith.addf %52, %53 : vector<6x32xf32>
    %c0_35 = arith.constant 0 : index
    %c0_36 = arith.constant 0 : index
    %55 = vector.load %arg11[%c0_35, %c0_36] : memref<6x32xf32, #tpu.memory_space<vmem>>, vector<6x32xf32>
    tpu.vector_store %arg11[%c0_35, %c0_36], %54 {strides = array<i32>} : memref<6x32xf32, #tpu.memory_space<vmem>>, vector<6x32xf32>,
    %56 = arith.index_cast %c0_i32 : i32 to index
    %c0_37 = arith.constant 0 : index
    %c0_38 = arith.constant 0 : index
    %57 = vector.load %arg13[%56, %c0_37, %c0_38] : memref<8x6x32xf32, #tpu.memory_space<vmem>>, vector<1x6x32xf32>
    %58 = vector.shape_cast %57 : vector<1x6x32xf32> to vector<6x32xf32>
    %59 = vector.shape_cast %54 : vector<6x32xf32> to vector<1x6x32xf32>
    tpu.vector_store %arg13[%56, %c0_37, %c0_38], %59 {strides = array<i32>} : memref<8x6x32xf32, #tpu.memory_space<vmem>>, vector<1x6x32xf32>,
    %c1_i32 = arith.constant 1 : i32
    %60 = arith.index_cast %c1_i32 : i32 to index
    %c0_39 = arith.constant 0 : index
    %c0_40 = arith.constant 0 : index
    %61 = vector.load %arg1[%60, %c0_39, %c0_40] : memref<8x6x96xf32, #tpu.memory_space<vmem>>, vector<1x6x96xf32>
    %62 = vector.shape_cast %61 : vector<1x6x96xf32> to vector<6x96xf32>
    %c0_41 = arith.constant 0 : index
    %c0_42 = arith.constant 0 : index
    %63 = vector.load %arg11[%c0_41, %c0_42] : memref<6x32xf32, #tpu.memory_space<vmem>>, vector<6x32xf32>
    %cst_43 = arith.constant dense<0.000000e+00> : vector<6x96xf32>
    %64 = tpu.matmul %63, %0, %cst_43 {dimension_numbers = #tpu.dot_dimension_numbers<[1], [0], [0], [1], [0, 0, 1, 1], [], []>} : vector<6x32xf32>, vector<32x96xf32>, vector<6x96xf32> -> vector<6x96xf32>
    %65 = vector.extract_strided_slice %62 {offsets = [0, 0], sizes = [6, 32], strides = [1, 1]} : vector<6x96xf32> to vector<6x32xf32>
    %66 = vector.extract_strided_slice %64 {offsets = [0, 0], sizes = [6, 32], strides = [1, 1]} : vector<6x96xf32> to vector<6x32xf32>
    %67 = arith.addf %65, %66 : vector<6x32xf32>
    %68 = arith.negf %67 : vector<6x32xf32>
    %69 = math.exp %68 : vector<6x32xf32>
    %cst_44 = arith.constant 1.000000e+00 : f32
    %70 = vector.broadcast %cst_44 : f32 to vector<6x32xf32>
    %71 = arith.addf %70, %69 : vector<6x32xf32>
    %72 = arith.divf %70, %71 : vector<6x32xf32>
    %73 = vector.extract_strided_slice %62 {offsets = [0, 32], sizes = [6, 32], strides = [1, 1]} : vector<6x96xf32> to vector<6x32xf32>
    %74 = vector.extract_strided_slice %64 {offsets = [0, 32], sizes = [6, 32], strides = [1, 1]} : vector<6x96xf32> to vector<6x32xf32>
    %75 = arith.addf %73, %74 : vector<6x32xf32>
    %76 = arith.negf %75 : vector<6x32xf32>
    %77 = math.exp %76 : vector<6x32xf32>
    %cst_45 = arith.constant 1.000000e+00 : f32
    %78 = vector.broadcast %cst_45 : f32 to vector<6x32xf32>
    %79 = arith.addf %78, %77 : vector<6x32xf32>
    %80 = arith.divf %78, %79 : vector<6x32xf32>
    %81 = vector.extract_strided_slice %62 {offsets = [0, 64], sizes = [6, 32], strides = [1, 1]} : vector<6x96xf32> to vector<6x32xf32>
    %82 = vector.extract_strided_slice %64 {offsets = [0, 64], sizes = [6, 32], strides = [1, 1]} : vector<6x96xf32> to vector<6x32xf32>
    %83 = arith.addf %82, %6 : vector<6x32xf32>
    %84 = arith.mulf %72, %83 : vector<6x32xf32>
    %85 = arith.addf %81, %84 : vector<6x32xf32>
    %86 = math.tanh %85 : vector<6x32xf32>
    %cst_46 = arith.constant 1.000000e+00 : f32
    %87 = vector.broadcast %cst_46 : f32 to vector<6x32xf32>
    %88 = arith.subf %87, %80 : vector<6x32xf32>
    %89 = arith.mulf %88, %86 : vector<6x32xf32>
    %90 = arith.mulf %80, %63 : vector<6x32xf32>
    %91 = arith.addf %89, %90 : vector<6x32xf32>
    %c0_47 = arith.constant 0 : index
    %c0_48 = arith.constant 0 : index
    %92 = vector.load %arg11[%c0_47, %c0_48] : memref<6x32xf32, #tpu.memory_space<vmem>>, vector<6x32xf32>
    tpu.vector_store %arg11[%c0_47, %c0_48], %91 {strides = array<i32>} : memref<6x32xf32, #tpu.memory_space<vmem>>, vector<6x32xf32>,
    %93 = arith.index_cast %c1_i32 : i32 to index
    %c0_49 = arith.constant 0 : index
    %c0_50 = arith.constant 0 : index
    %94 = vector.load %arg13[%93, %c0_49, %c0_50] : memref<8x6x32xf32, #tpu.memory_space<vmem>>, vector<1x6x32xf32>
    %95 = vector.shape_cast %94 : vector<1x6x32xf32> to vector<6x32xf32>
    %96 = vector.shape_cast %91 : vector<6x32xf32> to vector<1x6x32xf32>
    tpu.vector_store %arg13[%93, %c0_49, %c0_50], %96 {strides = array<i32>} : memref<8x6x32xf32, #tpu.memory_space<vmem>>, vector<1x6x32xf32>,
    %c2_i32 = arith.constant 2 : i32
    %97 = arith.index_cast %c2_i32 : i32 to index
    %c0_51 = arith.constant 0 : index
    %c0_52 = arith.constant 0 : index
    %98 = vector.load %arg1[%97, %c0_51, %c0_52] : memref<8x6x96xf32, #tpu.memory_space<vmem>>, vector<1x6x96xf32>
    %99 = vector.shape_cast %98 : vector<1x6x96xf32> to vector<6x96xf32>
    %c0_53 = arith.constant 0 : index
    %c0_54 = arith.constant 0 : index
    %100 = vector.load %arg11[%c0_53, %c0_54] : memref<6x32xf32, #tpu.memory_space<vmem>>, vector<6x32xf32>
    %cst_55 = arith.constant dense<0.000000e+00> : vector<6x96xf32>
    %101 = tpu.matmul %100, %0, %cst_55 {dimension_numbers = #tpu.dot_dimension_numbers<[1], [0], [0], [1], [0, 0, 1, 1], [], []>} : vector<6x32xf32>, vector<32x96xf32>, vector<6x96xf32> -> vector<6x96xf32>
    %102 = vector.extract_strided_slice %99 {offsets = [0, 0], sizes = [6, 32], strides = [1, 1]} : vector<6x96xf32> to vector<6x32xf32>
    %103 = vector.extract_strided_slice %101 {offsets = [0, 0], sizes = [6, 32], strides = [1, 1]} : vector<6x96xf32> to vector<6x32xf32>
    %104 = arith.addf %102, %103 : vector<6x32xf32>
    %105 = arith.negf %104 : vector<6x32xf32>
    %106 = math.exp %105 : vector<6x32xf32>
    %cst_56 = arith.constant 1.000000e+00 : f32
    %107 = vector.broadcast %cst_56 : f32 to vector<6x32xf32>
    %108 = arith.addf %107, %106 : vector<6x32xf32>
    %109 = arith.divf %107, %108 : vector<6x32xf32>
    %110 = vector.extract_strided_slice %99 {offsets = [0, 32], sizes = [6, 32], strides = [1, 1]} : vector<6x96xf32> to vector<6x32xf32>
    %111 = vector.extract_strided_slice %101 {offsets = [0, 32], sizes = [6, 32], strides = [1, 1]} : vector<6x96xf32> to vector<6x32xf32>
    %112 = arith.addf %110, %111 : vector<6x32xf32>
    %113 = arith.negf %112 : vector<6x32xf32>
    %114 = math.exp %113 : vector<6x32xf32>
    %cst_57 = arith.constant 1.000000e+00 : f32
    %115 = vector.broadcast %cst_57 : f32 to vector<6x32xf32>
    %116 = arith.addf %115, %114 : vector<6x32xf32>
    %117 = arith.divf %115, %116 : vector<6x32xf32>
    %118 = vector.extract_strided_slice %99 {offsets = [0, 64], sizes = [6, 32], strides = [1, 1]} : vector<6x96xf32> to vector<6x32xf32>
    %119 = vector.extract_strided_slice %101 {offsets = [0, 64], sizes = [6, 32], strides = [1, 1]} : vector<6x96xf32> to vector<6x32xf32>
    %120 = arith.addf %119, %6 : vector<6x32xf32>
    %121 = arith.mulf %109, %120 : vector<6x32xf32>
    %122 = arith.addf %118, %121 : vector<6x32xf32>
    %123 = math.tanh %122 : vector<6x32xf32>
    %cst_58 = arith.constant 1.000000e+00 : f32
    %124 = vector.broadcast %cst_58 : f32 to vector<6x32xf32>
    %125 = arith.subf %124, %117 : vector<6x32xf32>
    %126 = arith.mulf %125, %123 : vector<6x32xf32>
    %127 = arith.mulf %117, %100 : vector<6x32xf32>
    %128 = arith.addf %126, %127 : vector<6x32xf32>
    %c0_59 = arith.constant 0 : index
    %c0_60 = arith.constant 0 : index
    %129 = vector.load %arg11[%c0_59, %c0_60] : memref<6x32xf32, #tpu.memory_space<vmem>>, vector<6x32xf32>
    tpu.vector_store %arg11[%c0_59, %c0_60], %128 {strides = array<i32>} : memref<6x32xf32, #tpu.memory_space<vmem>>, vector<6x32xf32>,
    %130 = arith.index_cast %c2_i32 : i32 to index
    %c0_61 = arith.constant 0 : index
    %c0_62 = arith.constant 0 : index
    %131 = vector.load %arg13[%130, %c0_61, %c0_62] : memref<8x6x32xf32, #tpu.memory_space<vmem>>, vector<1x6x32xf32>
    %132 = vector.shape_cast %131 : vector<1x6x32xf32> to vector<6x32xf32>
    %133 = vector.shape_cast %128 : vector<6x32xf32> to vector<1x6x32xf32>
    tpu.vector_store %arg13[%130, %c0_61, %c0_62], %133 {strides = array<i32>} : memref<8x6x32xf32, #tpu.memory_space<vmem>>, vector<1x6x32xf32>,
    %c3_i32 = arith.constant 3 : i32
    %134 = arith.index_cast %c3_i32 : i32 to index
    %c0_63 = arith.constant 0 : index
    %c0_64 = arith.constant 0 : index
    %135 = vector.load %arg1[%134, %c0_63, %c0_64] : memref<8x6x96xf32, #tpu.memory_space<vmem>>, vector<1x6x96xf32>
    %136 = vector.shape_cast %135 : vector<1x6x96xf32> to vector<6x96xf32>
    %c0_65 = arith.constant 0 : index
    %c0_66 = arith.constant 0 : index
    %137 = vector.load %arg11[%c0_65, %c0_66] : memref<6x32xf32, #tpu.memory_space<vmem>>, vector<6x32xf32>
    %cst_67 = arith.constant dense<0.000000e+00> : vector<6x96xf32>
    %138 = tpu.matmul %137, %0, %cst_67 {dimension_numbers = #tpu.dot_dimension_numbers<[1], [0], [0], [1], [0, 0, 1, 1], [], []>} : vector<6x32xf32>, vector<32x96xf32>, vector<6x96xf32> -> vector<6x96xf32>
    %139 = vector.extract_strided_slice %136 {offsets = [0, 0], sizes = [6, 32], strides = [1, 1]} : vector<6x96xf32> to vector<6x32xf32>
    %140 = vector.extract_strided_slice %138 {offsets = [0, 0], sizes = [6, 32], strides = [1, 1]} : vector<6x96xf32> to vector<6x32xf32>
    %141 = arith.addf %139, %140 : vector<6x32xf32>
    %142 = arith.negf %141 : vector<6x32xf32>
    %143 = math.exp %142 : vector<6x32xf32>
    %cst_68 = arith.constant 1.000000e+00 : f32
    %144 = vector.broadcast %cst_68 : f32 to vector<6x32xf32>
    %145 = arith.addf %144, %143 : vector<6x32xf32>
    %146 = arith.divf %144, %145 : vector<6x32xf32>
    %147 = vector.extract_strided_slice %136 {offsets = [0, 32], sizes = [6, 32], strides = [1, 1]} : vector<6x96xf32> to vector<6x32xf32>
    %148 = vector.extract_strided_slice %138 {offsets = [0, 32], sizes = [6, 32], strides = [1, 1]} : vector<6x96xf32> to vector<6x32xf32>
    %149 = arith.addf %147, %148 : vector<6x32xf32>
    %150 = arith.negf %149 : vector<6x32xf32>
    %151 = math.exp %150 : vector<6x32xf32>
    %cst_69 = arith.constant 1.000000e+00 : f32
    %152 = vector.broadcast %cst_69 : f32 to vector<6x32xf32>
    %153 = arith.addf %152, %151 : vector<6x32xf32>
    %154 = arith.divf %152, %153 : vector<6x32xf32>
    %155 = vector.extract_strided_slice %136 {offsets = [0, 64], sizes = [6, 32], strides = [1, 1]} : vector<6x96xf32> to vector<6x32xf32>
    %156 = vector.extract_strided_slice %138 {offsets = [0, 64], sizes = [6, 32], strides = [1, 1]} : vector<6x96xf32> to vector<6x32xf32>
    %157 = arith.addf %156, %6 : vector<6x32xf32>
    %158 = arith.mulf %146, %157 : vector<6x32xf32>
    %159 = arith.addf %155, %158 : vector<6x32xf32>
    %160 = math.tanh %159 : vector<6x32xf32>
    %cst_70 = arith.constant 1.000000e+00 : f32
    %161 = vector.broadcast %cst_70 : f32 to vector<6x32xf32>
    %162 = arith.subf %161, %154 : vector<6x32xf32>
    %163 = arith.mulf %162, %160 : vector<6x32xf32>
    %164 = arith.mulf %154, %137 : vector<6x32xf32>
    %165 = arith.addf %163, %164 : vector<6x32xf32>
    %c0_71 = arith.constant 0 : index
    %c0_72 = arith.constant 0 : index
    %166 = vector.load %arg11[%c0_71, %c0_72] : memref<6x32xf32, #tpu.memory_space<vmem>>, vector<6x32xf32>
    tpu.vector_store %arg11[%c0_71, %c0_72], %165 {strides = array<i32>} : memref<6x32xf32, #tpu.memory_space<vmem>>, vector<6x32xf32>,
    %167 = arith.index_cast %c3_i32 : i32 to index
    %c0_73 = arith.constant 0 : index
    %c0_74 = arith.constant 0 : index
    %168 = vector.load %arg13[%167, %c0_73, %c0_74] : memref<8x6x32xf32, #tpu.memory_space<vmem>>, vector<1x6x32xf32>
    %169 = vector.shape_cast %168 : vector<1x6x32xf32> to vector<6x32xf32>
    %170 = vector.shape_cast %165 : vector<6x32xf32> to vector<1x6x32xf32>
    tpu.vector_store %arg13[%167, %c0_73, %c0_74], %170 {strides = array<i32>} : memref<8x6x32xf32, #tpu.memory_space<vmem>>, vector<1x6x32xf32>,
    %c4_i32 = arith.constant 4 : i32
    %171 = arith.index_cast %c4_i32 : i32 to index
    %c0_75 = arith.constant 0 : index
    %c0_76 = arith.constant 0 : index
    %172 = vector.load %arg1[%171, %c0_75, %c0_76] : memref<8x6x96xf32, #tpu.memory_space<vmem>>, vector<1x6x96xf32>
    %173 = vector.shape_cast %172 : vector<1x6x96xf32> to vector<6x96xf32>
    %c0_77 = arith.constant 0 : index
    %c0_78 = arith.constant 0 : index
    %174 = vector.load %arg11[%c0_77, %c0_78] : memref<6x32xf32, #tpu.memory_space<vmem>>, vector<6x32xf32>
    %cst_79 = arith.constant dense<0.000000e+00> : vector<6x96xf32>
    %175 = tpu.matmul %174, %0, %cst_79 {dimension_numbers = #tpu.dot_dimension_numbers<[1], [0], [0], [1], [0, 0, 1, 1], [], []>} : vector<6x32xf32>, vector<32x96xf32>, vector<6x96xf32> -> vector<6x96xf32>
    %176 = vector.extract_strided_slice %173 {offsets = [0, 0], sizes = [6, 32], strides = [1, 1]} : vector<6x96xf32> to vector<6x32xf32>
    %177 = vector.extract_strided_slice %175 {offsets = [0, 0], sizes = [6, 32], strides = [1, 1]} : vector<6x96xf32> to vector<6x32xf32>
    %178 = arith.addf %176, %177 : vector<6x32xf32>
    %179 = arith.negf %178 : vector<6x32xf32>
    %180 = math.exp %179 : vector<6x32xf32>
    %cst_80 = arith.constant 1.000000e+00 : f32
    %181 = vector.broadcast %cst_80 : f32 to vector<6x32xf32>
    %182 = arith.addf %181, %180 : vector<6x32xf32>
    %183 = arith.divf %181, %182 : vector<6x32xf32>
    %184 = vector.extract_strided_slice %173 {offsets = [0, 32], sizes = [6, 32], strides = [1, 1]} : vector<6x96xf32> to vector<6x32xf32>
    %185 = vector.extract_strided_slice %175 {offsets = [0, 32], sizes = [6, 32], strides = [1, 1]} : vector<6x96xf32> to vector<6x32xf32>
    %186 = arith.addf %184, %185 : vector<6x32xf32>
    %187 = arith.negf %186 : vector<6x32xf32>
    %188 = math.exp %187 : vector<6x32xf32>
    %cst_81 = arith.constant 1.000000e+00 : f32
    %189 = vector.broadcast %cst_81 : f32 to vector<6x32xf32>
    %190 = arith.addf %189, %188 : vector<6x32xf32>
    %191 = arith.divf %189, %190 : vector<6x32xf32>
    %192 = vector.extract_strided_slice %173 {offsets = [0, 64], sizes = [6, 32], strides = [1, 1]} : vector<6x96xf32> to vector<6x32xf32>
    %193 = vector.extract_strided_slice %175 {offsets = [0, 64], sizes = [6, 32], strides = [1, 1]} : vector<6x96xf32> to vector<6x32xf32>
    %194 = arith.addf %193, %6 : vector<6x32xf32>
    %195 = arith.mulf %183, %194 : vector<6x32xf32>
    %196 = arith.addf %192, %195 : vector<6x32xf32>
    %197 = math.tanh %196 : vector<6x32xf32>
    %cst_82 = arith.constant 1.000000e+00 : f32
    %198 = vector.broadcast %cst_82 : f32 to vector<6x32xf32>
    %199 = arith.subf %198, %191 : vector<6x32xf32>
    %200 = arith.mulf %199, %197 : vector<6x32xf32>
    %201 = arith.mulf %191, %174 : vector<6x32xf32>
    %202 = arith.addf %200, %201 : vector<6x32xf32>
    %c0_83 = arith.constant 0 : index
    %c0_84 = arith.constant 0 : index
    %203 = vector.load %arg11[%c0_83, %c0_84] : memref<6x32xf32, #tpu.memory_space<vmem>>, vector<6x32xf32>
    tpu.vector_store %arg11[%c0_83, %c0_84], %202 {strides = array<i32>} : memref<6x32xf32, #tpu.memory_space<vmem>>, vector<6x32xf32>,
    %204 = arith.index_cast %c4_i32 : i32 to index
    %c0_85 = arith.constant 0 : index
    %c0_86 = arith.constant 0 : index
    %205 = vector.load %arg13[%204, %c0_85, %c0_86] : memref<8x6x32xf32, #tpu.memory_space<vmem>>, vector<1x6x32xf32>
    %206 = vector.shape_cast %205 : vector<1x6x32xf32> to vector<6x32xf32>
    %207 = vector.shape_cast %202 : vector<6x32xf32> to vector<1x6x32xf32>
    tpu.vector_store %arg13[%204, %c0_85, %c0_86], %207 {strides = array<i32>} : memref<8x6x32xf32, #tpu.memory_space<vmem>>, vector<1x6x32xf32>,
    %c5_i32 = arith.constant 5 : i32
    %208 = arith.index_cast %c5_i32 : i32 to index
    %c0_87 = arith.constant 0 : index
    %c0_88 = arith.constant 0 : index
    %209 = vector.load %arg1[%208, %c0_87, %c0_88] : memref<8x6x96xf32, #tpu.memory_space<vmem>>, vector<1x6x96xf32>
    %210 = vector.shape_cast %209 : vector<1x6x96xf32> to vector<6x96xf32>
    %c0_89 = arith.constant 0 : index
    %c0_90 = arith.constant 0 : index
    %211 = vector.load %arg11[%c0_89, %c0_90] : memref<6x32xf32, #tpu.memory_space<vmem>>, vector<6x32xf32>
    %cst_91 = arith.constant dense<0.000000e+00> : vector<6x96xf32>
    %212 = tpu.matmul %211, %0, %cst_91 {dimension_numbers = #tpu.dot_dimension_numbers<[1], [0], [0], [1], [0, 0, 1, 1], [], []>} : vector<6x32xf32>, vector<32x96xf32>, vector<6x96xf32> -> vector<6x96xf32>
    %213 = vector.extract_strided_slice %210 {offsets = [0, 0], sizes = [6, 32], strides = [1, 1]} : vector<6x96xf32> to vector<6x32xf32>
    %214 = vector.extract_strided_slice %212 {offsets = [0, 0], sizes = [6, 32], strides = [1, 1]} : vector<6x96xf32> to vector<6x32xf32>
    %215 = arith.addf %213, %214 : vector<6x32xf32>
    %216 = arith.negf %215 : vector<6x32xf32>
    %217 = math.exp %216 : vector<6x32xf32>
    %cst_92 = arith.constant 1.000000e+00 : f32
    %218 = vector.broadcast %cst_92 : f32 to vector<6x32xf32>
    %219 = arith.addf %218, %217 : vector<6x32xf32>
    %220 = arith.divf %218, %219 : vector<6x32xf32>
    %221 = vector.extract_strided_slice %210 {offsets = [0, 32], sizes = [6, 32], strides = [1, 1]} : vector<6x96xf32> to vector<6x32xf32>
    %222 = vector.extract_strided_slice %212 {offsets = [0, 32], sizes = [6, 32], strides = [1, 1]} : vector<6x96xf32> to vector<6x32xf32>
    %223 = arith.addf %221, %222 : vector<6x32xf32>
    %224 = arith.negf %223 : vector<6x32xf32>
    %225 = math.exp %224 : vector<6x32xf32>
    %cst_93 = arith.constant 1.000000e+00 : f32
    %226 = vector.broadcast %cst_93 : f32 to vector<6x32xf32>
    %227 = arith.addf %226, %225 : vector<6x32xf32>
    %228 = arith.divf %226, %227 : vector<6x32xf32>
    %229 = vector.extract_strided_slice %210 {offsets = [0, 64], sizes = [6, 32], strides = [1, 1]} : vector<6x96xf32> to vector<6x32xf32>
    %230 = vector.extract_strided_slice %212 {offsets = [0, 64], sizes = [6, 32], strides = [1, 1]} : vector<6x96xf32> to vector<6x32xf32>
    %231 = arith.addf %230, %6 : vector<6x32xf32>
    %232 = arith.mulf %220, %231 : vector<6x32xf32>
    %233 = arith.addf %229, %232 : vector<6x32xf32>
    %234 = math.tanh %233 : vector<6x32xf32>
    %cst_94 = arith.constant 1.000000e+00 : f32
    %235 = vector.broadcast %cst_94 : f32 to vector<6x32xf32>
    %236 = arith.subf %235, %228 : vector<6x32xf32>
    %237 = arith.mulf %236, %234 : vector<6x32xf32>
    %238 = arith.mulf %228, %211 : vector<6x32xf32>
    %239 = arith.addf %237, %238 : vector<6x32xf32>
    %c0_95 = arith.constant 0 : index
    %c0_96 = arith.constant 0 : index
    %240 = vector.load %arg11[%c0_95, %c0_96] : memref<6x32xf32, #tpu.memory_space<vmem>>, vector<6x32xf32>
    tpu.vector_store %arg11[%c0_95, %c0_96], %239 {strides = array<i32>} : memref<6x32xf32, #tpu.memory_space<vmem>>, vector<6x32xf32>,
    %241 = arith.index_cast %c5_i32 : i32 to index
    %c0_97 = arith.constant 0 : index
    %c0_98 = arith.constant 0 : index
    %242 = vector.load %arg13[%241, %c0_97, %c0_98] : memref<8x6x32xf32, #tpu.memory_space<vmem>>, vector<1x6x32xf32>
    %243 = vector.shape_cast %242 : vector<1x6x32xf32> to vector<6x32xf32>
    %244 = vector.shape_cast %239 : vector<6x32xf32> to vector<1x6x32xf32>
    tpu.vector_store %arg13[%241, %c0_97, %c0_98], %244 {strides = array<i32>} : memref<8x6x32xf32, #tpu.memory_space<vmem>>, vector<1x6x32xf32>,
    %c6_i32 = arith.constant 6 : i32
    %245 = arith.index_cast %c6_i32 : i32 to index
    %c0_99 = arith.constant 0 : index
    %c0_100 = arith.constant 0 : index
    %246 = vector.load %arg1[%245, %c0_99, %c0_100] : memref<8x6x96xf32, #tpu.memory_space<vmem>>, vector<1x6x96xf32>
    %247 = vector.shape_cast %246 : vector<1x6x96xf32> to vector<6x96xf32>
    %c0_101 = arith.constant 0 : index
    %c0_102 = arith.constant 0 : index
    %248 = vector.load %arg11[%c0_101, %c0_102] : memref<6x32xf32, #tpu.memory_space<vmem>>, vector<6x32xf32>
    %cst_103 = arith.constant dense<0.000000e+00> : vector<6x96xf32>
    %249 = tpu.matmul %248, %0, %cst_103 {dimension_numbers = #tpu.dot_dimension_numbers<[1], [0], [0], [1], [0, 0, 1, 1], [], []>} : vector<6x32xf32>, vector<32x96xf32>, vector<6x96xf32> -> vector<6x96xf32>
    %250 = vector.extract_strided_slice %247 {offsets = [0, 0], sizes = [6, 32], strides = [1, 1]} : vector<6x96xf32> to vector<6x32xf32>
    %251 = vector.extract_strided_slice %249 {offsets = [0, 0], sizes = [6, 32], strides = [1, 1]} : vector<6x96xf32> to vector<6x32xf32>
    %252 = arith.addf %250, %251 : vector<6x32xf32>
    %253 = arith.negf %252 : vector<6x32xf32>
    %254 = math.exp %253 : vector<6x32xf32>
    %cst_104 = arith.constant 1.000000e+00 : f32
    %255 = vector.broadcast %cst_104 : f32 to vector<6x32xf32>
    %256 = arith.addf %255, %254 : vector<6x32xf32>
    %257 = arith.divf %255, %256 : vector<6x32xf32>
    %258 = vector.extract_strided_slice %247 {offsets = [0, 32], sizes = [6, 32], strides = [1, 1]} : vector<6x96xf32> to vector<6x32xf32>
    %259 = vector.extract_strided_slice %249 {offsets = [0, 32], sizes = [6, 32], strides = [1, 1]} : vector<6x96xf32> to vector<6x32xf32>
    %260 = arith.addf %258, %259 : vector<6x32xf32>
    %261 = arith.negf %260 : vector<6x32xf32>
    %262 = math.exp %261 : vector<6x32xf32>
    %cst_105 = arith.constant 1.000000e+00 : f32
    %263 = vector.broadcast %cst_105 : f32 to vector<6x32xf32>
    %264 = arith.addf %263, %262 : vector<6x32xf32>
    %265 = arith.divf %263, %264 : vector<6x32xf32>
    %266 = vector.extract_strided_slice %247 {offsets = [0, 64], sizes = [6, 32], strides = [1, 1]} : vector<6x96xf32> to vector<6x32xf32>
    %267 = vector.extract_strided_slice %249 {offsets = [0, 64], sizes = [6, 32], strides = [1, 1]} : vector<6x96xf32> to vector<6x32xf32>
    %268 = arith.addf %267, %6 : vector<6x32xf32>
    %269 = arith.mulf %257, %268 : vector<6x32xf32>
    %270 = arith.addf %266, %269 : vector<6x32xf32>
    %271 = math.tanh %270 : vector<6x32xf32>
    %cst_106 = arith.constant 1.000000e+00 : f32
    %272 = vector.broadcast %cst_106 : f32 to vector<6x32xf32>
    %273 = arith.subf %272, %265 : vector<6x32xf32>
    %274 = arith.mulf %273, %271 : vector<6x32xf32>
    %275 = arith.mulf %265, %248 : vector<6x32xf32>
    %276 = arith.addf %274, %275 : vector<6x32xf32>
    %c0_107 = arith.constant 0 : index
    %c0_108 = arith.constant 0 : index
    %277 = vector.load %arg11[%c0_107, %c0_108] : memref<6x32xf32, #tpu.memory_space<vmem>>, vector<6x32xf32>
    tpu.vector_store %arg11[%c0_107, %c0_108], %276 {strides = array<i32>} : memref<6x32xf32, #tpu.memory_space<vmem>>, vector<6x32xf32>,
    %278 = arith.index_cast %c6_i32 : i32 to index
    %c0_109 = arith.constant 0 : index
    %c0_110 = arith.constant 0 : index
    %279 = vector.load %arg13[%278, %c0_109, %c0_110] : memref<8x6x32xf32, #tpu.memory_space<vmem>>, vector<1x6x32xf32>
    %280 = vector.shape_cast %279 : vector<1x6x32xf32> to vector<6x32xf32>
    %281 = vector.shape_cast %276 : vector<6x32xf32> to vector<1x6x32xf32>
    tpu.vector_store %arg13[%278, %c0_109, %c0_110], %281 {strides = array<i32>} : memref<8x6x32xf32, #tpu.memory_space<vmem>>, vector<1x6x32xf32>,
    %c7_i32 = arith.constant 7 : i32
    %282 = arith.index_cast %c7_i32 : i32 to index
    %c0_111 = arith.constant 0 : index
    %c0_112 = arith.constant 0 : index
    %283 = vector.load %arg1[%282, %c0_111, %c0_112] : memref<8x6x96xf32, #tpu.memory_space<vmem>>, vector<1x6x96xf32>
    %284 = vector.shape_cast %283 : vector<1x6x96xf32> to vector<6x96xf32>
    %c0_113 = arith.constant 0 : index
    %c0_114 = arith.constant 0 : index
    %285 = vector.load %arg11[%c0_113, %c0_114] : memref<6x32xf32, #tpu.memory_space<vmem>>, vector<6x32xf32>
    %cst_115 = arith.constant dense<0.000000e+00> : vector<6x96xf32>
    %286 = tpu.matmul %285, %0, %cst_115 {dimension_numbers = #tpu.dot_dimension_numbers<[1], [0], [0], [1], [0, 0, 1, 1], [], []>} : vector<6x32xf32>, vector<32x96xf32>, vector<6x96xf32> -> vector<6x96xf32>
    %287 = vector.extract_strided_slice %284 {offsets = [0, 0], sizes = [6, 32], strides = [1, 1]} : vector<6x96xf32> to vector<6x32xf32>
    %288 = vector.extract_strided_slice %286 {offsets = [0, 0], sizes = [6, 32], strides = [1, 1]} : vector<6x96xf32> to vector<6x32xf32>
    %289 = arith.addf %287, %288 : vector<6x32xf32>
    %290 = arith.negf %289 : vector<6x32xf32>
    %291 = math.exp %290 : vector<6x32xf32>
    %cst_116 = arith.constant 1.000000e+00 : f32
    %292 = vector.broadcast %cst_116 : f32 to vector<6x32xf32>
    %293 = arith.addf %292, %291 : vector<6x32xf32>
    %294 = arith.divf %292, %293 : vector<6x32xf32>
    %295 = vector.extract_strided_slice %284 {offsets = [0, 32], sizes = [6, 32], strides = [1, 1]} : vector<6x96xf32> to vector<6x32xf32>
    %296 = vector.extract_strided_slice %286 {offsets = [0, 32], sizes = [6, 32], strides = [1, 1]} : vector<6x96xf32> to vector<6x32xf32>
    %297 = arith.addf %295, %296 : vector<6x32xf32>
    %298 = arith.negf %297 : vector<6x32xf32>
    %299 = math.exp %298 : vector<6x32xf32>
    %cst_117 = arith.constant 1.000000e+00 : f32
    %300 = vector.broadcast %cst_117 : f32 to vector<6x32xf32>
    %301 = arith.addf %300, %299 : vector<6x32xf32>
    %302 = arith.divf %300, %301 : vector<6x32xf32>
    %303 = vector.extract_strided_slice %284 {offsets = [0, 64], sizes = [6, 32], strides = [1, 1]} : vector<6x96xf32> to vector<6x32xf32>
    %304 = vector.extract_strided_slice %286 {offsets = [0, 64], sizes = [6, 32], strides = [1, 1]} : vector<6x96xf32> to vector<6x32xf32>
    %305 = arith.addf %304, %6 : vector<6x32xf32>
    %306 = arith.mulf %294, %305 : vector<6x32xf32>
    %307 = arith.addf %303, %306 : vector<6x32xf32>
    %308 = math.tanh %307 : vector<6x32xf32>
    %cst_118 = arith.constant 1.000000e+00 : f32
    %309 = vector.broadcast %cst_118 : f32 to vector<6x32xf32>
    %310 = arith.subf %309, %302 : vector<6x32xf32>
    %311 = arith.mulf %310, %308 : vector<6x32xf32>
    %312 = arith.mulf %302, %285 : vector<6x32xf32>
    %313 = arith.addf %311, %312 : vector<6x32xf32>
    %c0_119 = arith.constant 0 : index
    %c0_120 = arith.constant 0 : index
    %314 = vector.load %arg11[%c0_119, %c0_120] : memref<6x32xf32, #tpu.memory_space<vmem>>, vector<6x32xf32>
    tpu.vector_store %arg11[%c0_119, %c0_120], %313 {strides = array<i32>} : memref<6x32xf32, #tpu.memory_space<vmem>>, vector<6x32xf32>,
    %315 = arith.index_cast %c7_i32 : i32 to index
    %c0_121 = arith.constant 0 : index
    %c0_122 = arith.constant 0 : index
    %316 = vector.load %arg13[%315, %c0_121, %c0_122] : memref<8x6x32xf32, #tpu.memory_space<vmem>>, vector<1x6x32xf32>
    %317 = vector.shape_cast %316 : vector<1x6x32xf32> to vector<6x32xf32>
    %318 = vector.shape_cast %313 : vector<6x32xf32> to vector<1x6x32xf32>
    tpu.vector_store %arg13[%315, %c0_121, %c0_122], %318 {strides = array<i32>} : memref<8x6x32xf32, #tpu.memory_space<vmem>>, vector<1x6x32xf32>,
    %c8_i32 = arith.constant 8 : i32
    %c0_i32_123 = arith.constant 0 : i32
    %c7_i32_124 = arith.constant 7 : i32
    %319 = arith.subi %c7_i32_124, %c0_i32_123 : i32
    %320 = arith.index_cast %319 : i32 to index
    %c0_125 = arith.constant 0 : index
    %c0_126 = arith.constant 0 : index
    %321 = vector.load %arg2[%320, %c0_125, %c0_126] : memref<8x6x96xf32, #tpu.memory_space<vmem>>, vector<1x6x96xf32>
    %322 = vector.shape_cast %321 : vector<1x6x96xf32> to vector<6x96xf32>
    %c0_127 = arith.constant 0 : index
    %c0_128 = arith.constant 0 : index
    %323 = vector.load %arg12[%c0_127, %c0_128] : memref<6x32xf32, #tpu.memory_space<vmem>>, vector<6x32xf32>
    %cst_129 = arith.constant dense<0.000000e+00> : vector<6x96xf32>
    %324 = tpu.matmul %323, %1, %cst_129 {dimension_numbers = #tpu.dot_dimension_numbers<[1], [0], [0], [1], [0, 0, 1, 1], [], []>} : vector<6x32xf32>, vector<32x96xf32>, vector<6x96xf32> -> vector<6x96xf32>
    %325 = vector.extract_strided_slice %322 {offsets = [0, 0], sizes = [6, 32], strides = [1, 1]} : vector<6x96xf32> to vector<6x32xf32>
    %326 = vector.extract_strided_slice %324 {offsets = [0, 0], sizes = [6, 32], strides = [1, 1]} : vector<6x96xf32> to vector<6x32xf32>
    %327 = arith.addf %325, %326 : vector<6x32xf32>
    %328 = arith.negf %327 : vector<6x32xf32>
    %329 = math.exp %328 : vector<6x32xf32>
    %cst_130 = arith.constant 1.000000e+00 : f32
    %330 = vector.broadcast %cst_130 : f32 to vector<6x32xf32>
    %331 = arith.addf %330, %329 : vector<6x32xf32>
    %332 = arith.divf %330, %331 : vector<6x32xf32>
    %333 = vector.extract_strided_slice %322 {offsets = [0, 32], sizes = [6, 32], strides = [1, 1]} : vector<6x96xf32> to vector<6x32xf32>
    %334 = vector.extract_strided_slice %324 {offsets = [0, 32], sizes = [6, 32], strides = [1, 1]} : vector<6x96xf32> to vector<6x32xf32>
    %335 = arith.addf %333, %334 : vector<6x32xf32>
    %336 = arith.negf %335 : vector<6x32xf32>
    %337 = math.exp %336 : vector<6x32xf32>
    %cst_131 = arith.constant 1.000000e+00 : f32
    %338 = vector.broadcast %cst_131 : f32 to vector<6x32xf32>
    %339 = arith.addf %338, %337 : vector<6x32xf32>
    %340 = arith.divf %338, %339 : vector<6x32xf32>
    %341 = vector.extract_strided_slice %322 {offsets = [0, 64], sizes = [6, 32], strides = [1, 1]} : vector<6x96xf32> to vector<6x32xf32>
    %342 = vector.extract_strided_slice %324 {offsets = [0, 64], sizes = [6, 32], strides = [1, 1]} : vector<6x96xf32> to vector<6x32xf32>
    %343 = arith.addf %342, %9 : vector<6x32xf32>
    %344 = arith.mulf %332, %343 : vector<6x32xf32>
    %345 = arith.addf %341, %344 : vector<6x32xf32>
    %346 = math.tanh %345 : vector<6x32xf32>
    %cst_132 = arith.constant 1.000000e+00 : f32
    %347 = vector.broadcast %cst_132 : f32 to vector<6x32xf32>
    %348 = arith.subf %347, %340 : vector<6x32xf32>
    %349 = arith.mulf %348, %346 : vector<6x32xf32>
    %350 = arith.mulf %340, %323 : vector<6x32xf32>
    %351 = arith.addf %349, %350 : vector<6x32xf32>
    %c0_133 = arith.constant 0 : index
    %c0_134 = arith.constant 0 : index
    %352 = vector.load %arg12[%c0_133, %c0_134] : memref<6x32xf32, #tpu.memory_space<vmem>>, vector<6x32xf32>
    tpu.vector_store %arg12[%c0_133, %c0_134], %351 {strides = array<i32>} : memref<6x32xf32, #tpu.memory_space<vmem>>, vector<6x32xf32>,
    %353 = arith.index_cast %319 : i32 to index
    %c0_135 = arith.constant 0 : index
    %c0_136 = arith.constant 0 : index
    %354 = vector.load %arg13[%353, %c0_135, %c0_136] : memref<8x6x32xf32, #tpu.memory_space<vmem>>, vector<1x6x32xf32>
    %355 = vector.shape_cast %354 : vector<1x6x32xf32> to vector<6x32xf32>
    %cst_137 = arith.constant dense<0.000000e+00> : vector<6x64xf32>
    %356 = tpu.matmul %355, %2, %cst_137 {dimension_numbers = #tpu.dot_dimension_numbers<[1], [0], [0], [1], [0, 0, 1, 1], [], []>} : vector<6x32xf32>, vector<32x64xf32>, vector<6x64xf32> -> vector<6x64xf32>
    %cst_138 = arith.constant dense<0.000000e+00> : vector<6x64xf32>
    %357 = tpu.matmul %351, %3, %cst_138 {dimension_numbers = #tpu.dot_dimension_numbers<[1], [0], [0], [1], [0, 0, 1, 1], [], []>} : vector<6x32xf32>, vector<32x64xf32>, vector<6x64xf32> -> vector<6x64xf32>
    %358 = arith.addf %356, %357 : vector<6x64xf32>
    %359 = arith.addf %358, %12 : vector<6x64xf32>
    %360 = math.tanh %359 : vector<6x64xf32>
    %361 = math.exp %360 : vector<6x64xf32>
    %c0_139 = arith.constant 0 : index
    %c0_140 = arith.constant 0 : index
    %362 = vector.load %arg14[%c0_139, %c0_140] : memref<6x64xf32, #tpu.memory_space<vmem>>, vector<6x64xf32>
    %363 = arith.addf %362, %361 : vector<6x64xf32>
    %c0_141 = arith.constant 0 : index
    %c0_142 = arith.constant 0 : index
    %364 = vector.load %arg14[%c0_141, %c0_142] : memref<6x64xf32, #tpu.memory_space<vmem>>, vector<6x64xf32>
    tpu.vector_store %arg14[%c0_141, %c0_142], %363 {strides = array<i32>} : memref<6x64xf32, #tpu.memory_space<vmem>>, vector<6x64xf32>,
    %c0_143 = arith.constant 0 : index
    %c0_144 = arith.constant 0 : index
    %365 = vector.load %arg15[%c0_143, %c0_144] : memref<6x32xf32, #tpu.memory_space<vmem>>, vector<6x32xf32>
    %366 = vector.extract_strided_slice %361 {offsets = [0, 0], sizes = [6, 32], strides = [1, 1]} : vector<6x64xf32> to vector<6x32xf32>
    %367 = arith.mulf %366, %355 : vector<6x32xf32>
    %368 = arith.addf %365, %367 : vector<6x32xf32>
    %c0_145 = arith.constant 0 : index
    %c0_146 = arith.constant 0 : index
    %369 = vector.load %arg15[%c0_145, %c0_146] : memref<6x32xf32, #tpu.memory_space<vmem>>, vector<6x32xf32>
    tpu.vector_store %arg15[%c0_145, %c0_146], %368 {strides = array<i32>} : memref<6x32xf32, #tpu.memory_space<vmem>>, vector<6x32xf32>,
    %c0_147 = arith.constant 0 : index
    %c0_148 = arith.constant 0 : index
    %370 = vector.load %arg16[%c0_147, %c0_148] : memref<6x32xf32, #tpu.memory_space<vmem>>, vector<6x32xf32>
    %371 = vector.extract_strided_slice %361 {offsets = [0, 32], sizes = [6, 32], strides = [1, 1]} : vector<6x64xf32> to vector<6x32xf32>
    %372 = arith.mulf %371, %351 : vector<6x32xf32>
    %373 = arith.addf %370, %372 : vector<6x32xf32>
    %c0_149 = arith.constant 0 : index
    %c0_150 = arith.constant 0 : index
    %374 = vector.load %arg16[%c0_149, %c0_150] : memref<6x32xf32, #tpu.memory_space<vmem>>, vector<6x32xf32>
    tpu.vector_store %arg16[%c0_149, %c0_150], %373 {strides = array<i32>} : memref<6x32xf32, #tpu.memory_space<vmem>>, vector<6x32xf32>,
    %c1_i32_151 = arith.constant 1 : i32
    %c7_i32_152 = arith.constant 7 : i32
    %375 = arith.subi %c7_i32_152, %c1_i32_151 : i32
    %376 = arith.index_cast %375 : i32 to index
    %c0_153 = arith.constant 0 : index
    %c0_154 = arith.constant 0 : index
    %377 = vector.load %arg2[%376, %c0_153, %c0_154] : memref<8x6x96xf32, #tpu.memory_space<vmem>>, vector<1x6x96xf32>
    %378 = vector.shape_cast %377 : vector<1x6x96xf32> to vector<6x96xf32>
    %c0_155 = arith.constant 0 : index
    %c0_156 = arith.constant 0 : index
    %379 = vector.load %arg12[%c0_155, %c0_156] : memref<6x32xf32, #tpu.memory_space<vmem>>, vector<6x32xf32>
    %cst_157 = arith.constant dense<0.000000e+00> : vector<6x96xf32>
    %380 = tpu.matmul %379, %1, %cst_157 {dimension_numbers = #tpu.dot_dimension_numbers<[1], [0], [0], [1], [0, 0, 1, 1], [], []>} : vector<6x32xf32>, vector<32x96xf32>, vector<6x96xf32> -> vector<6x96xf32>
    %381 = vector.extract_strided_slice %378 {offsets = [0, 0], sizes = [6, 32], strides = [1, 1]} : vector<6x96xf32> to vector<6x32xf32>
    %382 = vector.extract_strided_slice %380 {offsets = [0, 0], sizes = [6, 32], strides = [1, 1]} : vector<6x96xf32> to vector<6x32xf32>
    %383 = arith.addf %381, %382 : vector<6x32xf32>
    %384 = arith.negf %383 : vector<6x32xf32>
    %385 = math.exp %384 : vector<6x32xf32>
    %cst_158 = arith.constant 1.000000e+00 : f32
    %386 = vector.broadcast %cst_158 : f32 to vector<6x32xf32>
    %387 = arith.addf %386, %385 : vector<6x32xf32>
    %388 = arith.divf %386, %387 : vector<6x32xf32>
    %389 = vector.extract_strided_slice %378 {offsets = [0, 32], sizes = [6, 32], strides = [1, 1]} : vector<6x96xf32> to vector<6x32xf32>
    %390 = vector.extract_strided_slice %380 {offsets = [0, 32], sizes = [6, 32], strides = [1, 1]} : vector<6x96xf32> to vector<6x32xf32>
    %391 = arith.addf %389, %390 : vector<6x32xf32>
    %392 = arith.negf %391 : vector<6x32xf32>
    %393 = math.exp %392 : vector<6x32xf32>
    %cst_159 = arith.constant 1.000000e+00 : f32
    %394 = vector.broadcast %cst_159 : f32 to vector<6x32xf32>
    %395 = arith.addf %394, %393 : vector<6x32xf32>
    %396 = arith.divf %394, %395 : vector<6x32xf32>
    %397 = vector.extract_strided_slice %378 {offsets = [0, 64], sizes = [6, 32], strides = [1, 1]} : vector<6x96xf32> to vector<6x32xf32>
    %398 = vector.extract_strided_slice %380 {offsets = [0, 64], sizes = [6, 32], strides = [1, 1]} : vector<6x96xf32> to vector<6x32xf32>
    %399 = arith.addf %398, %9 : vector<6x32xf32>
    %400 = arith.mulf %388, %399 : vector<6x32xf32>
    %401 = arith.addf %397, %400 : vector<6x32xf32>
    %402 = math.tanh %401 : vector<6x32xf32>
    %cst_160 = arith.constant 1.000000e+00 : f32
    %403 = vector.broadcast %cst_160 : f32 to vector<6x32xf32>
    %404 = arith.subf %403, %396 : vector<6x32xf32>
    %405 = arith.mulf %404, %402 : vector<6x32xf32>
    %406 = arith.mulf %396, %379 : vector<6x32xf32>
    %407 = arith.addf %405, %406 : vector<6x32xf32>
    %c0_161 = arith.constant 0 : index
    %c0_162 = arith.constant 0 : index
    %408 = vector.load %arg12[%c0_161, %c0_162] : memref<6x32xf32, #tpu.memory_space<vmem>>, vector<6x32xf32>
    tpu.vector_store %arg12[%c0_161, %c0_162], %407 {strides = array<i32>} : memref<6x32xf32, #tpu.memory_space<vmem>>, vector<6x32xf32>,
    %409 = arith.index_cast %375 : i32 to index
    %c0_163 = arith.constant 0 : index
    %c0_164 = arith.constant 0 : index
    %410 = vector.load %arg13[%409, %c0_163, %c0_164] : memref<8x6x32xf32, #tpu.memory_space<vmem>>, vector<1x6x32xf32>
    %411 = vector.shape_cast %410 : vector<1x6x32xf32> to vector<6x32xf32>
    %cst_165 = arith.constant dense<0.000000e+00> : vector<6x64xf32>
    %412 = tpu.matmul %411, %2, %cst_165 {dimension_numbers = #tpu.dot_dimension_numbers<[1], [0], [0], [1], [0, 0, 1, 1], [], []>} : vector<6x32xf32>, vector<32x64xf32>, vector<6x64xf32> -> vector<6x64xf32>
    %cst_166 = arith.constant dense<0.000000e+00> : vector<6x64xf32>
    %413 = tpu.matmul %407, %3, %cst_166 {dimension_numbers = #tpu.dot_dimension_numbers<[1], [0], [0], [1], [0, 0, 1, 1], [], []>} : vector<6x32xf32>, vector<32x64xf32>, vector<6x64xf32> -> vector<6x64xf32>
    %414 = arith.addf %412, %413 : vector<6x64xf32>
    %415 = arith.addf %414, %12 : vector<6x64xf32>
    %416 = math.tanh %415 : vector<6x64xf32>
    %417 = math.exp %416 : vector<6x64xf32>
    %c0_167 = arith.constant 0 : index
    %c0_168 = arith.constant 0 : index
    %418 = vector.load %arg14[%c0_167, %c0_168] : memref<6x64xf32, #tpu.memory_space<vmem>>, vector<6x64xf32>
    %419 = arith.addf %418, %417 : vector<6x64xf32>
    %c0_169 = arith.constant 0 : index
    %c0_170 = arith.constant 0 : index
    %420 = vector.load %arg14[%c0_169, %c0_170] : memref<6x64xf32, #tpu.memory_space<vmem>>, vector<6x64xf32>
    tpu.vector_store %arg14[%c0_169, %c0_170], %419 {strides = array<i32>} : memref<6x64xf32, #tpu.memory_space<vmem>>, vector<6x64xf32>,
    %c0_171 = arith.constant 0 : index
    %c0_172 = arith.constant 0 : index
    %421 = vector.load %arg15[%c0_171, %c0_172] : memref<6x32xf32, #tpu.memory_space<vmem>>, vector<6x32xf32>
    %422 = vector.extract_strided_slice %417 {offsets = [0, 0], sizes = [6, 32], strides = [1, 1]} : vector<6x64xf32> to vector<6x32xf32>
    %423 = arith.mulf %422, %411 : vector<6x32xf32>
    %424 = arith.addf %421, %423 : vector<6x32xf32>
    %c0_173 = arith.constant 0 : index
    %c0_174 = arith.constant 0 : index
    %425 = vector.load %arg15[%c0_173, %c0_174] : memref<6x32xf32, #tpu.memory_space<vmem>>, vector<6x32xf32>
    tpu.vector_store %arg15[%c0_173, %c0_174], %424 {strides = array<i32>} : memref<6x32xf32, #tpu.memory_space<vmem>>, vector<6x32xf32>,
    %c0_175 = arith.constant 0 : index
    %c0_176 = arith.constant 0 : index
    %426 = vector.load %arg16[%c0_175, %c0_176] : memref<6x32xf32, #tpu.memory_space<vmem>>, vector<6x32xf32>
    %427 = vector.extract_strided_slice %417 {offsets = [0, 32], sizes = [6, 32], strides = [1, 1]} : vector<6x64xf32> to vector<6x32xf32>
    %428 = arith.mulf %427, %407 : vector<6x32xf32>
    %429 = arith.addf %426, %428 : vector<6x32xf32>
    %c0_177 = arith.constant 0 : index
    %c0_178 = arith.constant 0 : index
    %430 = vector.load %arg16[%c0_177, %c0_178] : memref<6x32xf32, #tpu.memory_space<vmem>>, vector<6x32xf32>
    tpu.vector_store %arg16[%c0_177, %c0_178], %429 {strides = array<i32>} : memref<6x32xf32, #tpu.memory_space<vmem>>, vector<6x32xf32>,
    %c2_i32_179 = arith.constant 2 : i32
    %c7_i32_180 = arith.constant 7 : i32
    %431 = arith.subi %c7_i32_180, %c2_i32_179 : i32
    %432 = arith.index_cast %431 : i32 to index
    %c0_181 = arith.constant 0 : index
    %c0_182 = arith.constant 0 : index
    %433 = vector.load %arg2[%432, %c0_181, %c0_182] : memref<8x6x96xf32, #tpu.memory_space<vmem>>, vector<1x6x96xf32>
    %434 = vector.shape_cast %433 : vector<1x6x96xf32> to vector<6x96xf32>
    %c0_183 = arith.constant 0 : index
    %c0_184 = arith.constant 0 : index
    %435 = vector.load %arg12[%c0_183, %c0_184] : memref<6x32xf32, #tpu.memory_space<vmem>>, vector<6x32xf32>
    %cst_185 = arith.constant dense<0.000000e+00> : vector<6x96xf32>
    %436 = tpu.matmul %435, %1, %cst_185 {dimension_numbers = #tpu.dot_dimension_numbers<[1], [0], [0], [1], [0, 0, 1, 1], [], []>} : vector<6x32xf32>, vector<32x96xf32>, vector<6x96xf32> -> vector<6x96xf32>
    %437 = vector.extract_strided_slice %434 {offsets = [0, 0], sizes = [6, 32], strides = [1, 1]} : vector<6x96xf32> to vector<6x32xf32>
    %438 = vector.extract_strided_slice %436 {offsets = [0, 0], sizes = [6, 32], strides = [1, 1]} : vector<6x96xf32> to vector<6x32xf32>
    %439 = arith.addf %437, %438 : vector<6x32xf32>
    %440 = arith.negf %439 : vector<6x32xf32>
    %441 = math.exp %440 : vector<6x32xf32>
    %cst_186 = arith.constant 1.000000e+00 : f32
    %442 = vector.broadcast %cst_186 : f32 to vector<6x32xf32>
    %443 = arith.addf %442, %441 : vector<6x32xf32>
    %444 = arith.divf %442, %443 : vector<6x32xf32>
    %445 = vector.extract_strided_slice %434 {offsets = [0, 32], sizes = [6, 32], strides = [1, 1]} : vector<6x96xf32> to vector<6x32xf32>
    %446 = vector.extract_strided_slice %436 {offsets = [0, 32], sizes = [6, 32], strides = [1, 1]} : vector<6x96xf32> to vector<6x32xf32>
    %447 = arith.addf %445, %446 : vector<6x32xf32>
    %448 = arith.negf %447 : vector<6x32xf32>
    %449 = math.exp %448 : vector<6x32xf32>
    %cst_187 = arith.constant 1.000000e+00 : f32
    %450 = vector.broadcast %cst_187 : f32 to vector<6x32xf32>
    %451 = arith.addf %450, %449 : vector<6x32xf32>
    %452 = arith.divf %450, %451 : vector<6x32xf32>
    %453 = vector.extract_strided_slice %434 {offsets = [0, 64], sizes = [6, 32], strides = [1, 1]} : vector<6x96xf32> to vector<6x32xf32>
    %454 = vector.extract_strided_slice %436 {offsets = [0, 64], sizes = [6, 32], strides = [1, 1]} : vector<6x96xf32> to vector<6x32xf32>
    %455 = arith.addf %454, %9 : vector<6x32xf32>
    %456 = arith.mulf %444, %455 : vector<6x32xf32>
    %457 = arith.addf %453, %456 : vector<6x32xf32>
    %458 = math.tanh %457 : vector<6x32xf32>
    %cst_188 = arith.constant 1.000000e+00 : f32
    %459 = vector.broadcast %cst_188 : f32 to vector<6x32xf32>
    %460 = arith.subf %459, %452 : vector<6x32xf32>
    %461 = arith.mulf %460, %458 : vector<6x32xf32>
    %462 = arith.mulf %452, %435 : vector<6x32xf32>
    %463 = arith.addf %461, %462 : vector<6x32xf32>
    %c0_189 = arith.constant 0 : index
    %c0_190 = arith.constant 0 : index
    %464 = vector.load %arg12[%c0_189, %c0_190] : memref<6x32xf32, #tpu.memory_space<vmem>>, vector<6x32xf32>
    tpu.vector_store %arg12[%c0_189, %c0_190], %463 {strides = array<i32>} : memref<6x32xf32, #tpu.memory_space<vmem>>, vector<6x32xf32>,
    %465 = arith.index_cast %431 : i32 to index
    %c0_191 = arith.constant 0 : index
    %c0_192 = arith.constant 0 : index
    %466 = vector.load %arg13[%465, %c0_191, %c0_192] : memref<8x6x32xf32, #tpu.memory_space<vmem>>, vector<1x6x32xf32>
    %467 = vector.shape_cast %466 : vector<1x6x32xf32> to vector<6x32xf32>
    %cst_193 = arith.constant dense<0.000000e+00> : vector<6x64xf32>
    %468 = tpu.matmul %467, %2, %cst_193 {dimension_numbers = #tpu.dot_dimension_numbers<[1], [0], [0], [1], [0, 0, 1, 1], [], []>} : vector<6x32xf32>, vector<32x64xf32>, vector<6x64xf32> -> vector<6x64xf32>
    %cst_194 = arith.constant dense<0.000000e+00> : vector<6x64xf32>
    %469 = tpu.matmul %463, %3, %cst_194 {dimension_numbers = #tpu.dot_dimension_numbers<[1], [0], [0], [1], [0, 0, 1, 1], [], []>} : vector<6x32xf32>, vector<32x64xf32>, vector<6x64xf32> -> vector<6x64xf32>
    %470 = arith.addf %468, %469 : vector<6x64xf32>
    %471 = arith.addf %470, %12 : vector<6x64xf32>
    %472 = math.tanh %471 : vector<6x64xf32>
    %473 = math.exp %472 : vector<6x64xf32>
    %c0_195 = arith.constant 0 : index
    %c0_196 = arith.constant 0 : index
    %474 = vector.load %arg14[%c0_195, %c0_196] : memref<6x64xf32, #tpu.memory_space<vmem>>, vector<6x64xf32>
    %475 = arith.addf %474, %473 : vector<6x64xf32>
    %c0_197 = arith.constant 0 : index
    %c0_198 = arith.constant 0 : index
    %476 = vector.load %arg14[%c0_197, %c0_198] : memref<6x64xf32, #tpu.memory_space<vmem>>, vector<6x64xf32>
    tpu.vector_store %arg14[%c0_197, %c0_198], %475 {strides = array<i32>} : memref<6x64xf32, #tpu.memory_space<vmem>>, vector<6x64xf32>,
    %c0_199 = arith.constant 0 : index
    %c0_200 = arith.constant 0 : index
    %477 = vector.load %arg15[%c0_199, %c0_200] : memref<6x32xf32, #tpu.memory_space<vmem>>, vector<6x32xf32>
    %478 = vector.extract_strided_slice %473 {offsets = [0, 0], sizes = [6, 32], strides = [1, 1]} : vector<6x64xf32> to vector<6x32xf32>
    %479 = arith.mulf %478, %467 : vector<6x32xf32>
    %480 = arith.addf %477, %479 : vector<6x32xf32>
    %c0_201 = arith.constant 0 : index
    %c0_202 = arith.constant 0 : index
    %481 = vector.load %arg15[%c0_201, %c0_202] : memref<6x32xf32, #tpu.memory_space<vmem>>, vector<6x32xf32>
    tpu.vector_store %arg15[%c0_201, %c0_202], %480 {strides = array<i32>} : memref<6x32xf32, #tpu.memory_space<vmem>>, vector<6x32xf32>,
    %c0_203 = arith.constant 0 : index
    %c0_204 = arith.constant 0 : index
    %482 = vector.load %arg16[%c0_203, %c0_204] : memref<6x32xf32, #tpu.memory_space<vmem>>, vector<6x32xf32>
    %483 = vector.extract_strided_slice %473 {offsets = [0, 32], sizes = [6, 32], strides = [1, 1]} : vector<6x64xf32> to vector<6x32xf32>
    %484 = arith.mulf %483, %463 : vector<6x32xf32>
    %485 = arith.addf %482, %484 : vector<6x32xf32>
    %c0_205 = arith.constant 0 : index
    %c0_206 = arith.constant 0 : index
    %486 = vector.load %arg16[%c0_205, %c0_206] : memref<6x32xf32, #tpu.memory_space<vmem>>, vector<6x32xf32>
    tpu.vector_store %arg16[%c0_205, %c0_206], %485 {strides = array<i32>} : memref<6x32xf32, #tpu.memory_space<vmem>>, vector<6x32xf32>,
    %c3_i32_207 = arith.constant 3 : i32
    %c7_i32_208 = arith.constant 7 : i32
    %487 = arith.subi %c7_i32_208, %c3_i32_207 : i32
    %488 = arith.index_cast %487 : i32 to index
    %c0_209 = arith.constant 0 : index
    %c0_210 = arith.constant 0 : index
    %489 = vector.load %arg2[%488, %c0_209, %c0_210] : memref<8x6x96xf32, #tpu.memory_space<vmem>>, vector<1x6x96xf32>
    %490 = vector.shape_cast %489 : vector<1x6x96xf32> to vector<6x96xf32>
    %c0_211 = arith.constant 0 : index
    %c0_212 = arith.constant 0 : index
    %491 = vector.load %arg12[%c0_211, %c0_212] : memref<6x32xf32, #tpu.memory_space<vmem>>, vector<6x32xf32>
    %cst_213 = arith.constant dense<0.000000e+00> : vector<6x96xf32>
    %492 = tpu.matmul %491, %1, %cst_213 {dimension_numbers = #tpu.dot_dimension_numbers<[1], [0], [0], [1], [0, 0, 1, 1], [], []>} : vector<6x32xf32>, vector<32x96xf32>, vector<6x96xf32> -> vector<6x96xf32>
    %493 = vector.extract_strided_slice %490 {offsets = [0, 0], sizes = [6, 32], strides = [1, 1]} : vector<6x96xf32> to vector<6x32xf32>
    %494 = vector.extract_strided_slice %492 {offsets = [0, 0], sizes = [6, 32], strides = [1, 1]} : vector<6x96xf32> to vector<6x32xf32>
    %495 = arith.addf %493, %494 : vector<6x32xf32>
    %496 = arith.negf %495 : vector<6x32xf32>
    %497 = math.exp %496 : vector<6x32xf32>
    %cst_214 = arith.constant 1.000000e+00 : f32
    %498 = vector.broadcast %cst_214 : f32 to vector<6x32xf32>
    %499 = arith.addf %498, %497 : vector<6x32xf32>
    %500 = arith.divf %498, %499 : vector<6x32xf32>
    %501 = vector.extract_strided_slice %490 {offsets = [0, 32], sizes = [6, 32], strides = [1, 1]} : vector<6x96xf32> to vector<6x32xf32>
    %502 = vector.extract_strided_slice %492 {offsets = [0, 32], sizes = [6, 32], strides = [1, 1]} : vector<6x96xf32> to vector<6x32xf32>
    %503 = arith.addf %501, %502 : vector<6x32xf32>
    %504 = arith.negf %503 : vector<6x32xf32>
    %505 = math.exp %504 : vector<6x32xf32>
    %cst_215 = arith.constant 1.000000e+00 : f32
    %506 = vector.broadcast %cst_215 : f32 to vector<6x32xf32>
    %507 = arith.addf %506, %505 : vector<6x32xf32>
    %508 = arith.divf %506, %507 : vector<6x32xf32>
    %509 = vector.extract_strided_slice %490 {offsets = [0, 64], sizes = [6, 32], strides = [1, 1]} : vector<6x96xf32> to vector<6x32xf32>
    %510 = vector.extract_strided_slice %492 {offsets = [0, 64], sizes = [6, 32], strides = [1, 1]} : vector<6x96xf32> to vector<6x32xf32>
    %511 = arith.addf %510, %9 : vector<6x32xf32>
    %512 = arith.mulf %500, %511 : vector<6x32xf32>
    %513 = arith.addf %509, %512 : vector<6x32xf32>
    %514 = math.tanh %513 : vector<6x32xf32>
    %cst_216 = arith.constant 1.000000e+00 : f32
    %515 = vector.broadcast %cst_216 : f32 to vector<6x32xf32>
    %516 = arith.subf %515, %508 : vector<6x32xf32>
    %517 = arith.mulf %516, %514 : vector<6x32xf32>
    %518 = arith.mulf %508, %491 : vector<6x32xf32>
    %519 = arith.addf %517, %518 : vector<6x32xf32>
    %c0_217 = arith.constant 0 : index
    %c0_218 = arith.constant 0 : index
    %520 = vector.load %arg12[%c0_217, %c0_218] : memref<6x32xf32, #tpu.memory_space<vmem>>, vector<6x32xf32>
    tpu.vector_store %arg12[%c0_217, %c0_218], %519 {strides = array<i32>} : memref<6x32xf32, #tpu.memory_space<vmem>>, vector<6x32xf32>,
    %521 = arith.index_cast %487 : i32 to index
    %c0_219 = arith.constant 0 : index
    %c0_220 = arith.constant 0 : index
    %522 = vector.load %arg13[%521, %c0_219, %c0_220] : memref<8x6x32xf32, #tpu.memory_space<vmem>>, vector<1x6x32xf32>
    %523 = vector.shape_cast %522 : vector<1x6x32xf32> to vector<6x32xf32>
    %cst_221 = arith.constant dense<0.000000e+00> : vector<6x64xf32>
    %524 = tpu.matmul %523, %2, %cst_221 {dimension_numbers = #tpu.dot_dimension_numbers<[1], [0], [0], [1], [0, 0, 1, 1], [], []>} : vector<6x32xf32>, vector<32x64xf32>, vector<6x64xf32> -> vector<6x64xf32>
    %cst_222 = arith.constant dense<0.000000e+00> : vector<6x64xf32>
    %525 = tpu.matmul %519, %3, %cst_222 {dimension_numbers = #tpu.dot_dimension_numbers<[1], [0], [0], [1], [0, 0, 1, 1], [], []>} : vector<6x32xf32>, vector<32x64xf32>, vector<6x64xf32> -> vector<6x64xf32>
    %526 = arith.addf %524, %525 : vector<6x64xf32>
    %527 = arith.addf %526, %12 : vector<6x64xf32>
    %528 = math.tanh %527 : vector<6x64xf32>
    %529 = math.exp %528 : vector<6x64xf32>
    %c0_223 = arith.constant 0 : index
    %c0_224 = arith.constant 0 : index
    %530 = vector.load %arg14[%c0_223, %c0_224] : memref<6x64xf32, #tpu.memory_space<vmem>>, vector<6x64xf32>
    %531 = arith.addf %530, %529 : vector<6x64xf32>
    %c0_225 = arith.constant 0 : index
    %c0_226 = arith.constant 0 : index
    %532 = vector.load %arg14[%c0_225, %c0_226] : memref<6x64xf32, #tpu.memory_space<vmem>>, vector<6x64xf32>
    tpu.vector_store %arg14[%c0_225, %c0_226], %531 {strides = array<i32>} : memref<6x64xf32, #tpu.memory_space<vmem>>, vector<6x64xf32>,
    %c0_227 = arith.constant 0 : index
    %c0_228 = arith.constant 0 : index
    %533 = vector.load %arg15[%c0_227, %c0_228] : memref<6x32xf32, #tpu.memory_space<vmem>>, vector<6x32xf32>
    %534 = vector.extract_strided_slice %529 {offsets = [0, 0], sizes = [6, 32], strides = [1, 1]} : vector<6x64xf32> to vector<6x32xf32>
    %535 = arith.mulf %534, %523 : vector<6x32xf32>
    %536 = arith.addf %533, %535 : vector<6x32xf32>
    %c0_229 = arith.constant 0 : index
    %c0_230 = arith.constant 0 : index
    %537 = vector.load %arg15[%c0_229, %c0_230] : memref<6x32xf32, #tpu.memory_space<vmem>>, vector<6x32xf32>
    tpu.vector_store %arg15[%c0_229, %c0_230], %536 {strides = array<i32>} : memref<6x32xf32, #tpu.memory_space<vmem>>, vector<6x32xf32>,
    %c0_231 = arith.constant 0 : index
    %c0_232 = arith.constant 0 : index
    %538 = vector.load %arg16[%c0_231, %c0_232] : memref<6x32xf32, #tpu.memory_space<vmem>>, vector<6x32xf32>
    %539 = vector.extract_strided_slice %529 {offsets = [0, 32], sizes = [6, 32], strides = [1, 1]} : vector<6x64xf32> to vector<6x32xf32>
    %540 = arith.mulf %539, %519 : vector<6x32xf32>
    %541 = arith.addf %538, %540 : vector<6x32xf32>
    %c0_233 = arith.constant 0 : index
    %c0_234 = arith.constant 0 : index
    %542 = vector.load %arg16[%c0_233, %c0_234] : memref<6x32xf32, #tpu.memory_space<vmem>>, vector<6x32xf32>
    tpu.vector_store %arg16[%c0_233, %c0_234], %541 {strides = array<i32>} : memref<6x32xf32, #tpu.memory_space<vmem>>, vector<6x32xf32>,
    %c4_i32_235 = arith.constant 4 : i32
    %c7_i32_236 = arith.constant 7 : i32
    %543 = arith.subi %c7_i32_236, %c4_i32_235 : i32
    %544 = arith.index_cast %543 : i32 to index
    %c0_237 = arith.constant 0 : index
    %c0_238 = arith.constant 0 : index
    %545 = vector.load %arg2[%544, %c0_237, %c0_238] : memref<8x6x96xf32, #tpu.memory_space<vmem>>, vector<1x6x96xf32>
    %546 = vector.shape_cast %545 : vector<1x6x96xf32> to vector<6x96xf32>
    %c0_239 = arith.constant 0 : index
    %c0_240 = arith.constant 0 : index
    %547 = vector.load %arg12[%c0_239, %c0_240] : memref<6x32xf32, #tpu.memory_space<vmem>>, vector<6x32xf32>
    %cst_241 = arith.constant dense<0.000000e+00> : vector<6x96xf32>
    %548 = tpu.matmul %547, %1, %cst_241 {dimension_numbers = #tpu.dot_dimension_numbers<[1], [0], [0], [1], [0, 0, 1, 1], [], []>} : vector<6x32xf32>, vector<32x96xf32>, vector<6x96xf32> -> vector<6x96xf32>
    %549 = vector.extract_strided_slice %546 {offsets = [0, 0], sizes = [6, 32], strides = [1, 1]} : vector<6x96xf32> to vector<6x32xf32>
    %550 = vector.extract_strided_slice %548 {offsets = [0, 0], sizes = [6, 32], strides = [1, 1]} : vector<6x96xf32> to vector<6x32xf32>
    %551 = arith.addf %549, %550 : vector<6x32xf32>
    %552 = arith.negf %551 : vector<6x32xf32>
    %553 = math.exp %552 : vector<6x32xf32>
    %cst_242 = arith.constant 1.000000e+00 : f32
    %554 = vector.broadcast %cst_242 : f32 to vector<6x32xf32>
    %555 = arith.addf %554, %553 : vector<6x32xf32>
    %556 = arith.divf %554, %555 : vector<6x32xf32>
    %557 = vector.extract_strided_slice %546 {offsets = [0, 32], sizes = [6, 32], strides = [1, 1]} : vector<6x96xf32> to vector<6x32xf32>
    %558 = vector.extract_strided_slice %548 {offsets = [0, 32], sizes = [6, 32], strides = [1, 1]} : vector<6x96xf32> to vector<6x32xf32>
    %559 = arith.addf %557, %558 : vector<6x32xf32>
    %560 = arith.negf %559 : vector<6x32xf32>
    %561 = math.exp %560 : vector<6x32xf32>
    %cst_243 = arith.constant 1.000000e+00 : f32
    %562 = vector.broadcast %cst_243 : f32 to vector<6x32xf32>
    %563 = arith.addf %562, %561 : vector<6x32xf32>
    %564 = arith.divf %562, %563 : vector<6x32xf32>
    %565 = vector.extract_strided_slice %546 {offsets = [0, 64], sizes = [6, 32], strides = [1, 1]} : vector<6x96xf32> to vector<6x32xf32>
    %566 = vector.extract_strided_slice %548 {offsets = [0, 64], sizes = [6, 32], strides = [1, 1]} : vector<6x96xf32> to vector<6x32xf32>
    %567 = arith.addf %566, %9 : vector<6x32xf32>
    %568 = arith.mulf %556, %567 : vector<6x32xf32>
    %569 = arith.addf %565, %568 : vector<6x32xf32>
    %570 = math.tanh %569 : vector<6x32xf32>
    %cst_244 = arith.constant 1.000000e+00 : f32
    %571 = vector.broadcast %cst_244 : f32 to vector<6x32xf32>
    %572 = arith.subf %571, %564 : vector<6x32xf32>
    %573 = arith.mulf %572, %570 : vector<6x32xf32>
    %574 = arith.mulf %564, %547 : vector<6x32xf32>
    %575 = arith.addf %573, %574 : vector<6x32xf32>
    %c0_245 = arith.constant 0 : index
    %c0_246 = arith.constant 0 : index
    %576 = vector.load %arg12[%c0_245, %c0_246] : memref<6x32xf32, #tpu.memory_space<vmem>>, vector<6x32xf32>
    tpu.vector_store %arg12[%c0_245, %c0_246], %575 {strides = array<i32>} : memref<6x32xf32, #tpu.memory_space<vmem>>, vector<6x32xf32>,
    %577 = arith.index_cast %543 : i32 to index
    %c0_247 = arith.constant 0 : index
    %c0_248 = arith.constant 0 : index
    %578 = vector.load %arg13[%577, %c0_247, %c0_248] : memref<8x6x32xf32, #tpu.memory_space<vmem>>, vector<1x6x32xf32>
    %579 = vector.shape_cast %578 : vector<1x6x32xf32> to vector<6x32xf32>
    %cst_249 = arith.constant dense<0.000000e+00> : vector<6x64xf32>
    %580 = tpu.matmul %579, %2, %cst_249 {dimension_numbers = #tpu.dot_dimension_numbers<[1], [0], [0], [1], [0, 0, 1, 1], [], []>} : vector<6x32xf32>, vector<32x64xf32>, vector<6x64xf32> -> vector<6x64xf32>
    %cst_250 = arith.constant dense<0.000000e+00> : vector<6x64xf32>
    %581 = tpu.matmul %575, %3, %cst_250 {dimension_numbers = #tpu.dot_dimension_numbers<[1], [0], [0], [1], [0, 0, 1, 1], [], []>} : vector<6x32xf32>, vector<32x64xf32>, vector<6x64xf32> -> vector<6x64xf32>
    %582 = arith.addf %580, %581 : vector<6x64xf32>
    %583 = arith.addf %582, %12 : vector<6x64xf32>
    %584 = math.tanh %583 : vector<6x64xf32>
    %585 = math.exp %584 : vector<6x64xf32>
    %c0_251 = arith.constant 0 : index
    %c0_252 = arith.constant 0 : index
    %586 = vector.load %arg14[%c0_251, %c0_252] : memref<6x64xf32, #tpu.memory_space<vmem>>, vector<6x64xf32>
    %587 = arith.addf %586, %585 : vector<6x64xf32>
    %c0_253 = arith.constant 0 : index
    %c0_254 = arith.constant 0 : index
    %588 = vector.load %arg14[%c0_253, %c0_254] : memref<6x64xf32, #tpu.memory_space<vmem>>, vector<6x64xf32>
    tpu.vector_store %arg14[%c0_253, %c0_254], %587 {strides = array<i32>} : memref<6x64xf32, #tpu.memory_space<vmem>>, vector<6x64xf32>,
    %c0_255 = arith.constant 0 : index
    %c0_256 = arith.constant 0 : index
    %589 = vector.load %arg15[%c0_255, %c0_256] : memref<6x32xf32, #tpu.memory_space<vmem>>, vector<6x32xf32>
    %590 = vector.extract_strided_slice %585 {offsets = [0, 0], sizes = [6, 32], strides = [1, 1]} : vector<6x64xf32> to vector<6x32xf32>
    %591 = arith.mulf %590, %579 : vector<6x32xf32>
    %592 = arith.addf %589, %591 : vector<6x32xf32>
    %c0_257 = arith.constant 0 : index
    %c0_258 = arith.constant 0 : index
    %593 = vector.load %arg15[%c0_257, %c0_258] : memref<6x32xf32, #tpu.memory_space<vmem>>, vector<6x32xf32>
    tpu.vector_store %arg15[%c0_257, %c0_258], %592 {strides = array<i32>} : memref<6x32xf32, #tpu.memory_space<vmem>>, vector<6x32xf32>,
    %c0_259 = arith.constant 0 : index
    %c0_260 = arith.constant 0 : index
    %594 = vector.load %arg16[%c0_259, %c0_260] : memref<6x32xf32, #tpu.memory_space<vmem>>, vector<6x32xf32>
    %595 = vector.extract_strided_slice %585 {offsets = [0, 32], sizes = [6, 32], strides = [1, 1]} : vector<6x64xf32> to vector<6x32xf32>
    %596 = arith.mulf %595, %575 : vector<6x32xf32>
    %597 = arith.addf %594, %596 : vector<6x32xf32>
    %c0_261 = arith.constant 0 : index
    %c0_262 = arith.constant 0 : index
    %598 = vector.load %arg16[%c0_261, %c0_262] : memref<6x32xf32, #tpu.memory_space<vmem>>, vector<6x32xf32>
    tpu.vector_store %arg16[%c0_261, %c0_262], %597 {strides = array<i32>} : memref<6x32xf32, #tpu.memory_space<vmem>>, vector<6x32xf32>,
    %c5_i32_263 = arith.constant 5 : i32
    %c7_i32_264 = arith.constant 7 : i32
    %599 = arith.subi %c7_i32_264, %c5_i32_263 : i32
    %600 = arith.index_cast %599 : i32 to index
    %c0_265 = arith.constant 0 : index
    %c0_266 = arith.constant 0 : index
    %601 = vector.load %arg2[%600, %c0_265, %c0_266] : memref<8x6x96xf32, #tpu.memory_space<vmem>>, vector<1x6x96xf32>
    %602 = vector.shape_cast %601 : vector<1x6x96xf32> to vector<6x96xf32>
    %c0_267 = arith.constant 0 : index
    %c0_268 = arith.constant 0 : index
    %603 = vector.load %arg12[%c0_267, %c0_268] : memref<6x32xf32, #tpu.memory_space<vmem>>, vector<6x32xf32>
    %cst_269 = arith.constant dense<0.000000e+00> : vector<6x96xf32>
    %604 = tpu.matmul %603, %1, %cst_269 {dimension_numbers = #tpu.dot_dimension_numbers<[1], [0], [0], [1], [0, 0, 1, 1], [], []>} : vector<6x32xf32>, vector<32x96xf32>, vector<6x96xf32> -> vector<6x96xf32>
    %605 = vector.extract_strided_slice %602 {offsets = [0, 0], sizes = [6, 32], strides = [1, 1]} : vector<6x96xf32> to vector<6x32xf32>
    %606 = vector.extract_strided_slice %604 {offsets = [0, 0], sizes = [6, 32], strides = [1, 1]} : vector<6x96xf32> to vector<6x32xf32>
    %607 = arith.addf %605, %606 : vector<6x32xf32>
    %608 = arith.negf %607 : vector<6x32xf32>
    %609 = math.exp %608 : vector<6x32xf32>
    %cst_270 = arith.constant 1.000000e+00 : f32
    %610 = vector.broadcast %cst_270 : f32 to vector<6x32xf32>
    %611 = arith.addf %610, %609 : vector<6x32xf32>
    %612 = arith.divf %610, %611 : vector<6x32xf32>
    %613 = vector.extract_strided_slice %602 {offsets = [0, 32], sizes = [6, 32], strides = [1, 1]} : vector<6x96xf32> to vector<6x32xf32>
    %614 = vector.extract_strided_slice %604 {offsets = [0, 32], sizes = [6, 32], strides = [1, 1]} : vector<6x96xf32> to vector<6x32xf32>
    %615 = arith.addf %613, %614 : vector<6x32xf32>
    %616 = arith.negf %615 : vector<6x32xf32>
    %617 = math.exp %616 : vector<6x32xf32>
    %cst_271 = arith.constant 1.000000e+00 : f32
    %618 = vector.broadcast %cst_271 : f32 to vector<6x32xf32>
    %619 = arith.addf %618, %617 : vector<6x32xf32>
    %620 = arith.divf %618, %619 : vector<6x32xf32>
    %621 = vector.extract_strided_slice %602 {offsets = [0, 64], sizes = [6, 32], strides = [1, 1]} : vector<6x96xf32> to vector<6x32xf32>
    %622 = vector.extract_strided_slice %604 {offsets = [0, 64], sizes = [6, 32], strides = [1, 1]} : vector<6x96xf32> to vector<6x32xf32>
    %623 = arith.addf %622, %9 : vector<6x32xf32>
    %624 = arith.mulf %612, %623 : vector<6x32xf32>
    %625 = arith.addf %621, %624 : vector<6x32xf32>
    %626 = math.tanh %625 : vector<6x32xf32>
    %cst_272 = arith.constant 1.000000e+00 : f32
    %627 = vector.broadcast %cst_272 : f32 to vector<6x32xf32>
    %628 = arith.subf %627, %620 : vector<6x32xf32>
    %629 = arith.mulf %628, %626 : vector<6x32xf32>
    %630 = arith.mulf %620, %603 : vector<6x32xf32>
    %631 = arith.addf %629, %630 : vector<6x32xf32>
    %c0_273 = arith.constant 0 : index
    %c0_274 = arith.constant 0 : index
    %632 = vector.load %arg12[%c0_273, %c0_274] : memref<6x32xf32, #tpu.memory_space<vmem>>, vector<6x32xf32>
    tpu.vector_store %arg12[%c0_273, %c0_274], %631 {strides = array<i32>} : memref<6x32xf32, #tpu.memory_space<vmem>>, vector<6x32xf32>,
    %633 = arith.index_cast %599 : i32 to index
    %c0_275 = arith.constant 0 : index
    %c0_276 = arith.constant 0 : index
    %634 = vector.load %arg13[%633, %c0_275, %c0_276] : memref<8x6x32xf32, #tpu.memory_space<vmem>>, vector<1x6x32xf32>
    %635 = vector.shape_cast %634 : vector<1x6x32xf32> to vector<6x32xf32>
    %cst_277 = arith.constant dense<0.000000e+00> : vector<6x64xf32>
    %636 = tpu.matmul %635, %2, %cst_277 {dimension_numbers = #tpu.dot_dimension_numbers<[1], [0], [0], [1], [0, 0, 1, 1], [], []>} : vector<6x32xf32>, vector<32x64xf32>, vector<6x64xf32> -> vector<6x64xf32>
    %cst_278 = arith.constant dense<0.000000e+00> : vector<6x64xf32>
    %637 = tpu.matmul %631, %3, %cst_278 {dimension_numbers = #tpu.dot_dimension_numbers<[1], [0], [0], [1], [0, 0, 1, 1], [], []>} : vector<6x32xf32>, vector<32x64xf32>, vector<6x64xf32> -> vector<6x64xf32>
    %638 = arith.addf %636, %637 : vector<6x64xf32>
    %639 = arith.addf %638, %12 : vector<6x64xf32>
    %640 = math.tanh %639 : vector<6x64xf32>
    %641 = math.exp %640 : vector<6x64xf32>
    %c0_279 = arith.constant 0 : index
    %c0_280 = arith.constant 0 : index
    %642 = vector.load %arg14[%c0_279, %c0_280] : memref<6x64xf32, #tpu.memory_space<vmem>>, vector<6x64xf32>
    %643 = arith.addf %642, %641 : vector<6x64xf32>
    %c0_281 = arith.constant 0 : index
    %c0_282 = arith.constant 0 : index
    %644 = vector.load %arg14[%c0_281, %c0_282] : memref<6x64xf32, #tpu.memory_space<vmem>>, vector<6x64xf32>
    tpu.vector_store %arg14[%c0_281, %c0_282], %643 {strides = array<i32>} : memref<6x64xf32, #tpu.memory_space<vmem>>, vector<6x64xf32>,
    %c0_283 = arith.constant 0 : index
    %c0_284 = arith.constant 0 : index
    %645 = vector.load %arg15[%c0_283, %c0_284] : memref<6x32xf32, #tpu.memory_space<vmem>>, vector<6x32xf32>
    %646 = vector.extract_strided_slice %641 {offsets = [0, 0], sizes = [6, 32], strides = [1, 1]} : vector<6x64xf32> to vector<6x32xf32>
    %647 = arith.mulf %646, %635 : vector<6x32xf32>
    %648 = arith.addf %645, %647 : vector<6x32xf32>
    %c0_285 = arith.constant 0 : index
    %c0_286 = arith.constant 0 : index
    %649 = vector.load %arg15[%c0_285, %c0_286] : memref<6x32xf32, #tpu.memory_space<vmem>>, vector<6x32xf32>
    tpu.vector_store %arg15[%c0_285, %c0_286], %648 {strides = array<i32>} : memref<6x32xf32, #tpu.memory_space<vmem>>, vector<6x32xf32>,
    %c0_287 = arith.constant 0 : index
    %c0_288 = arith.constant 0 : index
    %650 = vector.load %arg16[%c0_287, %c0_288] : memref<6x32xf32, #tpu.memory_space<vmem>>, vector<6x32xf32>
    %651 = vector.extract_strided_slice %641 {offsets = [0, 32], sizes = [6, 32], strides = [1, 1]} : vector<6x64xf32> to vector<6x32xf32>
    %652 = arith.mulf %651, %631 : vector<6x32xf32>
    %653 = arith.addf %650, %652 : vector<6x32xf32>
    %c0_289 = arith.constant 0 : index
    %c0_290 = arith.constant 0 : index
    %654 = vector.load %arg16[%c0_289, %c0_290] : memref<6x32xf32, #tpu.memory_space<vmem>>, vector<6x32xf32>
    tpu.vector_store %arg16[%c0_289, %c0_290], %653 {strides = array<i32>} : memref<6x32xf32, #tpu.memory_space<vmem>>, vector<6x32xf32>,
    %c6_i32_291 = arith.constant 6 : i32
    %c7_i32_292 = arith.constant 7 : i32
    %655 = arith.subi %c7_i32_292, %c6_i32_291 : i32
    %656 = arith.index_cast %655 : i32 to index
    %c0_293 = arith.constant 0 : index
    %c0_294 = arith.constant 0 : index
    %657 = vector.load %arg2[%656, %c0_293, %c0_294] : memref<8x6x96xf32, #tpu.memory_space<vmem>>, vector<1x6x96xf32>
    %658 = vector.shape_cast %657 : vector<1x6x96xf32> to vector<6x96xf32>
    %c0_295 = arith.constant 0 : index
    %c0_296 = arith.constant 0 : index
    %659 = vector.load %arg12[%c0_295, %c0_296] : memref<6x32xf32, #tpu.memory_space<vmem>>, vector<6x32xf32>
    %cst_297 = arith.constant dense<0.000000e+00> : vector<6x96xf32>
    %660 = tpu.matmul %659, %1, %cst_297 {dimension_numbers = #tpu.dot_dimension_numbers<[1], [0], [0], [1], [0, 0, 1, 1], [], []>} : vector<6x32xf32>, vector<32x96xf32>, vector<6x96xf32> -> vector<6x96xf32>
    %661 = vector.extract_strided_slice %658 {offsets = [0, 0], sizes = [6, 32], strides = [1, 1]} : vector<6x96xf32> to vector<6x32xf32>
    %662 = vector.extract_strided_slice %660 {offsets = [0, 0], sizes = [6, 32], strides = [1, 1]} : vector<6x96xf32> to vector<6x32xf32>
    %663 = arith.addf %661, %662 : vector<6x32xf32>
    %664 = arith.negf %663 : vector<6x32xf32>
    %665 = math.exp %664 : vector<6x32xf32>
    %cst_298 = arith.constant 1.000000e+00 : f32
    %666 = vector.broadcast %cst_298 : f32 to vector<6x32xf32>
    %667 = arith.addf %666, %665 : vector<6x32xf32>
    %668 = arith.divf %666, %667 : vector<6x32xf32>
    %669 = vector.extract_strided_slice %658 {offsets = [0, 32], sizes = [6, 32], strides = [1, 1]} : vector<6x96xf32> to vector<6x32xf32>
    %670 = vector.extract_strided_slice %660 {offsets = [0, 32], sizes = [6, 32], strides = [1, 1]} : vector<6x96xf32> to vector<6x32xf32>
    %671 = arith.addf %669, %670 : vector<6x32xf32>
    %672 = arith.negf %671 : vector<6x32xf32>
    %673 = math.exp %672 : vector<6x32xf32>
    %cst_299 = arith.constant 1.000000e+00 : f32
    %674 = vector.broadcast %cst_299 : f32 to vector<6x32xf32>
    %675 = arith.addf %674, %673 : vector<6x32xf32>
    %676 = arith.divf %674, %675 : vector<6x32xf32>
    %677 = vector.extract_strided_slice %658 {offsets = [0, 64], sizes = [6, 32], strides = [1, 1]} : vector<6x96xf32> to vector<6x32xf32>
    %678 = vector.extract_strided_slice %660 {offsets = [0, 64], sizes = [6, 32], strides = [1, 1]} : vector<6x96xf32> to vector<6x32xf32>
    %679 = arith.addf %678, %9 : vector<6x32xf32>
    %680 = arith.mulf %668, %679 : vector<6x32xf32>
    %681 = arith.addf %677, %680 : vector<6x32xf32>
    %682 = math.tanh %681 : vector<6x32xf32>
    %cst_300 = arith.constant 1.000000e+00 : f32
    %683 = vector.broadcast %cst_300 : f32 to vector<6x32xf32>
    %684 = arith.subf %683, %676 : vector<6x32xf32>
    %685 = arith.mulf %684, %682 : vector<6x32xf32>
    %686 = arith.mulf %676, %659 : vector<6x32xf32>
    %687 = arith.addf %685, %686 : vector<6x32xf32>
    %c0_301 = arith.constant 0 : index
    %c0_302 = arith.constant 0 : index
    %688 = vector.load %arg12[%c0_301, %c0_302] : memref<6x32xf32, #tpu.memory_space<vmem>>, vector<6x32xf32>
    tpu.vector_store %arg12[%c0_301, %c0_302], %687 {strides = array<i32>} : memref<6x32xf32, #tpu.memory_space<vmem>>, vector<6x32xf32>,
    %689 = arith.index_cast %655 : i32 to index
    %c0_303 = arith.constant 0 : index
    %c0_304 = arith.constant 0 : index
    %690 = vector.load %arg13[%689, %c0_303, %c0_304] : memref<8x6x32xf32, #tpu.memory_space<vmem>>, vector<1x6x32xf32>
    %691 = vector.shape_cast %690 : vector<1x6x32xf32> to vector<6x32xf32>
    %cst_305 = arith.constant dense<0.000000e+00> : vector<6x64xf32>
    %692 = tpu.matmul %691, %2, %cst_305 {dimension_numbers = #tpu.dot_dimension_numbers<[1], [0], [0], [1], [0, 0, 1, 1], [], []>} : vector<6x32xf32>, vector<32x64xf32>, vector<6x64xf32> -> vector<6x64xf32>
    %cst_306 = arith.constant dense<0.000000e+00> : vector<6x64xf32>
    %693 = tpu.matmul %687, %3, %cst_306 {dimension_numbers = #tpu.dot_dimension_numbers<[1], [0], [0], [1], [0, 0, 1, 1], [], []>} : vector<6x32xf32>, vector<32x64xf32>, vector<6x64xf32> -> vector<6x64xf32>
    %694 = arith.addf %692, %693 : vector<6x64xf32>
    %695 = arith.addf %694, %12 : vector<6x64xf32>
    %696 = math.tanh %695 : vector<6x64xf32>
    %697 = math.exp %696 : vector<6x64xf32>
    %c0_307 = arith.constant 0 : index
    %c0_308 = arith.constant 0 : index
    %698 = vector.load %arg14[%c0_307, %c0_308] : memref<6x64xf32, #tpu.memory_space<vmem>>, vector<6x64xf32>
    %699 = arith.addf %698, %697 : vector<6x64xf32>
    %c0_309 = arith.constant 0 : index
    %c0_310 = arith.constant 0 : index
    %700 = vector.load %arg14[%c0_309, %c0_310] : memref<6x64xf32, #tpu.memory_space<vmem>>, vector<6x64xf32>
    tpu.vector_store %arg14[%c0_309, %c0_310], %699 {strides = array<i32>} : memref<6x64xf32, #tpu.memory_space<vmem>>, vector<6x64xf32>,
    %c0_311 = arith.constant 0 : index
    %c0_312 = arith.constant 0 : index
    %701 = vector.load %arg15[%c0_311, %c0_312] : memref<6x32xf32, #tpu.memory_space<vmem>>, vector<6x32xf32>
    %702 = vector.extract_strided_slice %697 {offsets = [0, 0], sizes = [6, 32], strides = [1, 1]} : vector<6x64xf32> to vector<6x32xf32>
    %703 = arith.mulf %702, %691 : vector<6x32xf32>
    %704 = arith.addf %701, %703 : vector<6x32xf32>
    %c0_313 = arith.constant 0 : index
    %c0_314 = arith.constant 0 : index
    %705 = vector.load %arg15[%c0_313, %c0_314] : memref<6x32xf32, #tpu.memory_space<vmem>>, vector<6x32xf32>
    tpu.vector_store %arg15[%c0_313, %c0_314], %704 {strides = array<i32>} : memref<6x32xf32, #tpu.memory_space<vmem>>, vector<6x32xf32>,
    %c0_315 = arith.constant 0 : index
    %c0_316 = arith.constant 0 : index
    %706 = vector.load %arg16[%c0_315, %c0_316] : memref<6x32xf32, #tpu.memory_space<vmem>>, vector<6x32xf32>
    %707 = vector.extract_strided_slice %697 {offsets = [0, 32], sizes = [6, 32], strides = [1, 1]} : vector<6x64xf32> to vector<6x32xf32>
    %708 = arith.mulf %707, %687 : vector<6x32xf32>
    %709 = arith.addf %706, %708 : vector<6x32xf32>
    %c0_317 = arith.constant 0 : index
    %c0_318 = arith.constant 0 : index
    %710 = vector.load %arg16[%c0_317, %c0_318] : memref<6x32xf32, #tpu.memory_space<vmem>>, vector<6x32xf32>
    tpu.vector_store %arg16[%c0_317, %c0_318], %709 {strides = array<i32>} : memref<6x32xf32, #tpu.memory_space<vmem>>, vector<6x32xf32>,
    %c7_i32_319 = arith.constant 7 : i32
    %c7_i32_320 = arith.constant 7 : i32
    %711 = arith.subi %c7_i32_320, %c7_i32_319 : i32
    %712 = arith.index_cast %711 : i32 to index
    %c0_321 = arith.constant 0 : index
    %c0_322 = arith.constant 0 : index
    %713 = vector.load %arg2[%712, %c0_321, %c0_322] : memref<8x6x96xf32, #tpu.memory_space<vmem>>, vector<1x6x96xf32>
    %714 = vector.shape_cast %713 : vector<1x6x96xf32> to vector<6x96xf32>
    %c0_323 = arith.constant 0 : index
    %c0_324 = arith.constant 0 : index
    %715 = vector.load %arg12[%c0_323, %c0_324] : memref<6x32xf32, #tpu.memory_space<vmem>>, vector<6x32xf32>
    %cst_325 = arith.constant dense<0.000000e+00> : vector<6x96xf32>
    %716 = tpu.matmul %715, %1, %cst_325 {dimension_numbers = #tpu.dot_dimension_numbers<[1], [0], [0], [1], [0, 0, 1, 1], [], []>} : vector<6x32xf32>, vector<32x96xf32>, vector<6x96xf32> -> vector<6x96xf32>
    %717 = vector.extract_strided_slice %714 {offsets = [0, 0], sizes = [6, 32], strides = [1, 1]} : vector<6x96xf32> to vector<6x32xf32>
    %718 = vector.extract_strided_slice %716 {offsets = [0, 0], sizes = [6, 32], strides = [1, 1]} : vector<6x96xf32> to vector<6x32xf32>
    %719 = arith.addf %717, %718 : vector<6x32xf32>
    %720 = arith.negf %719 : vector<6x32xf32>
    %721 = math.exp %720 : vector<6x32xf32>
    %cst_326 = arith.constant 1.000000e+00 : f32
    %722 = vector.broadcast %cst_326 : f32 to vector<6x32xf32>
    %723 = arith.addf %722, %721 : vector<6x32xf32>
    %724 = arith.divf %722, %723 : vector<6x32xf32>
    %725 = vector.extract_strided_slice %714 {offsets = [0, 32], sizes = [6, 32], strides = [1, 1]} : vector<6x96xf32> to vector<6x32xf32>
    %726 = vector.extract_strided_slice %716 {offsets = [0, 32], sizes = [6, 32], strides = [1, 1]} : vector<6x96xf32> to vector<6x32xf32>
    %727 = arith.addf %725, %726 : vector<6x32xf32>
    %728 = arith.negf %727 : vector<6x32xf32>
    %729 = math.exp %728 : vector<6x32xf32>
    %cst_327 = arith.constant 1.000000e+00 : f32
    %730 = vector.broadcast %cst_327 : f32 to vector<6x32xf32>
    %731 = arith.addf %730, %729 : vector<6x32xf32>
    %732 = arith.divf %730, %731 : vector<6x32xf32>
    %733 = vector.extract_strided_slice %714 {offsets = [0, 64], sizes = [6, 32], strides = [1, 1]} : vector<6x96xf32> to vector<6x32xf32>
    %734 = vector.extract_strided_slice %716 {offsets = [0, 64], sizes = [6, 32], strides = [1, 1]} : vector<6x96xf32> to vector<6x32xf32>
    %735 = arith.addf %734, %9 : vector<6x32xf32>
    %736 = arith.mulf %724, %735 : vector<6x32xf32>
    %737 = arith.addf %733, %736 : vector<6x32xf32>
    %738 = math.tanh %737 : vector<6x32xf32>
    %cst_328 = arith.constant 1.000000e+00 : f32
    %739 = vector.broadcast %cst_328 : f32 to vector<6x32xf32>
    %740 = arith.subf %739, %732 : vector<6x32xf32>
    %741 = arith.mulf %740, %738 : vector<6x32xf32>
    %742 = arith.mulf %732, %715 : vector<6x32xf32>
    %743 = arith.addf %741, %742 : vector<6x32xf32>
    %c0_329 = arith.constant 0 : index
    %c0_330 = arith.constant 0 : index
    %744 = vector.load %arg12[%c0_329, %c0_330] : memref<6x32xf32, #tpu.memory_space<vmem>>, vector<6x32xf32>
    tpu.vector_store %arg12[%c0_329, %c0_330], %743 {strides = array<i32>} : memref<6x32xf32, #tpu.memory_space<vmem>>, vector<6x32xf32>,
    %745 = arith.index_cast %711 : i32 to index
    %c0_331 = arith.constant 0 : index
    %c0_332 = arith.constant 0 : index
    %746 = vector.load %arg13[%745, %c0_331, %c0_332] : memref<8x6x32xf32, #tpu.memory_space<vmem>>, vector<1x6x32xf32>
    %747 = vector.shape_cast %746 : vector<1x6x32xf32> to vector<6x32xf32>
    %cst_333 = arith.constant dense<0.000000e+00> : vector<6x64xf32>
    %748 = tpu.matmul %747, %2, %cst_333 {dimension_numbers = #tpu.dot_dimension_numbers<[1], [0], [0], [1], [0, 0, 1, 1], [], []>} : vector<6x32xf32>, vector<32x64xf32>, vector<6x64xf32> -> vector<6x64xf32>
    %cst_334 = arith.constant dense<0.000000e+00> : vector<6x64xf32>
    %749 = tpu.matmul %743, %3, %cst_334 {dimension_numbers = #tpu.dot_dimension_numbers<[1], [0], [0], [1], [0, 0, 1, 1], [], []>} : vector<6x32xf32>, vector<32x64xf32>, vector<6x64xf32> -> vector<6x64xf32>
    %750 = arith.addf %748, %749 : vector<6x64xf32>
    %751 = arith.addf %750, %12 : vector<6x64xf32>
    %752 = math.tanh %751 : vector<6x64xf32>
    %753 = math.exp %752 : vector<6x64xf32>
    %c0_335 = arith.constant 0 : index
    %c0_336 = arith.constant 0 : index
    %754 = vector.load %arg14[%c0_335, %c0_336] : memref<6x64xf32, #tpu.memory_space<vmem>>, vector<6x64xf32>
    %755 = arith.addf %754, %753 : vector<6x64xf32>
    %c0_337 = arith.constant 0 : index
    %c0_338 = arith.constant 0 : index
    %756 = vector.load %arg14[%c0_337, %c0_338] : memref<6x64xf32, #tpu.memory_space<vmem>>, vector<6x64xf32>
    tpu.vector_store %arg14[%c0_337, %c0_338], %755 {strides = array<i32>} : memref<6x64xf32, #tpu.memory_space<vmem>>, vector<6x64xf32>,
    %c0_339 = arith.constant 0 : index
    %c0_340 = arith.constant 0 : index
    %757 = vector.load %arg15[%c0_339, %c0_340] : memref<6x32xf32, #tpu.memory_space<vmem>>, vector<6x32xf32>
    %758 = vector.extract_strided_slice %753 {offsets = [0, 0], sizes = [6, 32], strides = [1, 1]} : vector<6x64xf32> to vector<6x32xf32>
    %759 = arith.mulf %758, %747 : vector<6x32xf32>
    %760 = arith.addf %757, %759 : vector<6x32xf32>
    %c0_341 = arith.constant 0 : index
    %c0_342 = arith.constant 0 : index
    %761 = vector.load %arg15[%c0_341, %c0_342] : memref<6x32xf32, #tpu.memory_space<vmem>>, vector<6x32xf32>
    tpu.vector_store %arg15[%c0_341, %c0_342], %760 {strides = array<i32>} : memref<6x32xf32, #tpu.memory_space<vmem>>, vector<6x32xf32>,
    %c0_343 = arith.constant 0 : index
    %c0_344 = arith.constant 0 : index
    %762 = vector.load %arg16[%c0_343, %c0_344] : memref<6x32xf32, #tpu.memory_space<vmem>>, vector<6x32xf32>
    %763 = vector.extract_strided_slice %753 {offsets = [0, 32], sizes = [6, 32], strides = [1, 1]} : vector<6x64xf32> to vector<6x32xf32>
    %764 = arith.mulf %763, %743 : vector<6x32xf32>
    %765 = arith.addf %762, %764 : vector<6x32xf32>
    %c0_345 = arith.constant 0 : index
    %c0_346 = arith.constant 0 : index
    %766 = vector.load %arg16[%c0_345, %c0_346] : memref<6x32xf32, #tpu.memory_space<vmem>>, vector<6x32xf32>
    tpu.vector_store %arg16[%c0_345, %c0_346], %765 {strides = array<i32>} : memref<6x32xf32, #tpu.memory_space<vmem>>, vector<6x32xf32>,
    %c8_i32_347 = arith.constant 8 : i32
    %c0_348 = arith.constant 0 : index
    %c0_349 = arith.constant 0 : index
    %767 = vector.load %arg14[%c0_348, %c0_349] : memref<6x64xf32, #tpu.memory_space<vmem>>, vector<6x64xf32>
    %768 = tpu.reciprocal %767 {approx = true} : vector<6x64xf32> -> vector<6x64xf32>
    %c0_350 = arith.constant 0 : index
    %c0_351 = arith.constant 0 : index
    %769 = vector.load %arg15[%c0_350, %c0_351] : memref<6x32xf32, #tpu.memory_space<vmem>>, vector<6x32xf32>
    %770 = vector.extract_strided_slice %768 {offsets = [0, 0], sizes = [6, 32], strides = [1, 1]} : vector<6x64xf32> to vector<6x32xf32>
    %771 = arith.mulf %769, %770 : vector<6x32xf32>
    %c0_352 = arith.constant 0 : index
    %c0_353 = arith.constant 0 : index
    %772 = vector.load %arg10[%c0_352, %c0_353] : memref<6x64xf32, #tpu.memory_space<vmem>>, vector<6x32xf32>
    tpu.vector_store %arg10[%c0_352, %c0_353], %771 {strides = array<i32>} : memref<6x64xf32, #tpu.memory_space<vmem>>, vector<6x32xf32>,
    %c0_354 = arith.constant 0 : index
    %c0_355 = arith.constant 0 : index
    %773 = vector.load %arg16[%c0_354, %c0_355] : memref<6x32xf32, #tpu.memory_space<vmem>>, vector<6x32xf32>
    %774 = vector.extract_strided_slice %768 {offsets = [0, 32], sizes = [6, 32], strides = [1, 1]} : vector<6x64xf32> to vector<6x32xf32>
    %775 = arith.mulf %773, %774 : vector<6x32xf32>
    %c0_356 = arith.constant 0 : index
    %c32 = arith.constant 32 : index
    %776 = vector.load %arg10[%c0_356, %c32] : memref<6x64xf32, #tpu.memory_space<vmem>>, vector<6x32xf32>
    tpu.vector_store %arg10[%c0_356, %c32], %775 {strides = array<i32>} : memref<6x64xf32, #tpu.memory_space<vmem>>, vector<6x32xf32>,
    return
  }
  func.func @transform_0(%arg0: i32) -> (i32, i32, i32) {
    %c0_i32 = arith.constant 0 : i32
    %c0_i32_0 = arith.constant 0 : i32
    %c0_i32_1 = arith.constant 0 : i32
    return %c0_i32, %arg0, %c0_i32_0 : i32, i32, i32
  }
  func.func @transform_1(%arg0: i32) -> (i32, i32, i32) {
    %c0_i32 = arith.constant 0 : i32
    %c0_i32_0 = arith.constant 0 : i32
    %c0_i32_1 = arith.constant 0 : i32
    return %c0_i32, %arg0, %c0_i32_0 : i32, i32, i32
  }
  func.func @transform_2(%arg0: i32) -> (i32, i32) {
    %c0_i32 = arith.constant 0 : i32
    %c0_i32_0 = arith.constant 0 : i32
    %c0_i32_1 = arith.constant 0 : i32
    return %c0_i32, %c0_i32_0 : i32, i32
  }
  func.func @transform_3(%arg0: i32) -> (i32, i32) {
    %c0_i32 = arith.constant 0 : i32
    %c0_i32_0 = arith.constant 0 : i32
    %c0_i32_1 = arith.constant 0 : i32
    return %c0_i32, %c0_i32_0 : i32, i32
  }
  func.func @transform_4(%arg0: i32) -> (i32, i32) {
    %c0_i32 = arith.constant 0 : i32
    %c0_i32_0 = arith.constant 0 : i32
    %c0_i32_1 = arith.constant 0 : i32
    return %c0_i32, %c0_i32_0 : i32, i32
  }
  func.func @transform_5(%arg0: i32) -> (i32, i32) {
    %c0_i32 = arith.constant 0 : i32
    %c0_i32_0 = arith.constant 0 : i32
    %c0_i32_1 = arith.constant 0 : i32
    return %c0_i32, %c0_i32_0 : i32, i32
  }
  func.func @transform_6(%arg0: i32) -> (i32, i32) {
    %c0_i32 = arith.constant 0 : i32
    %c0_i32_0 = arith.constant 0 : i32
    %c0_i32_1 = arith.constant 0 : i32
    return %c0_i32, %c0_i32_0 : i32, i32
  }
  func.func @transform_7(%arg0: i32) -> (i32, i32) {
    %c0_i32 = arith.constant 0 : i32
    %c0_i32_0 = arith.constant 0 : i32
    %c0_i32_1 = arith.constant 0 : i32
    return %c0_i32, %c0_i32_0 : i32, i32
  }
  func.func @transform_8(%arg0: i32) -> (i32, i32) {
    %c0_i32 = arith.constant 0 : i32
    %c0_i32_0 = arith.constant 0 : i32
    %c0_i32_1 = arith.constant 0 : i32
    return %c0_i32, %c0_i32_0 : i32, i32
  }
  func.func @transform_9(%arg0: i32) -> (i32, i32) {
    %c0_i32 = arith.constant 0 : i32
    %c0_i32_0 = arith.constant 0 : i32
    return %arg0, %c0_i32 : i32, i32
  }
}

module attributes {stable_mosaic.version = 11 : i64} {
  func.func @_bigru_attn_kernel(%arg0: i32, %arg1: memref<3x2x96xf32, #tpu.memory_space<vmem>>, %arg2: memref<3x2x96xf32, #tpu.memory_space<vmem>>, %arg3: memref<32x96xf32, #tpu.memory_space<vmem>>, %arg4: memref<32x96xf32, #tpu.memory_space<vmem>>, %arg5: memref<1x32xf32, #tpu.memory_space<vmem>>, %arg6: memref<1x32xf32, #tpu.memory_space<vmem>>, %arg7: memref<32x64xf32, #tpu.memory_space<vmem>>, %arg8: memref<32x64xf32, #tpu.memory_space<vmem>>, %arg9: memref<1x64xf32, #tpu.memory_space<vmem>>, %arg10: memref<2x64xf32, #tpu.memory_space<vmem>>, %arg11: memref<2x32xf32, #tpu.memory_space<vmem>>, %arg12: memref<2x32xf32, #tpu.memory_space<vmem>>, %arg13: memref<3x2x32xf32, #tpu.memory_space<vmem>>, %arg14: memref<2x64xf32, #tpu.memory_space<vmem>>, %arg15: memref<2x32xf32, #tpu.memory_space<vmem>>, %arg16: memref<2x32xf32, #tpu.memory_space<vmem>>) attributes {dimension_semantics = [#tpu.dimension_semantics<parallel>], iteration_bounds = array<i64: 1>, scalar_prefetch = 0 : i64, scratch_operands = 6 : i64, tpu.core_type = #tpu.core_type<tc>, window_params = [{transform_indices = @transform_0, window_bounds = array<i64: 3, 2, 96>}, {transform_indices = @transform_1, window_bounds = array<i64: 3, 2, 96>}, {pipeline_mode = #tpu.pipeline_mode<synchronous>, transform_indices = @transform_2, window_bounds = array<i64: 32, 96>}, {pipeline_mode = #tpu.pipeline_mode<synchronous>, transform_indices = @transform_3, window_bounds = array<i64: 32, 96>}, {pipeline_mode = #tpu.pipeline_mode<synchronous>, transform_indices = @transform_4, window_bounds = array<i64: 1, 32>}, {pipeline_mode = #tpu.pipeline_mode<synchronous>, transform_indices = @transform_5, window_bounds = array<i64: 1, 32>}, {pipeline_mode = #tpu.pipeline_mode<synchronous>, transform_indices = @transform_6, window_bounds = array<i64: 32, 64>}, {pipeline_mode = #tpu.pipeline_mode<synchronous>, transform_indices = @transform_7, window_bounds = array<i64: 32, 64>}, {pipeline_mode = #tpu.pipeline_mode<synchronous>, transform_indices = @transform_8, window_bounds = array<i64: 1, 64>}, {transform_indices = @transform_9, window_bounds = array<i64: 2, 64>}]} {
    %c0 = arith.constant 0 : index
    %c0_0 = arith.constant 0 : index
    %0 = vector.load %arg3[%c0, %c0_0] : memref<32x96xf32, #tpu.memory_space<vmem>>, vector<32x96xf32>
    %c0_1 = arith.constant 0 : index
    %c0_2 = arith.constant 0 : index
    %1 = vector.load %arg4[%c0_1, %c0_2] : memref<32x96xf32, #tpu.memory_space<vmem>>, vector<32x96xf32>
    %c0_3 = arith.constant 0 : index
    %c0_4 = arith.constant 0 : index
    %2 = vector.load %arg7[%c0_3, %c0_4] : memref<32x64xf32, #tpu.memory_space<vmem>>, vector<32x64xf32>
    %c0_5 = arith.constant 0 : index
    %c0_6 = arith.constant 0 : index
    %3 = vector.load %arg8[%c0_5, %c0_6] : memref<32x64xf32, #tpu.memory_space<vmem>>, vector<32x64xf32>
    %c0_7 = arith.constant 0 : index
    %c0_8 = arith.constant 0 : index
    %4 = vector.load %arg5[%c0_7, %c0_8] : memref<1x32xf32, #tpu.memory_space<vmem>>, vector<1x32xf32>
    %5 = vector.shape_cast %4 : vector<1x32xf32> to vector<1x32xf32>
    %6 = vector.broadcast %5 : vector<1x32xf32> to vector<2x32xf32>
    %c0_9 = arith.constant 0 : index
    %c0_10 = arith.constant 0 : index
    %7 = vector.load %arg6[%c0_9, %c0_10] : memref<1x32xf32, #tpu.memory_space<vmem>>, vector<1x32xf32>
    %8 = vector.shape_cast %7 : vector<1x32xf32> to vector<1x32xf32>
    %9 = vector.broadcast %8 : vector<1x32xf32> to vector<2x32xf32>
    %c0_11 = arith.constant 0 : index
    %c0_12 = arith.constant 0 : index
    %10 = vector.load %arg9[%c0_11, %c0_12] : memref<1x64xf32, #tpu.memory_space<vmem>>, vector<1x64xf32>
    %11 = vector.shape_cast %10 : vector<1x64xf32> to vector<1x64xf32>
    %12 = vector.broadcast %11 : vector<1x64xf32> to vector<2x64xf32>
    %cst = arith.constant 0.000000e+00 : f32
    %13 = vector.broadcast %cst : f32 to vector<2x32xf32>
    %c0_13 = arith.constant 0 : index
    %c0_14 = arith.constant 0 : index
    %14 = vector.load %arg11[%c0_13, %c0_14] : memref<2x32xf32, #tpu.memory_space<vmem>>, vector<2x32xf32>
    tpu.vector_store %arg11[%c0_13, %c0_14], %13 {strides = array<i32>} : memref<2x32xf32, #tpu.memory_space<vmem>>, vector<2x32xf32>,
    %cst_15 = arith.constant 0.000000e+00 : f32
    %15 = vector.broadcast %cst_15 : f32 to vector<2x32xf32>
    %c0_16 = arith.constant 0 : index
    %c0_17 = arith.constant 0 : index
    %16 = vector.load %arg12[%c0_16, %c0_17] : memref<2x32xf32, #tpu.memory_space<vmem>>, vector<2x32xf32>
    tpu.vector_store %arg12[%c0_16, %c0_17], %15 {strides = array<i32>} : memref<2x32xf32, #tpu.memory_space<vmem>>, vector<2x32xf32>,
    %cst_18 = arith.constant 0.000000e+00 : f32
    %17 = vector.broadcast %cst_18 : f32 to vector<2x64xf32>
    %c0_19 = arith.constant 0 : index
    %c0_20 = arith.constant 0 : index
    %18 = vector.load %arg14[%c0_19, %c0_20] : memref<2x64xf32, #tpu.memory_space<vmem>>, vector<2x64xf32>
    tpu.vector_store %arg14[%c0_19, %c0_20], %17 {strides = array<i32>} : memref<2x64xf32, #tpu.memory_space<vmem>>, vector<2x64xf32>,
    %cst_21 = arith.constant 0.000000e+00 : f32
    %19 = vector.broadcast %cst_21 : f32 to vector<2x32xf32>
    %c0_22 = arith.constant 0 : index
    %c0_23 = arith.constant 0 : index
    %20 = vector.load %arg15[%c0_22, %c0_23] : memref<2x32xf32, #tpu.memory_space<vmem>>, vector<2x32xf32>
    tpu.vector_store %arg15[%c0_22, %c0_23], %19 {strides = array<i32>} : memref<2x32xf32, #tpu.memory_space<vmem>>, vector<2x32xf32>,
    %cst_24 = arith.constant 0.000000e+00 : f32
    %21 = vector.broadcast %cst_24 : f32 to vector<2x32xf32>
    %c0_25 = arith.constant 0 : index
    %c0_26 = arith.constant 0 : index
    %22 = vector.load %arg16[%c0_25, %c0_26] : memref<2x32xf32, #tpu.memory_space<vmem>>, vector<2x32xf32>
    tpu.vector_store %arg16[%c0_25, %c0_26], %21 {strides = array<i32>} : memref<2x32xf32, #tpu.memory_space<vmem>>, vector<2x32xf32>,
    %c0_i32 = arith.constant 0 : i32
    %23 = arith.index_cast %c0_i32 : i32 to index
    %c0_27 = arith.constant 0 : index
    %c0_28 = arith.constant 0 : index
    %24 = vector.load %arg1[%23, %c0_27, %c0_28] : memref<3x2x96xf32, #tpu.memory_space<vmem>>, vector<1x2x96xf32>
    %25 = vector.shape_cast %24 : vector<1x2x96xf32> to vector<2x96xf32>
    %c0_29 = arith.constant 0 : index
    %c0_30 = arith.constant 0 : index
    %26 = vector.load %arg11[%c0_29, %c0_30] : memref<2x32xf32, #tpu.memory_space<vmem>>, vector<2x32xf32>
    %cst_31 = arith.constant dense<0.000000e+00> : vector<2x96xf32>
    %27 = tpu.matmul %26, %0, %cst_31 {dimension_numbers = #tpu.dot_dimension_numbers<[1], [0], [0], [1], [0, 0, 1, 1], [], []>} : vector<2x32xf32>, vector<32x96xf32>, vector<2x96xf32> -> vector<2x96xf32>
    %28 = vector.extract_strided_slice %25 {offsets = [0, 0], sizes = [2, 32], strides = [1, 1]} : vector<2x96xf32> to vector<2x32xf32>
    %29 = vector.extract_strided_slice %27 {offsets = [0, 0], sizes = [2, 32], strides = [1, 1]} : vector<2x96xf32> to vector<2x32xf32>
    %30 = arith.addf %28, %29 : vector<2x32xf32>
    %31 = arith.negf %30 : vector<2x32xf32>
    %32 = math.exp %31 : vector<2x32xf32>
    %cst_32 = arith.constant 1.000000e+00 : f32
    %33 = vector.broadcast %cst_32 : f32 to vector<2x32xf32>
    %34 = arith.addf %33, %32 : vector<2x32xf32>
    %35 = arith.divf %33, %34 : vector<2x32xf32>
    %36 = vector.extract_strided_slice %25 {offsets = [0, 32], sizes = [2, 32], strides = [1, 1]} : vector<2x96xf32> to vector<2x32xf32>
    %37 = vector.extract_strided_slice %27 {offsets = [0, 32], sizes = [2, 32], strides = [1, 1]} : vector<2x96xf32> to vector<2x32xf32>
    %38 = arith.addf %36, %37 : vector<2x32xf32>
    %39 = arith.negf %38 : vector<2x32xf32>
    %40 = math.exp %39 : vector<2x32xf32>
    %cst_33 = arith.constant 1.000000e+00 : f32
    %41 = vector.broadcast %cst_33 : f32 to vector<2x32xf32>
    %42 = arith.addf %41, %40 : vector<2x32xf32>
    %43 = arith.divf %41, %42 : vector<2x32xf32>
    %44 = vector.extract_strided_slice %25 {offsets = [0, 64], sizes = [2, 32], strides = [1, 1]} : vector<2x96xf32> to vector<2x32xf32>
    %45 = vector.extract_strided_slice %27 {offsets = [0, 64], sizes = [2, 32], strides = [1, 1]} : vector<2x96xf32> to vector<2x32xf32>
    %46 = arith.addf %45, %6 : vector<2x32xf32>
    %47 = arith.mulf %35, %46 : vector<2x32xf32>
    %48 = arith.addf %44, %47 : vector<2x32xf32>
    %49 = math.tanh %48 : vector<2x32xf32>
    %cst_34 = arith.constant 1.000000e+00 : f32
    %50 = vector.broadcast %cst_34 : f32 to vector<2x32xf32>
    %51 = arith.subf %50, %43 : vector<2x32xf32>
    %52 = arith.mulf %51, %49 : vector<2x32xf32>
    %53 = arith.mulf %43, %26 : vector<2x32xf32>
    %54 = arith.addf %52, %53 : vector<2x32xf32>
    %c0_35 = arith.constant 0 : index
    %c0_36 = arith.constant 0 : index
    %55 = vector.load %arg11[%c0_35, %c0_36] : memref<2x32xf32, #tpu.memory_space<vmem>>, vector<2x32xf32>
    tpu.vector_store %arg11[%c0_35, %c0_36], %54 {strides = array<i32>} : memref<2x32xf32, #tpu.memory_space<vmem>>, vector<2x32xf32>,
    %56 = arith.index_cast %c0_i32 : i32 to index
    %c0_37 = arith.constant 0 : index
    %c0_38 = arith.constant 0 : index
    %57 = vector.load %arg13[%56, %c0_37, %c0_38] : memref<3x2x32xf32, #tpu.memory_space<vmem>>, vector<1x2x32xf32>
    %58 = vector.shape_cast %57 : vector<1x2x32xf32> to vector<2x32xf32>
    %59 = vector.shape_cast %54 : vector<2x32xf32> to vector<1x2x32xf32>
    tpu.vector_store %arg13[%56, %c0_37, %c0_38], %59 {strides = array<i32>} : memref<3x2x32xf32, #tpu.memory_space<vmem>>, vector<1x2x32xf32>,
    %c1_i32 = arith.constant 1 : i32
    %60 = arith.index_cast %c1_i32 : i32 to index
    %c0_39 = arith.constant 0 : index
    %c0_40 = arith.constant 0 : index
    %61 = vector.load %arg1[%60, %c0_39, %c0_40] : memref<3x2x96xf32, #tpu.memory_space<vmem>>, vector<1x2x96xf32>
    %62 = vector.shape_cast %61 : vector<1x2x96xf32> to vector<2x96xf32>
    %c0_41 = arith.constant 0 : index
    %c0_42 = arith.constant 0 : index
    %63 = vector.load %arg11[%c0_41, %c0_42] : memref<2x32xf32, #tpu.memory_space<vmem>>, vector<2x32xf32>
    %cst_43 = arith.constant dense<0.000000e+00> : vector<2x96xf32>
    %64 = tpu.matmul %63, %0, %cst_43 {dimension_numbers = #tpu.dot_dimension_numbers<[1], [0], [0], [1], [0, 0, 1, 1], [], []>} : vector<2x32xf32>, vector<32x96xf32>, vector<2x96xf32> -> vector<2x96xf32>
    %65 = vector.extract_strided_slice %62 {offsets = [0, 0], sizes = [2, 32], strides = [1, 1]} : vector<2x96xf32> to vector<2x32xf32>
    %66 = vector.extract_strided_slice %64 {offsets = [0, 0], sizes = [2, 32], strides = [1, 1]} : vector<2x96xf32> to vector<2x32xf32>
    %67 = arith.addf %65, %66 : vector<2x32xf32>
    %68 = arith.negf %67 : vector<2x32xf32>
    %69 = math.exp %68 : vector<2x32xf32>
    %cst_44 = arith.constant 1.000000e+00 : f32
    %70 = vector.broadcast %cst_44 : f32 to vector<2x32xf32>
    %71 = arith.addf %70, %69 : vector<2x32xf32>
    %72 = arith.divf %70, %71 : vector<2x32xf32>
    %73 = vector.extract_strided_slice %62 {offsets = [0, 32], sizes = [2, 32], strides = [1, 1]} : vector<2x96xf32> to vector<2x32xf32>
    %74 = vector.extract_strided_slice %64 {offsets = [0, 32], sizes = [2, 32], strides = [1, 1]} : vector<2x96xf32> to vector<2x32xf32>
    %75 = arith.addf %73, %74 : vector<2x32xf32>
    %76 = arith.negf %75 : vector<2x32xf32>
    %77 = math.exp %76 : vector<2x32xf32>
    %cst_45 = arith.constant 1.000000e+00 : f32
    %78 = vector.broadcast %cst_45 : f32 to vector<2x32xf32>
    %79 = arith.addf %78, %77 : vector<2x32xf32>
    %80 = arith.divf %78, %79 : vector<2x32xf32>
    %81 = vector.extract_strided_slice %62 {offsets = [0, 64], sizes = [2, 32], strides = [1, 1]} : vector<2x96xf32> to vector<2x32xf32>
    %82 = vector.extract_strided_slice %64 {offsets = [0, 64], sizes = [2, 32], strides = [1, 1]} : vector<2x96xf32> to vector<2x32xf32>
    %83 = arith.addf %82, %6 : vector<2x32xf32>
    %84 = arith.mulf %72, %83 : vector<2x32xf32>
    %85 = arith.addf %81, %84 : vector<2x32xf32>
    %86 = math.tanh %85 : vector<2x32xf32>
    %cst_46 = arith.constant 1.000000e+00 : f32
    %87 = vector.broadcast %cst_46 : f32 to vector<2x32xf32>
    %88 = arith.subf %87, %80 : vector<2x32xf32>
    %89 = arith.mulf %88, %86 : vector<2x32xf32>
    %90 = arith.mulf %80, %63 : vector<2x32xf32>
    %91 = arith.addf %89, %90 : vector<2x32xf32>
    %c0_47 = arith.constant 0 : index
    %c0_48 = arith.constant 0 : index
    %92 = vector.load %arg11[%c0_47, %c0_48] : memref<2x32xf32, #tpu.memory_space<vmem>>, vector<2x32xf32>
    tpu.vector_store %arg11[%c0_47, %c0_48], %91 {strides = array<i32>} : memref<2x32xf32, #tpu.memory_space<vmem>>, vector<2x32xf32>,
    %93 = arith.index_cast %c1_i32 : i32 to index
    %c0_49 = arith.constant 0 : index
    %c0_50 = arith.constant 0 : index
    %94 = vector.load %arg13[%93, %c0_49, %c0_50] : memref<3x2x32xf32, #tpu.memory_space<vmem>>, vector<1x2x32xf32>
    %95 = vector.shape_cast %94 : vector<1x2x32xf32> to vector<2x32xf32>
    %96 = vector.shape_cast %91 : vector<2x32xf32> to vector<1x2x32xf32>
    tpu.vector_store %arg13[%93, %c0_49, %c0_50], %96 {strides = array<i32>} : memref<3x2x32xf32, #tpu.memory_space<vmem>>, vector<1x2x32xf32>,
    %c2_i32 = arith.constant 2 : i32
    %97 = arith.index_cast %c2_i32 : i32 to index
    %c0_51 = arith.constant 0 : index
    %c0_52 = arith.constant 0 : index
    %98 = vector.load %arg1[%97, %c0_51, %c0_52] : memref<3x2x96xf32, #tpu.memory_space<vmem>>, vector<1x2x96xf32>
    %99 = vector.shape_cast %98 : vector<1x2x96xf32> to vector<2x96xf32>
    %c0_53 = arith.constant 0 : index
    %c0_54 = arith.constant 0 : index
    %100 = vector.load %arg11[%c0_53, %c0_54] : memref<2x32xf32, #tpu.memory_space<vmem>>, vector<2x32xf32>
    %cst_55 = arith.constant dense<0.000000e+00> : vector<2x96xf32>
    %101 = tpu.matmul %100, %0, %cst_55 {dimension_numbers = #tpu.dot_dimension_numbers<[1], [0], [0], [1], [0, 0, 1, 1], [], []>} : vector<2x32xf32>, vector<32x96xf32>, vector<2x96xf32> -> vector<2x96xf32>
    %102 = vector.extract_strided_slice %99 {offsets = [0, 0], sizes = [2, 32], strides = [1, 1]} : vector<2x96xf32> to vector<2x32xf32>
    %103 = vector.extract_strided_slice %101 {offsets = [0, 0], sizes = [2, 32], strides = [1, 1]} : vector<2x96xf32> to vector<2x32xf32>
    %104 = arith.addf %102, %103 : vector<2x32xf32>
    %105 = arith.negf %104 : vector<2x32xf32>
    %106 = math.exp %105 : vector<2x32xf32>
    %cst_56 = arith.constant 1.000000e+00 : f32
    %107 = vector.broadcast %cst_56 : f32 to vector<2x32xf32>
    %108 = arith.addf %107, %106 : vector<2x32xf32>
    %109 = arith.divf %107, %108 : vector<2x32xf32>
    %110 = vector.extract_strided_slice %99 {offsets = [0, 32], sizes = [2, 32], strides = [1, 1]} : vector<2x96xf32> to vector<2x32xf32>
    %111 = vector.extract_strided_slice %101 {offsets = [0, 32], sizes = [2, 32], strides = [1, 1]} : vector<2x96xf32> to vector<2x32xf32>
    %112 = arith.addf %110, %111 : vector<2x32xf32>
    %113 = arith.negf %112 : vector<2x32xf32>
    %114 = math.exp %113 : vector<2x32xf32>
    %cst_57 = arith.constant 1.000000e+00 : f32
    %115 = vector.broadcast %cst_57 : f32 to vector<2x32xf32>
    %116 = arith.addf %115, %114 : vector<2x32xf32>
    %117 = arith.divf %115, %116 : vector<2x32xf32>
    %118 = vector.extract_strided_slice %99 {offsets = [0, 64], sizes = [2, 32], strides = [1, 1]} : vector<2x96xf32> to vector<2x32xf32>
    %119 = vector.extract_strided_slice %101 {offsets = [0, 64], sizes = [2, 32], strides = [1, 1]} : vector<2x96xf32> to vector<2x32xf32>
    %120 = arith.addf %119, %6 : vector<2x32xf32>
    %121 = arith.mulf %109, %120 : vector<2x32xf32>
    %122 = arith.addf %118, %121 : vector<2x32xf32>
    %123 = math.tanh %122 : vector<2x32xf32>
    %cst_58 = arith.constant 1.000000e+00 : f32
    %124 = vector.broadcast %cst_58 : f32 to vector<2x32xf32>
    %125 = arith.subf %124, %117 : vector<2x32xf32>
    %126 = arith.mulf %125, %123 : vector<2x32xf32>
    %127 = arith.mulf %117, %100 : vector<2x32xf32>
    %128 = arith.addf %126, %127 : vector<2x32xf32>
    %c0_59 = arith.constant 0 : index
    %c0_60 = arith.constant 0 : index
    %129 = vector.load %arg11[%c0_59, %c0_60] : memref<2x32xf32, #tpu.memory_space<vmem>>, vector<2x32xf32>
    tpu.vector_store %arg11[%c0_59, %c0_60], %128 {strides = array<i32>} : memref<2x32xf32, #tpu.memory_space<vmem>>, vector<2x32xf32>,
    %130 = arith.index_cast %c2_i32 : i32 to index
    %c0_61 = arith.constant 0 : index
    %c0_62 = arith.constant 0 : index
    %131 = vector.load %arg13[%130, %c0_61, %c0_62] : memref<3x2x32xf32, #tpu.memory_space<vmem>>, vector<1x2x32xf32>
    %132 = vector.shape_cast %131 : vector<1x2x32xf32> to vector<2x32xf32>
    %133 = vector.shape_cast %128 : vector<2x32xf32> to vector<1x2x32xf32>
    tpu.vector_store %arg13[%130, %c0_61, %c0_62], %133 {strides = array<i32>} : memref<3x2x32xf32, #tpu.memory_space<vmem>>, vector<1x2x32xf32>,
    %c3_i32 = arith.constant 3 : i32
    %c0_i32_63 = arith.constant 0 : i32
    %c2_i32_64 = arith.constant 2 : i32
    %134 = arith.subi %c2_i32_64, %c0_i32_63 : i32
    %135 = arith.index_cast %134 : i32 to index
    %c0_65 = arith.constant 0 : index
    %c0_66 = arith.constant 0 : index
    %136 = vector.load %arg2[%135, %c0_65, %c0_66] : memref<3x2x96xf32, #tpu.memory_space<vmem>>, vector<1x2x96xf32>
    %137 = vector.shape_cast %136 : vector<1x2x96xf32> to vector<2x96xf32>
    %c0_67 = arith.constant 0 : index
    %c0_68 = arith.constant 0 : index
    %138 = vector.load %arg12[%c0_67, %c0_68] : memref<2x32xf32, #tpu.memory_space<vmem>>, vector<2x32xf32>
    %cst_69 = arith.constant dense<0.000000e+00> : vector<2x96xf32>
    %139 = tpu.matmul %138, %1, %cst_69 {dimension_numbers = #tpu.dot_dimension_numbers<[1], [0], [0], [1], [0, 0, 1, 1], [], []>} : vector<2x32xf32>, vector<32x96xf32>, vector<2x96xf32> -> vector<2x96xf32>
    %140 = vector.extract_strided_slice %137 {offsets = [0, 0], sizes = [2, 32], strides = [1, 1]} : vector<2x96xf32> to vector<2x32xf32>
    %141 = vector.extract_strided_slice %139 {offsets = [0, 0], sizes = [2, 32], strides = [1, 1]} : vector<2x96xf32> to vector<2x32xf32>
    %142 = arith.addf %140, %141 : vector<2x32xf32>
    %143 = arith.negf %142 : vector<2x32xf32>
    %144 = math.exp %143 : vector<2x32xf32>
    %cst_70 = arith.constant 1.000000e+00 : f32
    %145 = vector.broadcast %cst_70 : f32 to vector<2x32xf32>
    %146 = arith.addf %145, %144 : vector<2x32xf32>
    %147 = arith.divf %145, %146 : vector<2x32xf32>
    %148 = vector.extract_strided_slice %137 {offsets = [0, 32], sizes = [2, 32], strides = [1, 1]} : vector<2x96xf32> to vector<2x32xf32>
    %149 = vector.extract_strided_slice %139 {offsets = [0, 32], sizes = [2, 32], strides = [1, 1]} : vector<2x96xf32> to vector<2x32xf32>
    %150 = arith.addf %148, %149 : vector<2x32xf32>
    %151 = arith.negf %150 : vector<2x32xf32>
    %152 = math.exp %151 : vector<2x32xf32>
    %cst_71 = arith.constant 1.000000e+00 : f32
    %153 = vector.broadcast %cst_71 : f32 to vector<2x32xf32>
    %154 = arith.addf %153, %152 : vector<2x32xf32>
    %155 = arith.divf %153, %154 : vector<2x32xf32>
    %156 = vector.extract_strided_slice %137 {offsets = [0, 64], sizes = [2, 32], strides = [1, 1]} : vector<2x96xf32> to vector<2x32xf32>
    %157 = vector.extract_strided_slice %139 {offsets = [0, 64], sizes = [2, 32], strides = [1, 1]} : vector<2x96xf32> to vector<2x32xf32>
    %158 = arith.addf %157, %9 : vector<2x32xf32>
    %159 = arith.mulf %147, %158 : vector<2x32xf32>
    %160 = arith.addf %156, %159 : vector<2x32xf32>
    %161 = math.tanh %160 : vector<2x32xf32>
    %cst_72 = arith.constant 1.000000e+00 : f32
    %162 = vector.broadcast %cst_72 : f32 to vector<2x32xf32>
    %163 = arith.subf %162, %155 : vector<2x32xf32>
    %164 = arith.mulf %163, %161 : vector<2x32xf32>
    %165 = arith.mulf %155, %138 : vector<2x32xf32>
    %166 = arith.addf %164, %165 : vector<2x32xf32>
    %c0_73 = arith.constant 0 : index
    %c0_74 = arith.constant 0 : index
    %167 = vector.load %arg12[%c0_73, %c0_74] : memref<2x32xf32, #tpu.memory_space<vmem>>, vector<2x32xf32>
    tpu.vector_store %arg12[%c0_73, %c0_74], %166 {strides = array<i32>} : memref<2x32xf32, #tpu.memory_space<vmem>>, vector<2x32xf32>,
    %168 = arith.index_cast %134 : i32 to index
    %c0_75 = arith.constant 0 : index
    %c0_76 = arith.constant 0 : index
    %169 = vector.load %arg13[%168, %c0_75, %c0_76] : memref<3x2x32xf32, #tpu.memory_space<vmem>>, vector<1x2x32xf32>
    %170 = vector.shape_cast %169 : vector<1x2x32xf32> to vector<2x32xf32>
    %cst_77 = arith.constant dense<0.000000e+00> : vector<2x64xf32>
    %171 = tpu.matmul %170, %2, %cst_77 {dimension_numbers = #tpu.dot_dimension_numbers<[1], [0], [0], [1], [0, 0, 1, 1], [], []>} : vector<2x32xf32>, vector<32x64xf32>, vector<2x64xf32> -> vector<2x64xf32>
    %cst_78 = arith.constant dense<0.000000e+00> : vector<2x64xf32>
    %172 = tpu.matmul %166, %3, %cst_78 {dimension_numbers = #tpu.dot_dimension_numbers<[1], [0], [0], [1], [0, 0, 1, 1], [], []>} : vector<2x32xf32>, vector<32x64xf32>, vector<2x64xf32> -> vector<2x64xf32>
    %173 = arith.addf %171, %172 : vector<2x64xf32>
    %174 = arith.addf %173, %12 : vector<2x64xf32>
    %175 = math.tanh %174 : vector<2x64xf32>
    %176 = math.exp %175 : vector<2x64xf32>
    %c0_79 = arith.constant 0 : index
    %c0_80 = arith.constant 0 : index
    %177 = vector.load %arg14[%c0_79, %c0_80] : memref<2x64xf32, #tpu.memory_space<vmem>>, vector<2x64xf32>
    %178 = arith.addf %177, %176 : vector<2x64xf32>
    %c0_81 = arith.constant 0 : index
    %c0_82 = arith.constant 0 : index
    %179 = vector.load %arg14[%c0_81, %c0_82] : memref<2x64xf32, #tpu.memory_space<vmem>>, vector<2x64xf32>
    tpu.vector_store %arg14[%c0_81, %c0_82], %178 {strides = array<i32>} : memref<2x64xf32, #tpu.memory_space<vmem>>, vector<2x64xf32>,
    %c0_83 = arith.constant 0 : index
    %c0_84 = arith.constant 0 : index
    %180 = vector.load %arg15[%c0_83, %c0_84] : memref<2x32xf32, #tpu.memory_space<vmem>>, vector<2x32xf32>
    %181 = vector.extract_strided_slice %176 {offsets = [0, 0], sizes = [2, 32], strides = [1, 1]} : vector<2x64xf32> to vector<2x32xf32>
    %182 = arith.mulf %181, %170 : vector<2x32xf32>
    %183 = arith.addf %180, %182 : vector<2x32xf32>
    %c0_85 = arith.constant 0 : index
    %c0_86 = arith.constant 0 : index
    %184 = vector.load %arg15[%c0_85, %c0_86] : memref<2x32xf32, #tpu.memory_space<vmem>>, vector<2x32xf32>
    tpu.vector_store %arg15[%c0_85, %c0_86], %183 {strides = array<i32>} : memref<2x32xf32, #tpu.memory_space<vmem>>, vector<2x32xf32>,
    %c0_87 = arith.constant 0 : index
    %c0_88 = arith.constant 0 : index
    %185 = vector.load %arg16[%c0_87, %c0_88] : memref<2x32xf32, #tpu.memory_space<vmem>>, vector<2x32xf32>
    %186 = vector.extract_strided_slice %176 {offsets = [0, 32], sizes = [2, 32], strides = [1, 1]} : vector<2x64xf32> to vector<2x32xf32>
    %187 = arith.mulf %186, %166 : vector<2x32xf32>
    %188 = arith.addf %185, %187 : vector<2x32xf32>
    %c0_89 = arith.constant 0 : index
    %c0_90 = arith.constant 0 : index
    %189 = vector.load %arg16[%c0_89, %c0_90] : memref<2x32xf32, #tpu.memory_space<vmem>>, vector<2x32xf32>
    tpu.vector_store %arg16[%c0_89, %c0_90], %188 {strides = array<i32>} : memref<2x32xf32, #tpu.memory_space<vmem>>, vector<2x32xf32>,
    %c1_i32_91 = arith.constant 1 : i32
    %c2_i32_92 = arith.constant 2 : i32
    %190 = arith.subi %c2_i32_92, %c1_i32_91 : i32
    %191 = arith.index_cast %190 : i32 to index
    %c0_93 = arith.constant 0 : index
    %c0_94 = arith.constant 0 : index
    %192 = vector.load %arg2[%191, %c0_93, %c0_94] : memref<3x2x96xf32, #tpu.memory_space<vmem>>, vector<1x2x96xf32>
    %193 = vector.shape_cast %192 : vector<1x2x96xf32> to vector<2x96xf32>
    %c0_95 = arith.constant 0 : index
    %c0_96 = arith.constant 0 : index
    %194 = vector.load %arg12[%c0_95, %c0_96] : memref<2x32xf32, #tpu.memory_space<vmem>>, vector<2x32xf32>
    %cst_97 = arith.constant dense<0.000000e+00> : vector<2x96xf32>
    %195 = tpu.matmul %194, %1, %cst_97 {dimension_numbers = #tpu.dot_dimension_numbers<[1], [0], [0], [1], [0, 0, 1, 1], [], []>} : vector<2x32xf32>, vector<32x96xf32>, vector<2x96xf32> -> vector<2x96xf32>
    %196 = vector.extract_strided_slice %193 {offsets = [0, 0], sizes = [2, 32], strides = [1, 1]} : vector<2x96xf32> to vector<2x32xf32>
    %197 = vector.extract_strided_slice %195 {offsets = [0, 0], sizes = [2, 32], strides = [1, 1]} : vector<2x96xf32> to vector<2x32xf32>
    %198 = arith.addf %196, %197 : vector<2x32xf32>
    %199 = arith.negf %198 : vector<2x32xf32>
    %200 = math.exp %199 : vector<2x32xf32>
    %cst_98 = arith.constant 1.000000e+00 : f32
    %201 = vector.broadcast %cst_98 : f32 to vector<2x32xf32>
    %202 = arith.addf %201, %200 : vector<2x32xf32>
    %203 = arith.divf %201, %202 : vector<2x32xf32>
    %204 = vector.extract_strided_slice %193 {offsets = [0, 32], sizes = [2, 32], strides = [1, 1]} : vector<2x96xf32> to vector<2x32xf32>
    %205 = vector.extract_strided_slice %195 {offsets = [0, 32], sizes = [2, 32], strides = [1, 1]} : vector<2x96xf32> to vector<2x32xf32>
    %206 = arith.addf %204, %205 : vector<2x32xf32>
    %207 = arith.negf %206 : vector<2x32xf32>
    %208 = math.exp %207 : vector<2x32xf32>
    %cst_99 = arith.constant 1.000000e+00 : f32
    %209 = vector.broadcast %cst_99 : f32 to vector<2x32xf32>
    %210 = arith.addf %209, %208 : vector<2x32xf32>
    %211 = arith.divf %209, %210 : vector<2x32xf32>
    %212 = vector.extract_strided_slice %193 {offsets = [0, 64], sizes = [2, 32], strides = [1, 1]} : vector<2x96xf32> to vector<2x32xf32>
    %213 = vector.extract_strided_slice %195 {offsets = [0, 64], sizes = [2, 32], strides = [1, 1]} : vector<2x96xf32> to vector<2x32xf32>
    %214 = arith.addf %213, %9 : vector<2x32xf32>
    %215 = arith.mulf %203, %214 : vector<2x32xf32>
    %216 = arith.addf %212, %215 : vector<2x32xf32>
    %217 = math.tanh %216 : vector<2x32xf32>
    %cst_100 = arith.constant 1.000000e+00 : f32
    %218 = vector.broadcast %cst_100 : f32 to vector<2x32xf32>
    %219 = arith.subf %218, %211 : vector<2x32xf32>
    %220 = arith.mulf %219, %217 : vector<2x32xf32>
    %221 = arith.mulf %211, %194 : vector<2x32xf32>
    %222 = arith.addf %220, %221 : vector<2x32xf32>
    %c0_101 = arith.constant 0 : index
    %c0_102 = arith.constant 0 : index
    %223 = vector.load %arg12[%c0_101, %c0_102] : memref<2x32xf32, #tpu.memory_space<vmem>>, vector<2x32xf32>
    tpu.vector_store %arg12[%c0_101, %c0_102], %222 {strides = array<i32>} : memref<2x32xf32, #tpu.memory_space<vmem>>, vector<2x32xf32>,
    %224 = arith.index_cast %190 : i32 to index
    %c0_103 = arith.constant 0 : index
    %c0_104 = arith.constant 0 : index
    %225 = vector.load %arg13[%224, %c0_103, %c0_104] : memref<3x2x32xf32, #tpu.memory_space<vmem>>, vector<1x2x32xf32>
    %226 = vector.shape_cast %225 : vector<1x2x32xf32> to vector<2x32xf32>
    %cst_105 = arith.constant dense<0.000000e+00> : vector<2x64xf32>
    %227 = tpu.matmul %226, %2, %cst_105 {dimension_numbers = #tpu.dot_dimension_numbers<[1], [0], [0], [1], [0, 0, 1, 1], [], []>} : vector<2x32xf32>, vector<32x64xf32>, vector<2x64xf32> -> vector<2x64xf32>
    %cst_106 = arith.constant dense<0.000000e+00> : vector<2x64xf32>
    %228 = tpu.matmul %222, %3, %cst_106 {dimension_numbers = #tpu.dot_dimension_numbers<[1], [0], [0], [1], [0, 0, 1, 1], [], []>} : vector<2x32xf32>, vector<32x64xf32>, vector<2x64xf32> -> vector<2x64xf32>
    %229 = arith.addf %227, %228 : vector<2x64xf32>
    %230 = arith.addf %229, %12 : vector<2x64xf32>
    %231 = math.tanh %230 : vector<2x64xf32>
    %232 = math.exp %231 : vector<2x64xf32>
    %c0_107 = arith.constant 0 : index
    %c0_108 = arith.constant 0 : index
    %233 = vector.load %arg14[%c0_107, %c0_108] : memref<2x64xf32, #tpu.memory_space<vmem>>, vector<2x64xf32>
    %234 = arith.addf %233, %232 : vector<2x64xf32>
    %c0_109 = arith.constant 0 : index
    %c0_110 = arith.constant 0 : index
    %235 = vector.load %arg14[%c0_109, %c0_110] : memref<2x64xf32, #tpu.memory_space<vmem>>, vector<2x64xf32>
    tpu.vector_store %arg14[%c0_109, %c0_110], %234 {strides = array<i32>} : memref<2x64xf32, #tpu.memory_space<vmem>>, vector<2x64xf32>,
    %c0_111 = arith.constant 0 : index
    %c0_112 = arith.constant 0 : index
    %236 = vector.load %arg15[%c0_111, %c0_112] : memref<2x32xf32, #tpu.memory_space<vmem>>, vector<2x32xf32>
    %237 = vector.extract_strided_slice %232 {offsets = [0, 0], sizes = [2, 32], strides = [1, 1]} : vector<2x64xf32> to vector<2x32xf32>
    %238 = arith.mulf %237, %226 : vector<2x32xf32>
    %239 = arith.addf %236, %238 : vector<2x32xf32>
    %c0_113 = arith.constant 0 : index
    %c0_114 = arith.constant 0 : index
    %240 = vector.load %arg15[%c0_113, %c0_114] : memref<2x32xf32, #tpu.memory_space<vmem>>, vector<2x32xf32>
    tpu.vector_store %arg15[%c0_113, %c0_114], %239 {strides = array<i32>} : memref<2x32xf32, #tpu.memory_space<vmem>>, vector<2x32xf32>,
    %c0_115 = arith.constant 0 : index
    %c0_116 = arith.constant 0 : index
    %241 = vector.load %arg16[%c0_115, %c0_116] : memref<2x32xf32, #tpu.memory_space<vmem>>, vector<2x32xf32>
    %242 = vector.extract_strided_slice %232 {offsets = [0, 32], sizes = [2, 32], strides = [1, 1]} : vector<2x64xf32> to vector<2x32xf32>
    %243 = arith.mulf %242, %222 : vector<2x32xf32>
    %244 = arith.addf %241, %243 : vector<2x32xf32>
    %c0_117 = arith.constant 0 : index
    %c0_118 = arith.constant 0 : index
    %245 = vector.load %arg16[%c0_117, %c0_118] : memref<2x32xf32, #tpu.memory_space<vmem>>, vector<2x32xf32>
    tpu.vector_store %arg16[%c0_117, %c0_118], %244 {strides = array<i32>} : memref<2x32xf32, #tpu.memory_space<vmem>>, vector<2x32xf32>,
    %c2_i32_119 = arith.constant 2 : i32
    %c2_i32_120 = arith.constant 2 : i32
    %246 = arith.subi %c2_i32_120, %c2_i32_119 : i32
    %247 = arith.index_cast %246 : i32 to index
    %c0_121 = arith.constant 0 : index
    %c0_122 = arith.constant 0 : index
    %248 = vector.load %arg2[%247, %c0_121, %c0_122] : memref<3x2x96xf32, #tpu.memory_space<vmem>>, vector<1x2x96xf32>
    %249 = vector.shape_cast %248 : vector<1x2x96xf32> to vector<2x96xf32>
    %c0_123 = arith.constant 0 : index
    %c0_124 = arith.constant 0 : index
    %250 = vector.load %arg12[%c0_123, %c0_124] : memref<2x32xf32, #tpu.memory_space<vmem>>, vector<2x32xf32>
    %cst_125 = arith.constant dense<0.000000e+00> : vector<2x96xf32>
    %251 = tpu.matmul %250, %1, %cst_125 {dimension_numbers = #tpu.dot_dimension_numbers<[1], [0], [0], [1], [0, 0, 1, 1], [], []>} : vector<2x32xf32>, vector<32x96xf32>, vector<2x96xf32> -> vector<2x96xf32>
    %252 = vector.extract_strided_slice %249 {offsets = [0, 0], sizes = [2, 32], strides = [1, 1]} : vector<2x96xf32> to vector<2x32xf32>
    %253 = vector.extract_strided_slice %251 {offsets = [0, 0], sizes = [2, 32], strides = [1, 1]} : vector<2x96xf32> to vector<2x32xf32>
    %254 = arith.addf %252, %253 : vector<2x32xf32>
    %255 = arith.negf %254 : vector<2x32xf32>
    %256 = math.exp %255 : vector<2x32xf32>
    %cst_126 = arith.constant 1.000000e+00 : f32
    %257 = vector.broadcast %cst_126 : f32 to vector<2x32xf32>
    %258 = arith.addf %257, %256 : vector<2x32xf32>
    %259 = arith.divf %257, %258 : vector<2x32xf32>
    %260 = vector.extract_strided_slice %249 {offsets = [0, 32], sizes = [2, 32], strides = [1, 1]} : vector<2x96xf32> to vector<2x32xf32>
    %261 = vector.extract_strided_slice %251 {offsets = [0, 32], sizes = [2, 32], strides = [1, 1]} : vector<2x96xf32> to vector<2x32xf32>
    %262 = arith.addf %260, %261 : vector<2x32xf32>
    %263 = arith.negf %262 : vector<2x32xf32>
    %264 = math.exp %263 : vector<2x32xf32>
    %cst_127 = arith.constant 1.000000e+00 : f32
    %265 = vector.broadcast %cst_127 : f32 to vector<2x32xf32>
    %266 = arith.addf %265, %264 : vector<2x32xf32>
    %267 = arith.divf %265, %266 : vector<2x32xf32>
    %268 = vector.extract_strided_slice %249 {offsets = [0, 64], sizes = [2, 32], strides = [1, 1]} : vector<2x96xf32> to vector<2x32xf32>
    %269 = vector.extract_strided_slice %251 {offsets = [0, 64], sizes = [2, 32], strides = [1, 1]} : vector<2x96xf32> to vector<2x32xf32>
    %270 = arith.addf %269, %9 : vector<2x32xf32>
    %271 = arith.mulf %259, %270 : vector<2x32xf32>
    %272 = arith.addf %268, %271 : vector<2x32xf32>
    %273 = math.tanh %272 : vector<2x32xf32>
    %cst_128 = arith.constant 1.000000e+00 : f32
    %274 = vector.broadcast %cst_128 : f32 to vector<2x32xf32>
    %275 = arith.subf %274, %267 : vector<2x32xf32>
    %276 = arith.mulf %275, %273 : vector<2x32xf32>
    %277 = arith.mulf %267, %250 : vector<2x32xf32>
    %278 = arith.addf %276, %277 : vector<2x32xf32>
    %c0_129 = arith.constant 0 : index
    %c0_130 = arith.constant 0 : index
    %279 = vector.load %arg12[%c0_129, %c0_130] : memref<2x32xf32, #tpu.memory_space<vmem>>, vector<2x32xf32>
    tpu.vector_store %arg12[%c0_129, %c0_130], %278 {strides = array<i32>} : memref<2x32xf32, #tpu.memory_space<vmem>>, vector<2x32xf32>,
    %280 = arith.index_cast %246 : i32 to index
    %c0_131 = arith.constant 0 : index
    %c0_132 = arith.constant 0 : index
    %281 = vector.load %arg13[%280, %c0_131, %c0_132] : memref<3x2x32xf32, #tpu.memory_space<vmem>>, vector<1x2x32xf32>
    %282 = vector.shape_cast %281 : vector<1x2x32xf32> to vector<2x32xf32>
    %cst_133 = arith.constant dense<0.000000e+00> : vector<2x64xf32>
    %283 = tpu.matmul %282, %2, %cst_133 {dimension_numbers = #tpu.dot_dimension_numbers<[1], [0], [0], [1], [0, 0, 1, 1], [], []>} : vector<2x32xf32>, vector<32x64xf32>, vector<2x64xf32> -> vector<2x64xf32>
    %cst_134 = arith.constant dense<0.000000e+00> : vector<2x64xf32>
    %284 = tpu.matmul %278, %3, %cst_134 {dimension_numbers = #tpu.dot_dimension_numbers<[1], [0], [0], [1], [0, 0, 1, 1], [], []>} : vector<2x32xf32>, vector<32x64xf32>, vector<2x64xf32> -> vector<2x64xf32>
    %285 = arith.addf %283, %284 : vector<2x64xf32>
    %286 = arith.addf %285, %12 : vector<2x64xf32>
    %287 = math.tanh %286 : vector<2x64xf32>
    %288 = math.exp %287 : vector<2x64xf32>
    %c0_135 = arith.constant 0 : index
    %c0_136 = arith.constant 0 : index
    %289 = vector.load %arg14[%c0_135, %c0_136] : memref<2x64xf32, #tpu.memory_space<vmem>>, vector<2x64xf32>
    %290 = arith.addf %289, %288 : vector<2x64xf32>
    %c0_137 = arith.constant 0 : index
    %c0_138 = arith.constant 0 : index
    %291 = vector.load %arg14[%c0_137, %c0_138] : memref<2x64xf32, #tpu.memory_space<vmem>>, vector<2x64xf32>
    tpu.vector_store %arg14[%c0_137, %c0_138], %290 {strides = array<i32>} : memref<2x64xf32, #tpu.memory_space<vmem>>, vector<2x64xf32>,
    %c0_139 = arith.constant 0 : index
    %c0_140 = arith.constant 0 : index
    %292 = vector.load %arg15[%c0_139, %c0_140] : memref<2x32xf32, #tpu.memory_space<vmem>>, vector<2x32xf32>
    %293 = vector.extract_strided_slice %288 {offsets = [0, 0], sizes = [2, 32], strides = [1, 1]} : vector<2x64xf32> to vector<2x32xf32>
    %294 = arith.mulf %293, %282 : vector<2x32xf32>
    %295 = arith.addf %292, %294 : vector<2x32xf32>
    %c0_141 = arith.constant 0 : index
    %c0_142 = arith.constant 0 : index
    %296 = vector.load %arg15[%c0_141, %c0_142] : memref<2x32xf32, #tpu.memory_space<vmem>>, vector<2x32xf32>
    tpu.vector_store %arg15[%c0_141, %c0_142], %295 {strides = array<i32>} : memref<2x32xf32, #tpu.memory_space<vmem>>, vector<2x32xf32>,
    %c0_143 = arith.constant 0 : index
    %c0_144 = arith.constant 0 : index
    %297 = vector.load %arg16[%c0_143, %c0_144] : memref<2x32xf32, #tpu.memory_space<vmem>>, vector<2x32xf32>
    %298 = vector.extract_strided_slice %288 {offsets = [0, 32], sizes = [2, 32], strides = [1, 1]} : vector<2x64xf32> to vector<2x32xf32>
    %299 = arith.mulf %298, %278 : vector<2x32xf32>
    %300 = arith.addf %297, %299 : vector<2x32xf32>
    %c0_145 = arith.constant 0 : index
    %c0_146 = arith.constant 0 : index
    %301 = vector.load %arg16[%c0_145, %c0_146] : memref<2x32xf32, #tpu.memory_space<vmem>>, vector<2x32xf32>
    tpu.vector_store %arg16[%c0_145, %c0_146], %300 {strides = array<i32>} : memref<2x32xf32, #tpu.memory_space<vmem>>, vector<2x32xf32>,
    %c3_i32_147 = arith.constant 3 : i32
    %c0_148 = arith.constant 0 : index
    %c0_149 = arith.constant 0 : index
    %302 = vector.load %arg14[%c0_148, %c0_149] : memref<2x64xf32, #tpu.memory_space<vmem>>, vector<2x64xf32>
    %303 = tpu.reciprocal %302 {approx = true} : vector<2x64xf32> -> vector<2x64xf32>
    %c0_150 = arith.constant 0 : index
    %c0_151 = arith.constant 0 : index
    %304 = vector.load %arg15[%c0_150, %c0_151] : memref<2x32xf32, #tpu.memory_space<vmem>>, vector<2x32xf32>
    %305 = vector.extract_strided_slice %303 {offsets = [0, 0], sizes = [2, 32], strides = [1, 1]} : vector<2x64xf32> to vector<2x32xf32>
    %306 = arith.mulf %304, %305 : vector<2x32xf32>
    %c0_152 = arith.constant 0 : index
    %c0_153 = arith.constant 0 : index
    %307 = vector.load %arg10[%c0_152, %c0_153] : memref<2x64xf32, #tpu.memory_space<vmem>>, vector<2x32xf32>
    tpu.vector_store %arg10[%c0_152, %c0_153], %306 {strides = array<i32>} : memref<2x64xf32, #tpu.memory_space<vmem>>, vector<2x32xf32>,
    %c0_154 = arith.constant 0 : index
    %c0_155 = arith.constant 0 : index
    %308 = vector.load %arg16[%c0_154, %c0_155] : memref<2x32xf32, #tpu.memory_space<vmem>>, vector<2x32xf32>
    %309 = vector.extract_strided_slice %303 {offsets = [0, 32], sizes = [2, 32], strides = [1, 1]} : vector<2x64xf32> to vector<2x32xf32>
    %310 = arith.mulf %308, %309 : vector<2x32xf32>
    %c0_156 = arith.constant 0 : index
    %c32 = arith.constant 32 : index
    %311 = vector.load %arg10[%c0_156, %c32] : memref<2x64xf32, #tpu.memory_space<vmem>>, vector<2x32xf32>
    tpu.vector_store %arg10[%c0_156, %c32], %310 {strides = array<i32>} : memref<2x64xf32, #tpu.memory_space<vmem>>, vector<2x32xf32>,
    return
  }
  func.func @transform_0(%arg0: i32) -> (i32, i32, i32) {
    %c0_i32 = arith.constant 0 : i32
    %c0_i32_0 = arith.constant 0 : i32
    %c0_i32_1 = arith.constant 0 : i32
    return %c0_i32, %arg0, %c0_i32_0 : i32, i32, i32
  }
  func.func @transform_1(%arg0: i32) -> (i32, i32, i32) {
    %c0_i32 = arith.constant 0 : i32
    %c0_i32_0 = arith.constant 0 : i32
    %c0_i32_1 = arith.constant 0 : i32
    return %c0_i32, %arg0, %c0_i32_0 : i32, i32, i32
  }
  func.func @transform_2(%arg0: i32) -> (i32, i32) {
    %c0_i32 = arith.constant 0 : i32
    %c0_i32_0 = arith.constant 0 : i32
    %c0_i32_1 = arith.constant 0 : i32
    return %c0_i32, %c0_i32_0 : i32, i32
  }
  func.func @transform_3(%arg0: i32) -> (i32, i32) {
    %c0_i32 = arith.constant 0 : i32
    %c0_i32_0 = arith.constant 0 : i32
    %c0_i32_1 = arith.constant 0 : i32
    return %c0_i32, %c0_i32_0 : i32, i32
  }
  func.func @transform_4(%arg0: i32) -> (i32, i32) {
    %c0_i32 = arith.constant 0 : i32
    %c0_i32_0 = arith.constant 0 : i32
    %c0_i32_1 = arith.constant 0 : i32
    return %c0_i32, %c0_i32_0 : i32, i32
  }
  func.func @transform_5(%arg0: i32) -> (i32, i32) {
    %c0_i32 = arith.constant 0 : i32
    %c0_i32_0 = arith.constant 0 : i32
    %c0_i32_1 = arith.constant 0 : i32
    return %c0_i32, %c0_i32_0 : i32, i32
  }
  func.func @transform_6(%arg0: i32) -> (i32, i32) {
    %c0_i32 = arith.constant 0 : i32
    %c0_i32_0 = arith.constant 0 : i32
    %c0_i32_1 = arith.constant 0 : i32
    return %c0_i32, %c0_i32_0 : i32, i32
  }
  func.func @transform_7(%arg0: i32) -> (i32, i32) {
    %c0_i32 = arith.constant 0 : i32
    %c0_i32_0 = arith.constant 0 : i32
    %c0_i32_1 = arith.constant 0 : i32
    return %c0_i32, %c0_i32_0 : i32, i32
  }
  func.func @transform_8(%arg0: i32) -> (i32, i32) {
    %c0_i32 = arith.constant 0 : i32
    %c0_i32_0 = arith.constant 0 : i32
    %c0_i32_1 = arith.constant 0 : i32
    return %c0_i32, %c0_i32_0 : i32, i32
  }
  func.func @transform_9(%arg0: i32) -> (i32, i32) {
    %c0_i32 = arith.constant 0 : i32
    %c0_i32_0 = arith.constant 0 : i32
    return %arg0, %c0_i32 : i32, i32
  }
}

</mosaic_0001>

<bundles_post_ra>
// kernel: sent_gru_forward.3
= control target key start
LH: loop header
LB: loop body
LE: loop exit
PB: predicated region body
PF: predicated region fallthrough
CT: control target
= control target key end

     0   :  { %vm59_vm0 = vcmask 254976   ;;  %v854_v2 = vmov 0.0   ;;  %s855_s19 = smov 64   ;;  %s1120_s0 = inlined_call_operand.vmem [shape: f32[3,2,96], index: 0, kind: input, shape index: {}]   ;;  %s1121_s1 = inlined_call_operand.vmem [shape: f32[3,2,96], index: 1, kind: input, shape index: {}]   ;;  %s1122_s2 = inlined_call_operand.vmem [shape: f32[32,96], index: 2, kind: input, shape index: {}]   ;;  %s1123_s3 = inlined_call_operand.vmem [shape: f32[32,96], index: 3, kind: input, shape index: {}]   ;;  %s1124_s4 = inlined_call_operand.vmem [shape: f32[1,32], index: 4, kind: input, shape index: {}]   ;;  %s1125_s5 = inlined_call_operand.vmem [shape: f32[1,32], index: 5, kind: input, shape index: {}]   ;;  %s1126_s6 = inlined_call_operand.vmem [shape: f32[32,64], index: 6, kind: input, shape index: {}]   ;;  %s1127_s7 = inlined_call_operand.vmem [shape: f32[32,64], index: 7, kind: input, shape index: {}]   ;;  %s1128_s8 = inlined_call_operand.vmem [shape: f32[1,64], index: 8, kind: input, shape index: {}]   ;;  %s1129_s9 = inlined_call_operand.hbm [shape: f32[2,64], index: 9, kind: output, shape index: {}]  }
   0x1   :  { %v36_v0 = vld [vmem:[%s1122_s2 + $0x18] sm:$0xff]  ;;  %v35_v1 = vld [vmem:[%s1122_s2 + $0x10] sm:$0xff]  ;;  %60 = vst.msk [vmem:[#allocation2] sm:$0x3] %vm59_vm0, %v854_v2  ;;  %v34_v3 = vld [vmem:[%s1122_s2 + $0x8] sm:$0xff] }
   0x2   :  { %84 = vmatpush.msra.mxu0 %v36_v0  ;;  %162 = vmatpush.msra.mxu1 %v36_v0  ;;  %61 = vst.msk [vmem:[#allocation3] sm:$0x3] %vm59_vm0, %v854_v2  ;;  %v775_v4 = vld [vmem:[%s1124_s4] ss:$0 sm:$0xff] }
   0x3   :  { %238 = vmatpush.msra.mxu2 %v36_v0  ;;  %64 = vst.msk [vmem:[#allocation6] sm:$0x3] %vm59_vm0, %v854_v2  ;;  %v33_v5 = vld [vmem:[%s1122_s2] sm:$0xff]  ;;  %112 = vrot.lane.b32.xlu0 %v775_v4, %s855_s19 }
   0x4   :  { %85 = vmatpush.msra.mxu0 %v35_v1  ;;  %163 = vmatpush.msra.mxu1 %v35_v1  ;;  %65 = vst.msk [vmem:[#allocation7] sm:$0x3] %vm59_vm0, %v854_v2 }
   0x5   :  { %239 = vmatpush.msra.mxu2 %v35_v1 }
   0x6   :  { %14 = vsyncpa [#allocation9], 0  ;;  %86 = vmatpush.msra.mxu0 %v34_v3  ;;  %164 = vmatpush.msra.mxu1 %v34_v3  ;;  %vm68_vm1 = vcmask 261120   ;;  %s856_s4 = smov 32   ;;  %v66_v10 = vld [vmem:[%s1120_s0] sm:$0x3] }
   0x7   :  { %240 = vmatpush.msra.mxu2 %v34_v3  ;;  %s857_s21 = smov 96   ;;  %v947_v30 = vld [vmem:[%s1123_s3 + $0x18] sm:$0xff]  ;;  %v952_v31 = vld [vmem:[%s1123_s3 + $0x10] sm:$0xff]  ;;  %v776_v32 = vld [vmem:[%s1125_s5] ss:$0 sm:$0xff]  ;;  %s739_s13 = sshll.u32 %s1129_s9, 4  ;;  %s740_s13 = int_to_ptr.hbm [resolvable:$true] %s739_s13 }
   0x8   :  { %87 = vmatpush.msra.mxu0 %v33_v5  ;;  %165 = vmatpush.msra.mxu1 %v33_v5  ;;  %v67_v6 = vld [vmem:[#allocation2] sm:$0x3]  ;;  %v962_v33 = vld [vmem:[%s1123_s3 + $0x8] sm:$0xff]  ;;  %v756_v47 = vld [vmem:[%s1121_s1 + $0x4] sm:$0x3] }
   0x9   :  { %241 = vmatpush.msra.mxu2 %v33_v5  ;;  %748 = vmatmul.msk.f32.vlgmr.msra.gmra.mxu0 %vm68_vm1, %v67_v6  ;;  %v969_v34 = vld [vmem:[%s1123_s3] sm:$0xff] }
   0xa   :  { %133 = vrot.lane.b32.xlu2 %v67_v6, %s856_s4  ;;  %314 = vmatpush.msra.mxu3 %v947_v30  ;;  %v973_v35 = vld [vmem:[#allocation3] sm:$0x3] }
   0xb   :  { %456 = vmatpush.msrb.mxu2 %v947_v30  ;;  %v750_v3 = vld [vmem:[%s1120_s0 + $0x2] sm:$0x3] }
   0xc   :  { %315 = vmatpush.msra.mxu3 %v952_v31 }
   0xd   :  { %457 = vmatpush.msrb.mxu2 %v952_v31 }
   0xe   :  { %316 = vmatpush.msra.mxu3 %v962_v33 }
   0xf   :  { %458 = vmatpush.msrb.mxu2 %v962_v33 }
  0x10   :  { %317 = vmatpush.msra.mxu3 %v969_v34 }
  0x11   :  { %757 = vmatmul.msk.f32.vlgmr.msra.gmra.mxu3 %vm68_vm1, %v973_v35  ;;  %459 = vmatpush.msrb.mxu2 %v969_v34 }
  0x64   :  { %v134_v36 = vpop.permute.xlu2 %133 }
  0x75   :  { %v935_v7 = vpop.permute.xlu0 %112 }
  0x86   :  { %v89_v8 = vpop.f32.mrf.mxu0 }
  0x87   :  { %v115_v9 = vadd.f32 %v935_v7, %v89_v8  ;;  %v92_v11 = vadd.f32 %v89_v8, %v66_v10 }
  0x89   :  { %117 = vrot.lane.b32.xlu0 %v115_v9, %s855_s19  ;;  %v749_v12 = vmul.f32 -1.442695, %v92_v11 }
  0x8b   :  { %778 = vpow2.f32 %v749_v12 }
  0x91   :  { %v779_v13 = vpop.eup %778  ;;  %342 = vrot.lane.b32.xlu0 %v776_v32, %s855_s19 }
  0x92   :  { %v96_v14 = vadd.f32 1.0, %v779_v13 }
  0x94   :  { %780 = vrcp.f32 %v96_v14  ;;  %v108_v20 = vand.u32 2147483648, %v96_v14  ;;  %vm102_vm3 = vweird.f32 %v96_v14  ;;  %v106_v21 = vand.u32 2147483647, %v96_v14  ;;  %v319_v45 = vpop.f32.mrf.mxu3 }
  0x95   :  { %v322_v48 = vadd.f32 %v756_v47, %v319_v45 }
  0x96   :  { %v109_v23 = vor.u32 1.1754944e-38, %v108_v20  ;;  %vm107_vm5 = vcmp.eq.f32.partialorder %v106_v21, 8.507059e+37 }
  0x97   :  { %v758_v49 = vmul.f32 -1.442695, %v322_v48  ;;  %v44_v48 = vld [vmem:[%s1126_s6 + $0x18] sm:$0xff] }
  0x98   :  { %411 = vmatpush.msrb.mxu1 %v44_v48 }
  0x9a   :  { %v781_v15 = vpop.eup %780 }
  0x9b   :  { %v98_v16 = vmul.f32 %v781_v15, %v96_v14  ;;  %vm103_vm2 = vweird.f32 %v781_v15 }
  0x9c   :  { %vm104_vm4 = vmor %vm102_vm3, %vm103_vm2 }
  0x9d   :  { %v99_v17 = vsub.f32 1.0, %v98_v16 }
  0x9f   :  { %v100_v18 = vmul.f32 %v781_v15, %v99_v17 }
  0xa1   :  { %v101_v19 = vadd.f32 %v781_v15, %v100_v18 }
  0xa3   :  { %v105_v22 = vsel %vm104_vm4, %v781_v15, %v101_v19 }
  0xa4   :  { %v110_v24 = vsel %vm107_vm5, %v109_v23, %v105_v22 }
  0xa5   :  { %v127_v37 = vsub.f32 1.0, %v110_v24  ;;  %v136_v39 = vmul.f32 %v134_v36, %v110_v24 }
  0xfb   :  { %v118_v25 = vpop.permute.xlu0 %117 }
  0xfc   :  { %v120_v26 = vmul.f32 %v118_v25, %v110_v24 }
  0xfe   :  { %122 = vrot.lane.b32.xlu1 %v120_v26, %s855_s19 }
 0x103   :  { %v984_v44 = vpop.permute.xlu0 %342 }
 0x104   :  { %v345_v46 = vadd.f32 %v984_v44, %v319_v45  ;;  %v47_v45 = vld [vmem:[%s1127_s7 + $0x10] sm:$0xff] }
 0x170   :  { %v123_v27 = vpop.permute.xlu1 %122 }
 0x171   :  { %v125_v28 = vadd.f32 %v123_v27, %v66_v10 }
 0x173   :  { %782 = vtanh.f32 %v125_v28 }
 0x174   :  { %784 = vpow2.f32 %v758_v49  ;;  %v43_v49 = vld [vmem:[%s1126_s6 + $0x10] sm:$0xff] }
 0x175   :  { %412 = vmatpush.msrb.mxu1 %v43_v49 }
 0x179   :  { %v783_v29 = vpop.eup %782 }
 0x17a   :  { %129 = vrot.lane.b32.xlu1 %v783_v29, %s857_s21  ;;  %v785_v50 = vpop.eup %784 }
 0x17b   :  { %v326_v51 = vadd.f32 1.0, %v785_v50  ;;  %v42_v50 = vld [vmem:[%s1126_s6 + $0x8] sm:$0xff] }
 0x17c   :  { %413 = vmatpush.msrb.mxu1 %v42_v50 }
 0x17d   :  { %786 = vrcp.f32 %v326_v51  ;;  %vm332_vm6 = vweird.f32 %v326_v51  ;;  %v338_v56 = vand.u32 2147483648, %v326_v51  ;;  %v336_v58 = vand.u32 2147483647, %v326_v51 }
 0x17f   :  { %v339_v60 = vor.u32 1.1754944e-38, %v338_v56  ;;  %vm337_vm9 = vcmp.eq.f32.partialorder %v336_v58, 8.507059e+37 }
 0x183   :  { %v787_v52 = vpop.eup %786 }
 0x184   :  { %v328_v53 = vmul.f32 %v787_v52, %v326_v51  ;;  %vm333_vm7 = vweird.f32 %v787_v52  ;;  %v41_v51 = vld [vmem:[%s1126_s6] sm:$0xff] }
 0x185   :  { %vm334_vm8 = vmor %vm332_vm6, %vm333_vm7  ;;  %414 = vmatpush.msrb.mxu1 %v41_v51 }
 0x186   :  { %v329_v54 = vsub.f32 1.0, %v328_v53 }
 0x188   :  { %v330_v55 = vmul.f32 %v787_v52, %v329_v54 }
 0x18a   :  { %v331_v57 = vadd.f32 %v787_v52, %v330_v55 }
 0x18c   :  { %v335_v62 = vsel %vm334_vm8, %v787_v52, %v331_v57  ;;  %v753_v57 = vld [vmem:[%s1120_s0 + $0x4] sm:$0x3]  ;;  %vm62_vm8 = vcmask 517120  }
 0x18d   :  { %v340_v63 = vsel %vm337_vm9, %v339_v60, %v335_v62  ;;  %63 = vst.msk [vmem:[#allocation5] sm:$0x3] %vm62_vm8, %v854_v2 }
 0x1ec   :  { %v130_v38 = vpop.permute.xlu1 %129 }
 0x1ed   :  { %v132_v40 = vmul.f32 %v130_v38, %v127_v37 }
 0x1ef   :  { %v137_v41 = vadd.f32 %v136_v39, %v132_v40  ;;  %v357_v39 = vsub.f32 1.0, %v340_v63 }
 0x1f1   :  { %139 = vrot.lane.b32.xlu2 %v137_v41, %s857_s21 }
 0x1f9   :  { %347 = vrot.lane.b32.xlu2 %v345_v46, %s855_s19  ;;  %v46_v46 = vld [vmem:[%s1127_s7 + $0x8] sm:$0xff] }
 0x24b   :  { %v140_v42 = vpop.permute.xlu2 %139 }
 0x24c   :  { %142 = vst.msk [vmem:[#allocation2] sm:$0x3] %vm59_vm0, %v140_v42 }
 0x24d   :  { %143 = vst.msk [vmem:[#allocation4] sm:$0x3] %vm59_vm0, %v140_v42 }
 0x253   :  { %v146_v43 = vld [vmem:[#allocation2] sm:$0x3]  ;;  %v348_v0 = vpop.permute.xlu2 %347 }
 0x254   :  { %751 = vmatmul.msk.f32.vlgmr.msra.gmra.mxu1 %vm68_vm1, %v146_v43  ;;  %v350_v1 = vmul.f32 %v348_v0, %v340_v63 }
 0x255   :  { %594 = vmatpush.msra.mxu1 %v947_v30 }
 0x257   :  { %595 = vmatpush.msra.mxu1 %v952_v31 }
 0x259   :  { %596 = vmatpush.msra.mxu1 %v962_v33 }
 0x25b   :  { %597 = vmatpush.msra.mxu1 %v969_v34 }
 0x2d1   :  { %v167_v59 = vpop.f32.mrf.mxu1 }
 0x2d2   :  { %v190_v61 = vadd.f32 %v167_v59, %v935_v7  ;;  %v170_v4 = vadd.f32 %v750_v3, %v167_v59 }
 0x2d4   :  { %192 = vrot.lane.b32.xlu1 %v190_v61, %s855_s19  ;;  %v752_v5 = vmul.f32 -1.442695, %v170_v4 }
 0x2d6   :  { %788 = vpow2.f32 %v752_v5 }
 0x2dc   :  { %352 = vrot.lane.b32.xlu1 %v350_v1, %s855_s19  ;;  %v789_v6 = vpop.eup %788 }
 0x2dd   :  { %v174_v8 = vadd.f32 1.0, %v789_v6 }
 0x2df   :  { %790 = vrcp.f32 %v174_v8  ;;  %v186_v14 = vand.u32 2147483648, %v174_v8  ;;  %vm180_vm11 = vweird.f32 %v174_v8  ;;  %v184_v15 = vand.u32 2147483647, %v174_v8 }
 0x2e1   :  { %v187_v17 = vor.u32 1.1754944e-38, %v186_v14  ;;  %vm185_vm13 = vcmp.eq.f32.partialorder %v184_v15, 8.507059e+37 }
 0x2e5   :  { %v791_v9 = vpop.eup %790 }
 0x2e6   :  { %v176_v10 = vmul.f32 %v791_v9, %v174_v8  ;;  %vm181_vm10 = vweird.f32 %v791_v9 }
 0x2e7   :  { %vm182_vm12 = vmor %vm180_vm11, %vm181_vm10 }
 0x2e8   :  { %v177_v11 = vsub.f32 1.0, %v176_v10 }
 0x2ea   :  { %v178_v12 = vmul.f32 %v791_v9, %v177_v11 }
 0x2ec   :  { %v179_v13 = vadd.f32 %v791_v9, %v178_v12 }
 0x2ee   :  { %v183_v16 = vsel %vm182_vm12, %v791_v9, %v179_v13 }
 0x2ef   :  { %v188_v19 = vsel %vm185_vm13, %v187_v17, %v183_v16 }
 0x2f0   :  { %v202_v28 = vsub.f32 1.0, %v188_v19 }
 0x346   :  { %v193_v18 = vpop.permute.xlu1 %192 }
 0x347   :  { %v195_v20 = vmul.f32 %v193_v18, %v188_v19 }
 0x349   :  { %197 = vrot.lane.b32.xlu0 %v195_v20, %s855_s19 }
 0x34e   :  { %v353_v21 = vpop.permute.xlu1 %352 }
 0x34f   :  { %v355_v22 = vadd.f32 %v756_v47, %v353_v21  ;;  %v45_v47 = vld [vmem:[%s1127_s7] sm:$0xff] }
 0x351   :  { %792 = vtanh.f32 %v355_v22  ;;  %208 = vrot.lane.b32.xlu0 %v146_v43, %s856_s4 }
 0x357   :  { %v793_v23 = vpop.eup %792 }
 0x358   :  { %359 = vrot.lane.b32.xlu1 %v793_v23, %s857_s21 }
 0x3bb   :  { %v198_v24 = vpop.permute.xlu0 %197 }
 0x3bc   :  { %v200_v25 = vadd.f32 %v750_v3, %v198_v24 }
 0x3be   :  { %794 = vtanh.f32 %v200_v25 }
 0x3c3   :  { %v209_v27 = vpop.permute.xlu0 %208 }
 0x3c4   :  { %v795_v26 = vpop.eup %794  ;;  %v211_v32 = vmul.f32 %v209_v27, %v188_v19 }
 0x3c5   :  { %204 = vrot.lane.b32.xlu2 %v795_v26, %s857_s21 }
 0x3ca   :  { %v360_v38 = vpop.permute.xlu1 %359 }
 0x3cb   :  { %v362_v41 = vmul.f32 %v360_v38, %v357_v39 }
 0x3cd   :  { %363 = vrot.lane.b32.xlu2 %v973_v35, %s856_s4  ;;  %v48_v35 = vld [vmem:[%s1127_s7 + $0x18] sm:$0xff] }
 0x3ce   :  { %388 = vmatpush.msrb.mxu0 %v48_v35  ;;  %527 = vmatpush.msrb.mxu3 %v48_v35 }
 0x3d0   :  { %389 = vmatpush.msrb.mxu0 %v47_v45  ;;  %528 = vmatpush.msrb.mxu3 %v47_v45 }
 0x3d2   :  { %390 = vmatpush.msrb.mxu0 %v46_v46  ;;  %529 = vmatpush.msrb.mxu3 %v46_v46 }
 0x3d4   :  { %391 = vmatpush.msrb.mxu0 %v45_v47  ;;  %530 = vmatpush.msrb.mxu3 %v45_v47 }
 0x3d6   :  { %550 = vmatpush.msra.mxu0 %v44_v48  ;;  %688 = vmatpush.msra.mxu3 %v44_v48 }
 0x3d8   :  { %551 = vmatpush.msra.mxu0 %v43_v49  ;;  %689 = vmatpush.msra.mxu3 %v43_v49 }
 0x3da   :  { %552 = vmatpush.msra.mxu0 %v42_v50  ;;  %690 = vmatpush.msra.mxu3 %v42_v50 }
 0x3dc   :  { %553 = vmatpush.msra.mxu0 %v41_v51  ;;  %691 = vmatpush.msra.mxu3 %v41_v51 }
 0x41f   :  { %v205_v29 = vpop.permute.xlu2 %204 }
 0x420   :  { %v207_v36 = vmul.f32 %v205_v29, %v202_v28 }
 0x422   :  { %v212_v37 = vadd.f32 %v211_v32, %v207_v36 }
 0x424   :  { %214 = vrot.lane.b32.xlu0 %v212_v37, %s857_s21 }
 0x427   :  { %v364_v40 = vpop.permute.xlu2 %363 }
 0x428   :  { %v366_v42 = vmul.f32 %v364_v40, %v340_v63 }
 0x42a   :  { %v1004_v43 = vadd.f32 %v366_v42, %v362_v41 }
 0x42c   :  { %369 = vrot.lane.b32.xlu1 %v1004_v43, %s857_s21 }
 0x496   :  { %v215_v52 = vpop.permute.xlu0 %214 }
 0x497   :  { %217 = vst.msk [vmem:[#allocation2] sm:$0x3] %vm59_vm0, %v215_v52 }
 0x498   :  { %219 = vst.msk [vmem:[#allocation4 + $0x2] sm:$0x3] %vm59_vm0, %v215_v52 }
 0x49e   :  { %v370_v53 = vpop.permute.xlu1 %369  ;;  %v222_v54 = vld [vmem:[#allocation2] sm:$0x3] }
 0x49f   :  { %372 = vst.msk [vmem:[#allocation3] sm:$0x3] %vm59_vm0, %v370_v53  ;;  %754 = vmatmul.msk.f32.vlgmr.msra.gmra.mxu2 %vm68_vm1, %v222_v54  ;;  %759 = vmatmul.msk.f32.vlgmr.msrb.gmra.mxu0 %vm68_vm1, %v370_v53  ;;  %v1043_v31 = vld [vmem:[#allocation4 + $0x2] sm:$0x3]  ;;  %v1070_v53 = vld [vmem:[#allocation4] sm:$0x3] }
 0x4a0   :  { %665 = vmatpush.msra.mxu2 %v48_v35 }
 0x4a2   :  { %666 = vmatpush.msra.mxu2 %v47_v45 }
 0x4a4   :  { %667 = vmatpush.msra.mxu2 %v46_v46 }
 0x4a6   :  { %v1041_v30 = vld [vmem:[#allocation3] sm:$0x3]  ;;  %668 = vmatpush.msra.mxu2 %v45_v47 }
 0x4a7   :  { %762 = vmatmul.msk.f32.vlgmr.msrb.gmra.mxu2 %vm68_vm1, %v1041_v30  ;;  %765 = vmatmul.msk.f32.vlgmr.msra.gmra.mxu0 %vm68_vm1, %v1043_v31 }
 0x522   :  { %v243_v33 = vpop.f32.mrf.mxu2 }
 0x523   :  { %v266_v34 = vadd.f32 %v243_v33, %v935_v7  ;;  %v246_v58 = vadd.f32 %v753_v57, %v243_v33  ;;  %v761_v7 = vld [vmem:[%s1121_s1 + $0x2] sm:$0x3] }
 0x525   :  { %268 = vrot.lane.b32.xlu2 %v266_v34, %s855_s19  ;;  %v755_v59 = vmul.f32 -1.442695, %v246_v58  ;;  %v393_v34 = vpop.f32.mrf.mxu0 }
 0x527   :  { %796 = vpow2.f32 %v755_v59 }
 0x52a   :  { %v461_v55 = vpop.f32.mrf.mxu2 }
 0x52b   :  { %v484_v56 = vadd.f32 %v461_v55, %v984_v44  ;;  %v464_v0 = vadd.f32 %v761_v7, %v461_v55 }
 0x52d   :  { %486 = vrot.lane.b32.xlu0 %v484_v56, %s855_s19  ;;  %v797_v60 = vpop.eup %796  ;;  %v763_v3 = vmul.f32 -1.442695, %v464_v0  ;;  %v555_v56 = vpop.f32.mrf.mxu0 }
 0x52e   :  { %v250_v61 = vadd.f32 1.0, %v797_v60 }
 0x530   :  { %798 = vrcp.f32 %v250_v61  ;;  %v262_v6 = vand.u32 2147483648, %v250_v61  ;;  %vm256_vm15 = vweird.f32 %v250_v61  ;;  %v260_v8 = vand.u32 2147483647, %v250_v61 }
 0x531   :  { %800 = vpow2.f32 %v763_v3 }
 0x532   :  { %v263_v11 = vor.u32 1.1754944e-38, %v262_v6  ;;  %vm261_vm3 = vcmp.eq.f32.partialorder %v260_v8, 8.507059e+37  ;;  %v426_v6 = vld [vmem:[#allocation6] sm:$0x3] }
 0x536   :  { %v799_v62 = vpop.eup %798 }
 0x537   :  { %v252_v63 = vmul.f32 %v799_v62, %v250_v61  ;;  %vm257_vm14 = vweird.f32 %v799_v62  ;;  %v801_v9 = vpop.eup %800 }
 0x538   :  { %vm258_vm2 = vmor %vm256_vm15, %vm257_vm14  ;;  %v468_v12 = vadd.f32 1.0, %v801_v9 }
 0x539   :  { %v253_v1 = vsub.f32 1.0, %v252_v63 }
 0x53a   :  { %802 = vrcp.f32 %v468_v12  ;;  %v480_v21 = vand.u32 2147483648, %v468_v12  ;;  %vm474_vm5 = vweird.f32 %v468_v12  ;;  %v478_v22 = vand.u32 2147483647, %v468_v12 }
 0x53b   :  { %v254_v4 = vmul.f32 %v799_v62, %v253_v1 }
 0x53c   :  { %v481_v24 = vor.u32 1.1754944e-38, %v480_v21  ;;  %vm479_vm7 = vcmp.eq.f32.partialorder %v478_v22, 8.507059e+37 }
 0x53d   :  { %v255_v5 = vadd.f32 %v799_v62, %v254_v4  ;;  %v423_v4 = vld [vmem:[#allocation5] sm:$0x3] }
 0x53f   :  { %v259_v10 = vsel %vm258_vm2, %v799_v62, %v255_v5 }
 0x540   :  { %v264_v13 = vsel %vm261_vm3, %v263_v11, %v259_v10  ;;  %v803_v16 = vpop.eup %802 }
 0x541   :  { %v470_v17 = vmul.f32 %v803_v16, %v468_v12  ;;  %vm475_vm4 = vweird.f32 %v803_v16  ;;  %v278_v40 = vsub.f32 1.0, %v264_v13 }
 0x542   :  { %vm476_vm6 = vmor %vm474_vm5, %vm475_vm4 }
 0x543   :  { %v471_v18 = vsub.f32 1.0, %v470_v17  ;;  %v577_v17 = vld [vmem:[%s1121_s1] sm:$0x3]  ;;  %s858_s1 = smov [#allocation8]  }
 0x545   :  { %v472_v19 = vmul.f32 %v803_v16, %v471_v18 }
 0x547   :  { %v473_v20 = vadd.f32 %v803_v16, %v472_v19 }
 0x549   :  { %v477_v23 = vsel %vm476_vm6, %v803_v16, %v473_v20 }
 0x54a   :  { %v482_v26 = vsel %vm479_vm7, %v481_v24, %v477_v23 }
 0x54b   :  { %v496_v47 = vsub.f32 1.0, %v482_v26 }
 0x57f   :  { %v269_v14 = vpop.permute.xlu2 %268 }
 0x580   :  { %v271_v15 = vmul.f32 %v269_v14, %v264_v13 }
 0x582   :  { %273 = vrot.lane.b32.xlu1 %v271_v15, %s855_s19 }
 0x58a   :  { %284 = vrot.lane.b32.xlu1 %v222_v54, %s856_s4 }
 0x59f   :  { %v487_v25 = vpop.permute.xlu0 %486 }
 0x5a0   :  { %v489_v27 = vmul.f32 %v487_v25, %v482_v26 }
 0x5a2   :  { %491 = vrot.lane.b32.xlu2 %v489_v27, %s855_s19 }
 0x5f4   :  { %v274_v28 = vpop.permute.xlu1 %273 }
 0x5f5   :  { %v276_v29 = vadd.f32 %v753_v57, %v274_v28  ;;  %v1083_v57 = vld [vmem:[%s1128_s8] ss:$0 sm:$0xff] }
 0x5f7   :  { %804 = vtanh.f32 %v276_v29 }
 0x5fc   :  { %v492_v32 = vpop.permute.xlu2 %491  ;;  %v285_v39 = vpop.permute.xlu1 %284 }
 0x5fd   :  { %v805_v36 = vpop.eup %804  ;;  %v494_v37 = vadd.f32 %v761_v7, %v492_v32  ;;  %v287_v42 = vmul.f32 %v285_v39, %v264_v13 }
 0x5fe   :  { %280 = vrot.lane.b32.xlu0 %v805_v36, %s857_s21 }
 0x5ff   :  { %806 = vtanh.f32 %v494_v37 }
 0x605   :  { %v807_v38 = vpop.eup %806 }
 0x606   :  { %502 = vrot.lane.b32.xlu0 %v1041_v30, %s856_s4  ;;  %498 = vrot.lane.b32.xlu2 %v807_v38, %s857_s21 }
 0x660   :  { %v499_v46 = vpop.permute.xlu2 %498 }
 0x661   :  { %v501_v49 = vmul.f32 %v499_v46, %v496_v47 }
 0x670   :  { %v281_v41 = vpop.permute.xlu0 %280 }
 0x671   :  { %v283_v35 = vmul.f32 %v281_v41, %v278_v40 }
 0x673   :  { %v288_v45 = vadd.f32 %v287_v42, %v283_v35 }
 0x675   :  { %290 = vrot.lane.b32.xlu1 %v288_v45, %s857_s21 }
 0x678   :  { %v503_v48 = vpop.permute.xlu0 %502 }
 0x679   :  { %v505_v50 = vmul.f32 %v503_v48, %v482_v26 }
 0x67b   :  { %v506_v51 = vadd.f32 %v505_v50, %v501_v49  ;;  %v430_v49 = vld [vmem:[#allocation7] sm:$0x3] }
 0x67d   :  { %508 = vrot.lane.b32.xlu2 %v506_v51, %s857_s21 }
 0x6d7   :  { %v509_v52 = vpop.permute.xlu2 %508 }
 0x6d8   :  { %511 = vst.msk [vmem:[#allocation3] sm:$0x3] %vm59_vm0, %v509_v52  ;;  %764 = vmatmul.msk.f32.vlgmr.msrb.gmra.mxu3 %vm68_vm1, %v509_v52 }
 0x6df   :  { %v578_v33 = vld [vmem:[#allocation3] sm:$0x3] }
 0x6e0   :  { %769 = vmatmul.msk.f32.vlgmr.msra.gmra.mxu3 %vm68_vm1, %v1070_v53 }
 0x6e7   :  { %v291_v54 = vpop.permute.xlu1 %290 }
 0x6e8   :  { %293 = vst.msk [vmem:[#allocation2] sm:$0x3] %vm59_vm0, %v291_v54 }
 0x6e9   :  { %295 = vst.msk [vmem:[#allocation4 + $0x4] sm:$0x3] %vm59_vm0, %v291_v54 }
 0x6f0   :  { %v373_v30 = vld [vmem:[#allocation4 + $0x4] sm:$0x3] }
 0x6f1   :  { %760 = vmatmul.msk.f32.vlgmr.msrb.gmra.mxu1 %vm68_vm1, %v373_v30 }
 0x6f9   :  { %766 = vmatmul.msk.f32.vlgmr.msra.gmra.mxu1 %vm68_vm1, %v578_v33 }
 0x75b   :  { %v532_v55 = vpop.f32.mrf.mxu3 }
 0x75c   :  { %v556_v58 = vadd.f32 %v555_v56, %v532_v55 }
 0x75e   :  { %v558_v59 = vadd.f32 %v1083_v57, %v556_v58 }
 0x760   :  { %808 = vtanh.f32 %v558_v59 }
 0x766   :  { %v809_v63 = vpop.eup %808 }
 0x767   :  { %v560_v1 = vmul.f32 1.442695, %v809_v63 }
 0x76e   :  { %v416_v60 = vpop.f32.mrf.mxu1 }
 0x76f   :  { %v417_v61 = vadd.f32 %v416_v60, %v393_v34 }
 0x771   :  { %v419_v62 = vadd.f32 %v1083_v57, %v417_v61 }
 0x773   :  { %810 = vtanh.f32 %v419_v62 }
 0x776   :  { %v599_v7 = vpop.f32.mrf.mxu1 }
 0x777   :  { %v622_v2 = vadd.f32 %v599_v7, %v984_v44  ;;  %v602_v18 = vadd.f32 %v599_v7, %v577_v17 }
 0x779   :  { %v811_v0 = vpop.eup %810  ;;  %624 = vrot.lane.b32.xlu0 %v622_v2, %s855_s19  ;;  %v767_v19 = vmul.f32 -1.442695, %v602_v18 }
 0x77a   :  { %v421_v3 = vmul.f32 1.442695, %v811_v0 }
 0x77c   :  { %812 = vpow2.f32 %v421_v3 }
 0x77d   :  { %814 = vpow2.f32 %v560_v1 }
 0x77e   :  { %816 = vpow2.f32 %v767_v19 }
 0x781   :  { %640 = vrot.lane.b32.xlu0 %v578_v33, %s856_s4  ;;  %v693_v33 = vpop.f32.mrf.mxu3 }
 0x782   :  { %v813_v5 = vpop.eup %812 }
 0x783   :  { %v424_v8 = vadd.f32 %v813_v5, %v423_v4  ;;  %v427_v9 = vmul.f32 %v813_v5, %v373_v30  ;;  %v815_v10 = vpop.eup %814  ;;  %v431_v41 = vmul.f32 %v813_v5, %v1004_v43 }
 0x784   :  { %v570_v44 = vmul.f32 %v815_v10, %v506_v51  ;;  %v566_v13 = vmul.f32 %v815_v10, %v1043_v31  ;;  %v817_v20 = vpop.eup %816 }
 0x785   :  { %425 = vst.msk [vmem:[#allocation5] sm:$0x3] %vm62_vm8, %v424_v8  ;;  %v428_v11 = vadd.f32 %v427_v9, %v426_v6  ;;  %v606_v21 = vadd.f32 1.0, %v817_v20 }
 0x787   :  { %429 = vst.msk [vmem:[#allocation6] sm:$0x3] %vm59_vm0, %v428_v11  ;;  %818 = vrcp.f32 %v606_v21  ;;  %v618_v26 = vand.u32 2147483648, %v606_v21  ;;  %vm612_vm10 = vweird.f32 %v606_v21  ;;  %v616_v27 = vand.u32 2147483647, %v606_v21 }
 0x789   :  { %572 = vrot.lane.b32.xlu0 %v570_v44, %s857_s21  ;;  %v619_v29 = vor.u32 1.1754944e-38, %v618_v26  ;;  %vm617_vm12 = vcmp.eq.f32.partialorder %v616_v27, 8.507059e+37 }
 0x78c   :  { %v562_v12 = vld [vmem:[#allocation5] sm:$0x3] }
 0x78d   :  { %v563_v14 = vadd.f32 %v815_v10, %v562_v12  ;;  %v819_v22 = vpop.eup %818 }
 0x78e   :  { %v565_v15 = vld [vmem:[#allocation6] sm:$0x3]  ;;  %v608_v23 = vmul.f32 %v819_v22, %v606_v21  ;;  %vm613_vm9 = vweird.f32 %v819_v22 }
 0x78f   :  { %564 = vst.msk [vmem:[#allocation5] sm:$0x3] %vm62_vm8, %v563_v14  ;;  %v567_v16 = vadd.f32 %v566_v13, %v565_v15  ;;  %vm614_vm11 = vmor %vm612_vm10, %vm613_vm9 }
 0x790   :  { %v609_v31 = vsub.f32 1.0, %v608_v23 }
 0x791   :  { %568 = vst.msk [vmem:[#allocation6] sm:$0x3] %vm59_vm0, %v567_v16 }
 0x792   :  { %v610_v24 = vmul.f32 %v819_v22, %v609_v31 }
 0x794   :  { %v611_v25 = vadd.f32 %v819_v22, %v610_v24 }
 0x796   :  { %v615_v28 = vsel %vm614_vm11, %v819_v22, %v611_v25  ;;  %v700_v61 = vld [vmem:[#allocation5] sm:$0x3] }
 0x797   :  { %v620_v36 = vsel %vm617_vm12, %v619_v29, %v615_v28 }
 0x798   :  { %v634_v35 = vsub.f32 1.0, %v620_v36  ;;  %v703_v2 = vld [vmem:[#allocation6] sm:$0x3] }
 0x7eb   :  { %v625_v32 = vpop.permute.xlu0 %624 }
 0x7ec   :  { %v627_v37 = vmul.f32 %v625_v32, %v620_v36 }
 0x7ee   :  { %629 = vrot.lane.b32.xlu1 %v627_v37, %s855_s19  ;;  %s737_s19 = sshll.u32 %s858_s1, 4  ;;  %s738_s19 = int_to_ptr.vmem [resolvable:$true] %s737_s19 }
 0x7f3   :  { %v641_v42 = vpop.permute.xlu0 %640 }
 0x7f4   :  { %v643_v46 = vmul.f32 %v641_v42, %v620_v36 }
 0x7fb   :  { %v573_v52 = vpop.permute.xlu0 %572 }
 0x860   :  { %v630_v38 = vpop.permute.xlu1 %629 }
 0x861   :  { %v632_v39 = vadd.f32 %v630_v38, %v577_v17 }
 0x863   :  { %820 = vtanh.f32 %v632_v39 }
 0x869   :  { %v821_v40 = vpop.eup %820 }
 0x86a   :  { %636 = vrot.lane.b32.xlu2 %v821_v40, %s857_s21 }
 0x872   :  { %433 = vrot.lane.b32.xlu2 %v431_v41, %s857_s21 }
 0x8c4   :  { %v637_v45 = vpop.permute.xlu2 %636 }
 0x8c5   :  { %v639_v47 = vmul.f32 %v637_v45, %v634_v35 }
 0x8c7   :  { %v644_v48 = vadd.f32 %v643_v46, %v639_v47 }
 0x8c9   :  { %646 = vrot.lane.b32.xlu1 %v644_v48, %s857_s21 }
 0x8cc   :  { %v434_v50 = vpop.permute.xlu2 %433 }
 0x8cd   :  { %v436_v51 = vadd.f32 %v434_v50, %v430_v49 }
 0x8cf   :  { %437 = vst.msk [vmem:[#allocation7] sm:$0x3] %vm59_vm0, %v436_v51 }
 0x8d6   :  { %v569_v54 = vld [vmem:[#allocation7] sm:$0x3] }
 0x8d7   :  { %v575_v30 = vadd.f32 %v573_v52, %v569_v54 }
 0x8d9   :  { %576 = vst.msk [vmem:[#allocation7] sm:$0x3] %vm59_vm0, %v575_v30 }
 0x93b   :  { %v647_v43 = vpop.permute.xlu1 %646 }
 0x93c   :  { %649 = vst.msk [vmem:[#allocation3] sm:$0x3] %vm59_vm0, %v647_v43  ;;  %768 = vmatmul.msk.f32.vlgmr.msra.gmra.mxu2 %vm68_vm1, %v647_v43  ;;  %vm730_vm1 = vcmask 517376  }
 0x9bf   :  { %v670_v34 = vpop.f32.mrf.mxu2 }
 0x9c0   :  { %v694_v55 = vadd.f32 %v693_v33, %v670_v34 }
 0x9c2   :  { %v696_v56 = vadd.f32 %v1083_v57, %v694_v55 }
 0x9c4   :  { %822 = vtanh.f32 %v696_v56 }
 0x9ca   :  { %v823_v58 = vpop.eup %822 }
 0x9cb   :  { %v698_v59 = vmul.f32 1.442695, %v823_v58 }
 0x9cd   :  { %824 = vpow2.f32 %v698_v59 }
 0x9d3   :  { %v825_v60 = vpop.eup %824 }
 0x9d4   :  { %v701_v62 = vadd.f32 %v825_v60, %v700_v61  ;;  %v704_v7 = vmul.f32 %v825_v60, %v1070_v53  ;;  %v708_v63 = vmul.f32 %v825_v60, %v644_v48  ;;  %v707_v53 = vld [vmem:[#allocation7] sm:$0x3] }
 0x9d6   :  { %702 = vst.msk [vmem:[#allocation5] sm:$0x3] %vm62_vm8, %v701_v62  ;;  %v705_v0 = vadd.f32 %v704_v7, %v703_v2  ;;  %710 = vrot.lane.b32.xlu1 %v708_v63, %s857_s21 }
 0x9d8   :  { %706 = vst.msk [vmem:[#allocation6] sm:$0x3] %vm59_vm0, %v705_v0 }
 0x9dd   :  { %v715_v1 = vld [vmem:[#allocation5] sm:$0x3] }
 0x9de   :  { %826 = vrcp.f32 %v715_v1 }
 0x9df   :  { %v717_v3 = vld [vmem:[#allocation6] sm:$0x3] }
 0x9e4   :  { %v827_v57 = vpop.eup %826 }
 0x9e5   :  { %722 = vrot.lane.b32.xlu2 %v827_v57, %s857_s21  ;;  %v718_v4 = vmul.f32 %v827_v57, %v717_v3 }
 0x9e7   :  { %719 = vst.msk [vmem:[#allocation8] sm:$0x3] %vm59_vm0, %v718_v4 }
 0xa3f   :  { %v723_v8 = vpop.permute.xlu2 %722 }
 0xa48   :  { %v711_v5 = vpop.permute.xlu1 %710 }
 0xa49   :  { %v713_v6 = vadd.f32 %v711_v5, %v707_v53 }
 0xa4b   :  { %714 = vst.msk [vmem:[#allocation7] sm:$0x3] %vm59_vm0, %v713_v6 }
 0xa52   :  { %v720_v9 = vld [vmem:[#allocation7] sm:$0x3] }
 0xa53   :  { %v725_v10 = vmul.f32 %v723_v8, %v720_v9 }
 0xa55   :  { %727 = vrot.lane.b32.xlu0 %v725_v10, %s856_s4 }
 0xac7   :  { %v728_v11 = vpop.permute.xlu0 %727 }
 0xac8   :  { %731 = vst.msk [vmem:[#allocation8] sm:$0x3] %vm730_vm1, %v728_v11 }
 0xac9   :  { %742 = dma.vmem_to_hbm [thread:$0]  %s738_s19, 32, %s740_s13, [#allocation9]  }
 0xaca   :  { %852 = dma.done.wait [#allocation9], 32  }
 0xacb   :  { %853 = vsyncadd [#allocation9], 4294967264 }
 0xacc   :  { %747 = vsyncpa [#allocation9], 1 }

// kernel: sent_gru_forward.2
= control target key start
LH: loop header
LB: loop body
LE: loop exit
PB: predicated region body
PF: predicated region fallthrough
CT: control target
= control target key end

     0   :  { %vm58_vm0 = vcmask 259072   ;;  %v2009_v2 = vmov 0.0   ;;  %s2010_s19 = smov 64   ;;  %vm67_vm1 = vcmask 261120   ;;  %s2012_s21 = smov 96   ;;  %s2610_s2 = inlined_call_operand.vmem [shape: f32[32,96], index: 2, kind: input, shape index: {}]   ;;  %s2611_s4 = inlined_call_operand.vmem [shape: f32[1,32], index: 4, kind: input, shape index: {}]   ;;  %s2612_s0 = inlined_call_operand.vmem [shape: f32[8,6,96], index: 0, kind: input, shape index: {}]   ;;  %s2613_s5 = inlined_call_operand.vmem [shape: f32[1,32], index: 5, kind: input, shape index: {}]   ;;  %s2614_s3 = inlined_call_operand.vmem [shape: f32[32,96], index: 3, kind: input, shape index: {}]   ;;  %s2615_s1 = inlined_call_operand.vmem [shape: f32[8,6,96], index: 1, kind: input, shape index: {}]   ;;  %s2616_s7 = inlined_call_operand.vmem [shape: f32[32,64], index: 7, kind: input, shape index: {}]   ;;  %s2617_s6 = inlined_call_operand.vmem [shape: f32[32,64], index: 6, kind: input, shape index: {}]   ;;  %s2618_s8 = inlined_call_operand.vmem [shape: f32[1,64], index: 8, kind: input, shape index: {}]   ;;  %s2619_s9 = inlined_call_operand.vmem [shape: f32[6,64], index: 9, kind: output, shape index: {}]  }
   0x1   :  { %v35_v0 = vld [vmem:[%s2610_s2 + $0x18] sm:$0xff]  ;;  %v34_v1 = vld [vmem:[%s2610_s2 + $0x10] sm:$0xff]  ;;  %59 = vst.msk [vmem:[#allocation2] sm:$0x3f] %vm58_vm0, %v2009_v2  ;;  %v33_v3 = vld [vmem:[%s2610_s2 + $0x8] sm:$0xff] }
   0x2   :  { %83 = vmatpush.msra.mxu0 %v35_v0  ;;  %60 = vst.msk [vmem:[#allocation3] sm:$0x3f] %vm58_vm0, %v2009_v2  ;;  %161 = vmatpush.msra.mxu1 %v35_v0  ;;  %v1876_v4 = vld [vmem:[%s2611_s4] ss:$0 sm:$0xff]  ;;  %s2011_s4 = smov 32  }
   0x3   :  { %63 = vst.msk [vmem:[#allocation6] sm:$0x3f] %vm58_vm0, %v2009_v2  ;;  %237 = vmatpush.msra.mxu2 %v35_v0  ;;  %313 = vmatpush.msra.mxu3 %v35_v0  ;;  %v32_v5 = vld [vmem:[%s2610_s2] sm:$0xff]  ;;  %v1812_v40 = vld [vmem:[%s2612_s0 + $0x8] sm:$0x3f] }
   0x4   :  { %84 = vmatpush.msra.mxu0 %v34_v1  ;;  %64 = vst.msk [vmem:[#allocation7] sm:$0x3f] %vm58_vm0, %v2009_v2  ;;  %162 = vmatpush.msra.mxu1 %v34_v1  ;;  %v65_v10 = vld [vmem:[%s2612_s0] sm:$0x3f] }
   0x5   :  { %111 = vrot.lane.b32.xlu0 %v1876_v4, %s2010_s19  ;;  %238 = vmatpush.msra.mxu2 %v34_v1 }
   0x6   :  { %85 = vmatpush.msra.mxu0 %v33_v3  ;;  %163 = vmatpush.msra.mxu1 %v33_v3 }
   0x7   :  { %239 = vmatpush.msra.mxu2 %v33_v3  ;;  %314 = vmatpush.msra.mxu3 %v34_v1 }
   0x8   :  { %86 = vmatpush.msra.mxu0 %v32_v5  ;;  %v66_v6 = vld [vmem:[#allocation2] sm:$0x3f]  ;;  %164 = vmatpush.msra.mxu1 %v32_v5 }
   0x9   :  { %1810 = vmatmul.msk.f32.vlgmr.msra.gmra.mxu0 %vm67_vm1, %v66_v6  ;;  %132 = vrot.lane.b32.xlu2 %v66_v6, %s2011_s4 }
   0xa   :  { %240 = vmatpush.msra.mxu2 %v32_v5  ;;  %315 = vmatpush.msra.mxu3 %v33_v3 }
   0xb   :  { %389 = vmatpush.msrb.mxu0 %v35_v0  ;;  %465 = vmatpush.msrb.mxu1 %v35_v0 }
   0xc   :  { %316 = vmatpush.msra.mxu3 %v32_v5  ;;  %541 = vmatpush.msrb.mxu2 %v35_v0 }
   0xd   :  { %390 = vmatpush.msrb.mxu0 %v34_v1  ;;  %466 = vmatpush.msrb.mxu1 %v34_v1 }
   0xe   :  { %542 = vmatpush.msrb.mxu2 %v34_v1  ;;  %617 = vmatpush.msrb.mxu3 %v35_v0 }
   0xf   :  { %391 = vmatpush.msrb.mxu0 %v33_v3  ;;  %467 = vmatpush.msrb.mxu1 %v33_v3 }
  0x10   :  { %543 = vmatpush.msrb.mxu2 %v33_v3  ;;  %618 = vmatpush.msrb.mxu3 %v34_v1 }
  0x11   :  { %392 = vmatpush.msrb.mxu0 %v32_v5  ;;  %468 = vmatpush.msrb.mxu1 %v32_v5 }
  0x12   :  { %544 = vmatpush.msrb.mxu2 %v32_v5  ;;  %619 = vmatpush.msrb.mxu3 %v33_v3 }
  0x14   :  { %620 = vmatpush.msrb.mxu3 %v32_v5 }
  0x63   :  { %v133_v30 = vpop.permute.xlu2 %132 }
  0x77   :  { %v2089_v7 = vpop.permute.xlu0 %111 }
  0x86   :  { %v88_v8 = vpop.f32.mrf.mxu0 }
  0x87   :  { %v114_v9 = vadd.f32 %v2089_v7, %v88_v8  ;;  %v91_v11 = vadd.f32 %v88_v8, %v65_v10  ;;  %v1815_v8 = vld [vmem:[%s2612_s0 + $0x10] sm:$0x3f] }
  0x89   :  { %116 = vrot.lane.b32.xlu0 %v114_v9, %s2010_s19  ;;  %v1811_v12 = vmul.f32 -1.442695, %v91_v11 }
  0x8b   :  { %1879 = vpow2.f32 %v1811_v12 }
  0x91   :  { %v1880_v13 = vpop.eup %1879 }
  0x92   :  { %v95_v14 = vadd.f32 1.0, %v1880_v13 }
  0x94   :  { %1881 = vrcp.f32 %v95_v14  ;;  %v107_v20 = vand.u32 2147483648, %v95_v14  ;;  %vm101_vm3 = vweird.f32 %v95_v14  ;;  %v105_v21 = vand.u32 2147483647, %v95_v14 }
  0x96   :  { %v108_v23 = vor.u32 1.1754944e-38, %v107_v20  ;;  %vm106_vm5 = vcmp.eq.f32.partialorder %v105_v21, 8.507059e+37 }
  0x9a   :  { %v1882_v15 = vpop.eup %1881 }
  0x9b   :  { %v97_v16 = vmul.f32 %v1882_v15, %v95_v14  ;;  %vm102_vm2 = vweird.f32 %v1882_v15 }
  0x9c   :  { %vm103_vm4 = vmor %vm101_vm3, %vm102_vm2 }
  0x9d   :  { %v98_v17 = vsub.f32 1.0, %v97_v16 }
  0x9f   :  { %v99_v18 = vmul.f32 %v1882_v15, %v98_v17 }
  0xa1   :  { %v100_v19 = vadd.f32 %v1882_v15, %v99_v18 }
  0xa3   :  { %v104_v22 = vsel %vm103_vm4, %v1882_v15, %v100_v19 }
  0xa4   :  { %v109_v24 = vsel %vm106_vm5, %v108_v23, %v104_v22 }
  0xa5   :  { %v126_v31 = vsub.f32 1.0, %v109_v24  ;;  %v135_v33 = vmul.f32 %v133_v30, %v109_v24 }
  0xfb   :  { %v117_v25 = vpop.permute.xlu0 %116 }
  0xfc   :  { %v119_v26 = vmul.f32 %v117_v25, %v109_v24 }
  0xfe   :  { %121 = vrot.lane.b32.xlu1 %v119_v26, %s2010_s19 }
 0x170   :  { %v122_v27 = vpop.permute.xlu1 %121 }
 0x171   :  { %v124_v28 = vadd.f32 %v122_v27, %v65_v10 }
 0x173   :  { %1883 = vtanh.f32 %v124_v28 }
 0x179   :  { %v1884_v29 = vpop.eup %1883 }
 0x17a   :  { %128 = vrot.lane.b32.xlu1 %v1884_v29, %s2012_s21 }
 0x1ec   :  { %v129_v32 = vpop.permute.xlu1 %128 }
 0x1ed   :  { %v131_v34 = vmul.f32 %v129_v32, %v126_v31 }
 0x1ef   :  { %v136_v35 = vadd.f32 %v135_v33, %v131_v34 }
 0x1f1   :  { %138 = vrot.lane.b32.xlu2 %v136_v35, %s2012_s21 }
 0x24b   :  { %v139_v36 = vpop.permute.xlu2 %138 }
 0x24c   :  { %141 = vst.msk [vmem:[#allocation2] sm:$0x3f] %vm58_vm0, %v139_v36 }
 0x24d   :  { %142 = vst.msk [vmem:[#allocation4] sm:$0x3f] %vm58_vm0, %v139_v36 }
 0x253   :  { %v145_v37 = vld [vmem:[#allocation2] sm:$0x3f] }
 0x254   :  { %1813 = vmatmul.msk.f32.vlgmr.msra.gmra.mxu1 %vm67_vm1, %v145_v37 }
 0x2d1   :  { %v166_v38 = vpop.f32.mrf.mxu1 }
 0x2d2   :  { %v189_v39 = vadd.f32 %v166_v38, %v2089_v7  ;;  %v169_v41 = vadd.f32 %v1812_v40, %v166_v38  ;;  %v1818_v38 = vld [vmem:[%s2612_s0 + $0x18] sm:$0x3f] }
 0x2d4   :  { %191 = vrot.lane.b32.xlu0 %v189_v39, %s2010_s19  ;;  %v1814_v42 = vmul.f32 -1.442695, %v169_v41 }
 0x2d6   :  { %1885 = vpow2.f32 %v1814_v42 }
 0x2dc   :  { %207 = vrot.lane.b32.xlu0 %v145_v37, %s2011_s4  ;;  %v1886_v43 = vpop.eup %1885 }
 0x2dd   :  { %v173_v44 = vadd.f32 1.0, %v1886_v43 }
 0x2df   :  { %1887 = vrcp.f32 %v173_v44  ;;  %v185_v50 = vand.u32 2147483648, %v173_v44  ;;  %vm179_vm7 = vweird.f32 %v173_v44  ;;  %v183_v51 = vand.u32 2147483647, %v173_v44 }
 0x2e1   :  { %v186_v53 = vor.u32 1.1754944e-38, %v185_v50  ;;  %vm184_vm9 = vcmp.eq.f32.partialorder %v183_v51, 8.507059e+37 }
 0x2e5   :  { %v1888_v45 = vpop.eup %1887 }
 0x2e6   :  { %v175_v46 = vmul.f32 %v1888_v45, %v173_v44  ;;  %vm180_vm6 = vweird.f32 %v1888_v45 }
 0x2e7   :  { %vm181_vm8 = vmor %vm179_vm7, %vm180_vm6 }
 0x2e8   :  { %v176_v47 = vsub.f32 1.0, %v175_v46 }
 0x2ea   :  { %v177_v48 = vmul.f32 %v1888_v45, %v176_v47 }
 0x2ec   :  { %v178_v49 = vadd.f32 %v1888_v45, %v177_v48 }
 0x2ee   :  { %v182_v52 = vsel %vm181_vm8, %v1888_v45, %v178_v49 }
 0x2ef   :  { %v187_v55 = vsel %vm184_vm9, %v186_v53, %v182_v52 }
 0x2f0   :  { %v201_v61 = vsub.f32 1.0, %v187_v55 }
 0x346   :  { %v192_v54 = vpop.permute.xlu0 %191 }
 0x347   :  { %v194_v56 = vmul.f32 %v192_v54, %v187_v55 }
 0x349   :  { %196 = vrot.lane.b32.xlu1 %v194_v56, %s2010_s19 }
 0x34e   :  { %v208_v60 = vpop.permute.xlu0 %207 }
 0x34f   :  { %v210_v63 = vmul.f32 %v208_v60, %v187_v55 }
 0x3bb   :  { %v197_v57 = vpop.permute.xlu1 %196 }
 0x3bc   :  { %v199_v58 = vadd.f32 %v1812_v40, %v197_v57 }
 0x3be   :  { %1889 = vtanh.f32 %v199_v58 }
 0x3c4   :  { %v1890_v59 = vpop.eup %1889 }
 0x3c5   :  { %203 = vrot.lane.b32.xlu2 %v1890_v59, %s2012_s21 }
 0x41f   :  { %v204_v62 = vpop.permute.xlu2 %203 }
 0x420   :  { %v206_v0 = vmul.f32 %v204_v62, %v201_v61 }
 0x422   :  { %v211_v1 = vadd.f32 %v210_v63, %v206_v0 }
 0x424   :  { %213 = vrot.lane.b32.xlu1 %v211_v1, %s2012_s21 }
 0x496   :  { %v214_v3 = vpop.permute.xlu1 %213 }
 0x497   :  { %216 = vst.msk [vmem:[#allocation2] sm:$0x3f] %vm58_vm0, %v214_v3 }
 0x498   :  { %218 = vst.msk [vmem:[#allocation4 + $0x8] sm:$0x3f] %vm58_vm0, %v214_v3 }
 0x49e   :  { %v221_v4 = vld [vmem:[#allocation2] sm:$0x3f] }
 0x49f   :  { %1816 = vmatmul.msk.f32.vlgmr.msra.gmra.mxu2 %vm67_vm1, %v221_v4 }
 0x522   :  { %v242_v5 = vpop.f32.mrf.mxu2 }
 0x523   :  { %v265_v6 = vadd.f32 %v242_v5, %v2089_v7  ;;  %v245_v9 = vadd.f32 %v1815_v8, %v242_v5  ;;  %v1821_v5 = vld [vmem:[%s2612_s0 + $0x20] sm:$0x3f] }
 0x525   :  { %267 = vrot.lane.b32.xlu2 %v265_v6, %s2010_s19  ;;  %v1817_v10 = vmul.f32 -1.442695, %v245_v9 }
 0x527   :  { %1891 = vpow2.f32 %v1817_v10 }
 0x52d   :  { %283 = vrot.lane.b32.xlu2 %v221_v4, %s2011_s4  ;;  %v1892_v11 = vpop.eup %1891 }
 0x52e   :  { %v249_v12 = vadd.f32 1.0, %v1892_v11 }
 0x530   :  { %1893 = vrcp.f32 %v249_v12  ;;  %v261_v18 = vand.u32 2147483648, %v249_v12  ;;  %vm255_vm11 = vweird.f32 %v249_v12  ;;  %v259_v19 = vand.u32 2147483647, %v249_v12 }
 0x532   :  { %v262_v21 = vor.u32 1.1754944e-38, %v261_v18  ;;  %vm260_vm13 = vcmp.eq.f32.partialorder %v259_v19, 8.507059e+37 }
 0x536   :  { %v1894_v13 = vpop.eup %1893 }
 0x537   :  { %v251_v14 = vmul.f32 %v1894_v13, %v249_v12  ;;  %vm256_vm10 = vweird.f32 %v1894_v13 }
 0x538   :  { %vm257_vm12 = vmor %vm255_vm11, %vm256_vm10 }
 0x539   :  { %v252_v15 = vsub.f32 1.0, %v251_v14 }
 0x53b   :  { %v253_v16 = vmul.f32 %v1894_v13, %v252_v15 }
 0x53d   :  { %v254_v17 = vadd.f32 %v1894_v13, %v253_v16 }
 0x53f   :  { %v258_v20 = vsel %vm257_vm12, %v1894_v13, %v254_v17 }
 0x540   :  { %v263_v23 = vsel %vm260_vm13, %v262_v21, %v258_v20 }
 0x541   :  { %v277_v29 = vsub.f32 1.0, %v263_v23 }
 0x57f   :  { %v268_v22 = vpop.permute.xlu2 %267 }
 0x580   :  { %v270_v24 = vmul.f32 %v268_v22, %v263_v23 }
 0x582   :  { %272 = vrot.lane.b32.xlu0 %v270_v24, %s2010_s19 }
 0x587   :  { %v284_v28 = vpop.permute.xlu2 %283 }
 0x588   :  { %v286_v31 = vmul.f32 %v284_v28, %v263_v23 }
 0x5f4   :  { %v273_v25 = vpop.permute.xlu0 %272 }
 0x5f5   :  { %v275_v26 = vadd.f32 %v1815_v8, %v273_v25 }
 0x5f7   :  { %1895 = vtanh.f32 %v275_v26 }
 0x5fd   :  { %v1896_v27 = vpop.eup %1895 }
 0x5fe   :  { %279 = vrot.lane.b32.xlu1 %v1896_v27, %s2012_s21 }
 0x670   :  { %v280_v30 = vpop.permute.xlu1 %279 }
 0x671   :  { %v282_v32 = vmul.f32 %v280_v30, %v277_v29 }
 0x673   :  { %v287_v33 = vadd.f32 %v286_v31, %v282_v32 }
 0x675   :  { %289 = vrot.lane.b32.xlu0 %v287_v33, %s2012_s21 }
 0x6e7   :  { %v290_v34 = vpop.permute.xlu0 %289 }
 0x6e8   :  { %292 = vst.msk [vmem:[#allocation2] sm:$0x3f] %vm58_vm0, %v290_v34 }
 0x6e9   :  { %294 = vst.msk [vmem:[#allocation4 + $0x10] sm:$0x3f] %vm58_vm0, %v290_v34 }
 0x6ef   :  { %v297_v35 = vld [vmem:[#allocation2] sm:$0x3f] }
 0x6f0   :  { %1819 = vmatmul.msk.f32.vlgmr.msra.gmra.mxu3 %vm67_vm1, %v297_v35 }
 0x773   :  { %v318_v36 = vpop.f32.mrf.mxu3 }
 0x774   :  { %v341_v37 = vadd.f32 %v318_v36, %v2089_v7  ;;  %v321_v39 = vadd.f32 %v1818_v38, %v318_v36  ;;  %v1824_v36 = vld [vmem:[%s2612_s0 + $0x28] sm:$0x3f] }
 0x776   :  { %343 = vrot.lane.b32.xlu1 %v341_v37, %s2010_s19  ;;  %v1820_v40 = vmul.f32 -1.442695, %v321_v39 }
 0x778   :  { %1897 = vpow2.f32 %v1820_v40 }
 0x77e   :  { %359 = vrot.lane.b32.xlu1 %v297_v35, %s2011_s4  ;;  %v1898_v41 = vpop.eup %1897 }
 0x77f   :  { %v325_v42 = vadd.f32 1.0, %v1898_v41 }
 0x781   :  { %1899 = vrcp.f32 %v325_v42  ;;  %v337_v48 = vand.u32 2147483648, %v325_v42  ;;  %vm331_vm15 = vweird.f32 %v325_v42  ;;  %v335_v49 = vand.u32 2147483647, %v325_v42 }
 0x783   :  { %v338_v51 = vor.u32 1.1754944e-38, %v337_v48  ;;  %vm336_vm3 = vcmp.eq.f32.partialorder %v335_v49, 8.507059e+37 }
 0x787   :  { %v1900_v43 = vpop.eup %1899 }
 0x788   :  { %v327_v44 = vmul.f32 %v1900_v43, %v325_v42  ;;  %vm332_vm14 = vweird.f32 %v1900_v43 }
 0x789   :  { %vm333_vm2 = vmor %vm331_vm15, %vm332_vm14 }
 0x78a   :  { %v328_v45 = vsub.f32 1.0, %v327_v44 }
 0x78c   :  { %v329_v46 = vmul.f32 %v1900_v43, %v328_v45 }
 0x78e   :  { %v330_v47 = vadd.f32 %v1900_v43, %v329_v46 }
 0x790   :  { %v334_v50 = vsel %vm333_vm2, %v1900_v43, %v330_v47 }
 0x791   :  { %v339_v53 = vsel %vm336_vm3, %v338_v51, %v334_v50 }
 0x792   :  { %v353_v59 = vsub.f32 1.0, %v339_v53 }
 0x7e8   :  { %v344_v52 = vpop.permute.xlu1 %343 }
 0x7e9   :  { %v346_v54 = vmul.f32 %v344_v52, %v339_v53 }
 0x7eb   :  { %348 = vrot.lane.b32.xlu2 %v346_v54, %s2010_s19 }
 0x7f0   :  { %v360_v58 = vpop.permute.xlu1 %359 }
 0x7f1   :  { %v362_v61 = vmul.f32 %v360_v58, %v339_v53  ;;  %v1877_v58 = vld [vmem:[%s2613_s5] ss:$0 sm:$0xff] }
 0x845   :  { %v349_v55 = vpop.permute.xlu2 %348 }
 0x846   :  { %v351_v56 = vadd.f32 %v1818_v38, %v349_v55 }
 0x848   :  { %1901 = vtanh.f32 %v351_v56  ;;  %v2161_v56 = vld [vmem:[%s2614_s3 + $0x18] sm:$0xff] }
 0x849   :  { %693 = vmatpush.msra.mxu0 %v2161_v56  ;;  %835 = vmatpush.msra.mxu3 %v2161_v56 }
 0x84e   :  { %v1902_v57 = vpop.eup %1901 }
 0x84f   :  { %355 = vrot.lane.b32.xlu0 %v1902_v57, %s2012_s21  ;;  %v2166_v57 = vld [vmem:[%s2614_s3 + $0x10] sm:$0xff] }
 0x850   :  { %694 = vmatpush.msra.mxu0 %v2166_v57  ;;  %836 = vmatpush.msra.mxu3 %v2166_v57 }
 0x8c1   :  { %v356_v60 = vpop.permute.xlu0 %355 }
 0x8c2   :  { %v358_v62 = vmul.f32 %v356_v60, %v353_v59  ;;  %v2176_v59 = vld [vmem:[%s2614_s3 + $0x8] sm:$0xff]  ;;  %v2183_v60 = vld [vmem:[%s2614_s3] sm:$0xff] }
 0x8c3   :  { %695 = vmatpush.msra.mxu0 %v2176_v59  ;;  %837 = vmatpush.msra.mxu3 %v2176_v59 }
 0x8c4   :  { %v363_v63 = vadd.f32 %v362_v61, %v358_v62  ;;  %v2187_v61 = vld [vmem:[#allocation3] sm:$0x3f] }
 0x8c5   :  { %696 = vmatpush.msra.mxu0 %v2183_v60  ;;  %838 = vmatpush.msra.mxu3 %v2183_v60 }
 0x8c6   :  { %365 = vrot.lane.b32.xlu2 %v363_v63, %s2012_s21 }
 0x920   :  { %v366_v0 = vpop.permute.xlu2 %365 }
 0x921   :  { %368 = vst.msk [vmem:[#allocation2] sm:$0x3f] %vm58_vm0, %v366_v0 }
 0x922   :  { %370 = vst.msk [vmem:[#allocation4 + $0x18] sm:$0x3f] %vm58_vm0, %v366_v0 }
 0x928   :  { %v373_v1 = vld [vmem:[#allocation2] sm:$0x3f] }
 0x929   :  { %1822 = vmatmul.msk.f32.vlgmr.msrb.gmra.mxu0 %vm67_vm1, %v373_v1 }
 0x931   :  { %1834 = vmatmul.msk.f32.vlgmr.msra.gmra.mxu0 %vm67_vm1, %v2187_v61 }
 0x9a6   :  { %v394_v3 = vpop.f32.mrf.mxu0 }
 0x9a7   :  { %v417_v4 = vadd.f32 %v394_v3, %v2089_v7  ;;  %v397_v6 = vadd.f32 %v1821_v5, %v394_v3 }
 0x9a9   :  { %419 = vrot.lane.b32.xlu0 %v417_v4, %s2010_s19  ;;  %v1823_v8 = vmul.f32 -1.442695, %v397_v6 }
 0x9ab   :  { %1903 = vpow2.f32 %v1823_v8 }
 0x9ae   :  { %v698_v6 = vpop.f32.mrf.mxu0 }
 0x9b1   :  { %435 = vrot.lane.b32.xlu0 %v373_v1, %s2011_s4  ;;  %v1904_v9 = vpop.eup %1903 }
 0x9b2   :  { %v401_v10 = vadd.f32 1.0, %v1904_v9 }
 0x9b4   :  { %1905 = vrcp.f32 %v401_v10  ;;  %v413_v16 = vand.u32 2147483648, %v401_v10  ;;  %vm407_vm5 = vweird.f32 %v401_v10  ;;  %v411_v17 = vand.u32 2147483647, %v401_v10 }
 0x9b6   :  { %v414_v19 = vor.u32 1.1754944e-38, %v413_v16  ;;  %vm412_vm7 = vcmp.eq.f32.partialorder %v411_v17, 8.507059e+37 }
 0x9ba   :  { %v1906_v11 = vpop.eup %1905 }
 0x9bb   :  { %v403_v12 = vmul.f32 %v1906_v11, %v401_v10  ;;  %vm408_vm4 = vweird.f32 %v1906_v11 }
 0x9bc   :  { %vm409_vm6 = vmor %vm407_vm5, %vm408_vm4 }
 0x9bd   :  { %v404_v13 = vsub.f32 1.0, %v403_v12 }
 0x9bf   :  { %v405_v14 = vmul.f32 %v1906_v11, %v404_v13 }
 0x9c1   :  { %v406_v15 = vadd.f32 %v1906_v11, %v405_v14 }
 0x9c3   :  { %v410_v18 = vsel %vm409_vm6, %v1906_v11, %v406_v15  ;;  %v1833_v11 = vld [vmem:[%s2615_s1 + $0x38] sm:$0x3f] }
 0x9c4   :  { %v415_v21 = vsel %vm412_vm7, %v414_v19, %v410_v18  ;;  %v701_v12 = vadd.f32 %v1833_v11, %v698_v6 }
 0x9c5   :  { %v429_v27 = vsub.f32 1.0, %v415_v21 }
 0x9c6   :  { %v1835_v13 = vmul.f32 -1.442695, %v701_v12  ;;  %v2258_v12 = vld [vmem:[%s2617_s6 + $0x18] sm:$0xff] }
 0x9c7   :  { %790 = vmatpush.msra.mxu2 %v2258_v12 }
 0xa1b   :  { %v420_v20 = vpop.permute.xlu0 %419 }
 0xa1c   :  { %v422_v22 = vmul.f32 %v420_v20, %v415_v21 }
 0xa1e   :  { %424 = vrot.lane.b32.xlu1 %v422_v22, %s2010_s19 }
 0xa23   :  { %v436_v26 = vpop.permute.xlu0 %435 }
 0xa24   :  { %v438_v29 = vmul.f32 %v436_v26, %v415_v21 }
 0xa90   :  { %v425_v23 = vpop.permute.xlu1 %424 }
 0xa91   :  { %v427_v24 = vadd.f32 %v1821_v5, %v425_v23 }
 0xa93   :  { %1907 = vtanh.f32 %v427_v24 }
 0xa99   :  { %v1908_v25 = vpop.eup %1907 }
 0xa9a   :  { %431 = vrot.lane.b32.xlu2 %v1908_v25, %s2012_s21 }
 0xaf4   :  { %v432_v28 = vpop.permute.xlu2 %431 }
 0xaf5   :  { %v434_v30 = vmul.f32 %v432_v28, %v429_v27 }
 0xaf7   :  { %v439_v31 = vadd.f32 %v438_v29, %v434_v30  ;;  %v1827_v30 = vld [vmem:[%s2612_s0 + $0x30] sm:$0x3f] }
 0xaf9   :  { %441 = vrot.lane.b32.xlu1 %v439_v31, %s2012_s21 }
 0xb6b   :  { %v442_v32 = vpop.permute.xlu1 %441 }
 0xb6c   :  { %444 = vst.msk [vmem:[#allocation2] sm:$0x3f] %vm58_vm0, %v442_v32 }
 0xb6d   :  { %446 = vst.msk [vmem:[#allocation4 + $0x20] sm:$0x3f] %vm58_vm0, %v442_v32 }
 0xb73   :  { %v449_v33 = vld [vmem:[#allocation2] sm:$0x3f] }
 0xb74   :  { %1825 = vmatmul.msk.f32.vlgmr.msrb.gmra.mxu1 %vm67_vm1, %v449_v33 }
 0xbf1   :  { %v470_v34 = vpop.f32.mrf.mxu1 }
 0xbf2   :  { %v493_v35 = vadd.f32 %v470_v34, %v2089_v7  ;;  %v473_v37 = vadd.f32 %v1824_v36, %v470_v34 }
 0xbf4   :  { %495 = vrot.lane.b32.xlu2 %v493_v35, %s2010_s19  ;;  %v1826_v38 = vmul.f32 -1.442695, %v473_v37 }
 0xbf6   :  { %1909 = vpow2.f32 %v1826_v38 }
 0xbfc   :  { %511 = vrot.lane.b32.xlu2 %v449_v33, %s2011_s4  ;;  %v1910_v39 = vpop.eup %1909 }
 0xbfd   :  { %v477_v40 = vadd.f32 1.0, %v1910_v39 }
 0xbff   :  { %1911 = vrcp.f32 %v477_v40  ;;  %v489_v46 = vand.u32 2147483648, %v477_v40  ;;  %vm483_vm9 = vweird.f32 %v477_v40  ;;  %v487_v47 = vand.u32 2147483647, %v477_v40 }
 0xc01   :  { %v490_v49 = vor.u32 1.1754944e-38, %v489_v46  ;;  %vm488_vm11 = vcmp.eq.f32.partialorder %v487_v47, 8.507059e+37 }
 0xc05   :  { %v1912_v41 = vpop.eup %1911 }
 0xc06   :  { %v479_v42 = vmul.f32 %v1912_v41, %v477_v40  ;;  %vm484_vm8 = vweird.f32 %v1912_v41 }
 0xc07   :  { %vm485_vm10 = vmor %vm483_vm9, %vm484_vm8 }
 0xc08   :  { %v480_v43 = vsub.f32 1.0, %v479_v42 }
 0xc0a   :  { %v481_v44 = vmul.f32 %v1912_v41, %v480_v43 }
 0xc0c   :  { %v482_v45 = vadd.f32 %v1912_v41, %v481_v44 }
 0xc0e   :  { %v486_v48 = vsel %vm485_vm10, %v1912_v41, %v482_v45 }
 0xc0f   :  { %v491_v51 = vsel %vm488_vm11, %v490_v49, %v486_v48 }
 0xc10   :  { %v505_v63 = vsub.f32 1.0, %v491_v51 }
 0xc4e   :  { %v496_v50 = vpop.permute.xlu2 %495 }
 0xc4f   :  { %v498_v52 = vmul.f32 %v496_v50, %v491_v51 }
 0xc51   :  { %500 = vrot.lane.b32.xlu0 %v498_v52, %s2010_s19 }
 0xc56   :  { %v512_v62 = vpop.permute.xlu2 %511 }
 0xc57   :  { %v514_v1 = vmul.f32 %v512_v62, %v491_v51 }
 0xcc3   :  { %v501_v53 = vpop.permute.xlu0 %500 }
 0xcc4   :  { %v503_v54 = vadd.f32 %v1824_v36, %v501_v53  ;;  %v2223_v53 = vld [vmem:[%s2616_s7 + $0x18] sm:$0xff] }
 0xcc5   :  { %767 = vmatpush.msra.mxu1 %v2223_v53  ;;  %906 = vmatpush.msrb.mxu0 %v2223_v53 }
 0xcc6   :  { %1913 = vtanh.f32 %v503_v54  ;;  %v2228_v54 = vld [vmem:[%s2616_s7 + $0x10] sm:$0xff] }
 0xcc7   :  { %1915 = vpow2.f32 %v1835_v13  ;;  %768 = vmatpush.msra.mxu1 %v2228_v54  ;;  %907 = vmatpush.msrb.mxu0 %v2228_v54  ;;  %v2263_v13 = vld [vmem:[%s2617_s6 + $0x10] sm:$0xff] }
 0xcc8   :  { %791 = vmatpush.msra.mxu2 %v2263_v13 }
 0xccc   :  { %v1914_v55 = vpop.eup %1913 }
 0xccd   :  { %507 = vrot.lane.b32.xlu1 %v1914_v55, %s2012_s21  ;;  %v1916_v14 = vpop.eup %1915  ;;  %v2235_v55 = vld [vmem:[%s2616_s7 + $0x8] sm:$0xff] }
 0xcce   :  { %v705_v15 = vadd.f32 1.0, %v1916_v14  ;;  %769 = vmatpush.msra.mxu1 %v2235_v55  ;;  %908 = vmatpush.msrb.mxu0 %v2235_v55  ;;  %v2270_v14 = vld [vmem:[%s2617_s6 + $0x8] sm:$0xff] }
 0xccf   :  { %792 = vmatpush.msra.mxu2 %v2270_v14 }
 0xcd0   :  { %1917 = vrcp.f32 %v705_v15  ;;  %vm711_vm12 = vweird.f32 %v705_v15  ;;  %v717_v20 = vand.u32 2147483648, %v705_v15  ;;  %v715_v22 = vand.u32 2147483647, %v705_v15 }
 0xcd2   :  { %v718_v24 = vor.u32 1.1754944e-38, %v717_v20  ;;  %vm716_vm15 = vcmp.eq.f32.partialorder %v715_v22, 8.507059e+37 }
 0xcd5   :  { %721 = vrot.lane.b32.xlu1 %v1877_v58, %s2010_s19  ;;  %v2242_v58 = vld [vmem:[%s2616_s7] sm:$0xff] }
 0xcd6   :  { %v1918_v16 = vpop.eup %1917  ;;  %770 = vmatpush.msra.mxu1 %v2242_v58  ;;  %909 = vmatpush.msrb.mxu0 %v2242_v58 }
 0xcd7   :  { %v707_v17 = vmul.f32 %v1918_v16, %v705_v15  ;;  %vm712_vm13 = vweird.f32 %v1918_v16  ;;  %v2278_v15 = vld [vmem:[%s2617_s6] sm:$0xff] }
 0xcd8   :  { %vm713_vm14 = vmor %vm711_vm12, %vm712_vm13  ;;  %929 = vmatpush.msrb.mxu1 %v2258_v12  ;;  %1068 = vmatpush.msra.mxu0 %v2258_v12 }
 0xcd9   :  { %v708_v18 = vsub.f32 1.0, %v707_v17  ;;  %793 = vmatpush.msra.mxu2 %v2278_v15 }
 0xcda   :  { %930 = vmatpush.msrb.mxu1 %v2263_v13  ;;  %1069 = vmatpush.msra.mxu0 %v2263_v13 }
 0xcdb   :  { %v709_v19 = vmul.f32 %v1918_v16, %v708_v18 }
 0xcdc   :  { %931 = vmatpush.msrb.mxu1 %v2270_v14  ;;  %1070 = vmatpush.msra.mxu0 %v2270_v14 }
 0xcdd   :  { %v710_v21 = vadd.f32 %v1918_v16, %v709_v19 }
 0xcde   :  { %932 = vmatpush.msrb.mxu1 %v2278_v15  ;;  %1071 = vmatpush.msra.mxu0 %v2278_v15 }
 0xcdf   :  { %v714_v26 = vsel %vm713_vm14, %v1918_v16, %v710_v21  ;;  %vm61_vm14 = vcmask 521216  }
 0xce0   :  { %v2207_v27 = vsel %vm716_vm15, %v718_v24, %v714_v26  ;;  %62 = vst.msk [vmem:[#allocation5] sm:$0x3f] %vm61_vm14, %v2009_v2  ;;  %v2377_v2 = vld [vmem:[%s2618_s8] ss:$0 sm:$0xff] }
 0xd3f   :  { %v508_v0 = vpop.permute.xlu1 %507 }
 0xd40   :  { %v510_v3 = vmul.f32 %v508_v0, %v505_v63 }
 0xd42   :  { %v515_v4 = vadd.f32 %v514_v1, %v510_v3 }
 0xd44   :  { %517 = vrot.lane.b32.xlu0 %v515_v4, %s2012_s21 }
 0xd47   :  { %v2195_v5 = vpop.permute.xlu1 %721 }
 0xd48   :  { %v724_v8 = vadd.f32 %v2195_v5, %v698_v6  ;;  %v736_v6 = vsub.f32 1.0, %v2207_v27 }
 0xd4c   :  { %726 = vrot.lane.b32.xlu0 %v724_v8, %s2010_s19 }
 0xdb6   :  { %v518_v9 = vpop.permute.xlu0 %517 }
 0xdb7   :  { %520 = vst.msk [vmem:[#allocation2] sm:$0x3f] %vm58_vm0, %v518_v9 }
 0xdb8   :  { %522 = vst.msk [vmem:[#allocation4 + $0x28] sm:$0x3f] %vm58_vm0, %v518_v9 }
 0xdbe   :  { %v525_v10 = vld [vmem:[#allocation2] sm:$0x3f]  ;;  %v727_v28 = vpop.permute.xlu0 %726 }
 0xdbf   :  { %1828 = vmatmul.msk.f32.vlgmr.msrb.gmra.mxu2 %vm67_vm1, %v525_v10  ;;  %v729_v29 = vmul.f32 %v727_v28, %v2207_v27  ;;  %v1838_v28 = vld [vmem:[%s2615_s1 + $0x30] sm:$0x3f] }
 0xdc0   :  { %974 = vmatpush.msrb.mxu2 %v2161_v56 }
 0xdc2   :  { %975 = vmatpush.msrb.mxu2 %v2166_v57 }
 0xdc4   :  { %976 = vmatpush.msrb.mxu2 %v2176_v59 }
 0xdc6   :  { %977 = vmatpush.msrb.mxu2 %v2183_v60 }
 0xe42   :  { %v546_v23 = vpop.f32.mrf.mxu2 }
 0xe43   :  { %v569_v25 = vadd.f32 %v546_v23, %v2089_v7  ;;  %v549_v31 = vadd.f32 %v1827_v30, %v546_v23 }
 0xe45   :  { %571 = vrot.lane.b32.xlu2 %v569_v25, %s2010_s19  ;;  %v1829_v32 = vmul.f32 -1.442695, %v549_v31  ;;  %v1830_v25 = vld [vmem:[%s2612_s0 + $0x38] sm:$0x3f] }
 0xe47   :  { %1919 = vpow2.f32 %v1829_v32 }
 0xe4d   :  { %731 = vrot.lane.b32.xlu2 %v729_v29, %s2010_s19  ;;  %v1920_v33 = vpop.eup %1919 }
 0xe4e   :  { %v553_v34 = vadd.f32 1.0, %v1920_v33 }
 0xe50   :  { %1921 = vrcp.f32 %v553_v34  ;;  %v565_v40 = vand.u32 2147483648, %v553_v34  ;;  %vm559_vm3 = vweird.f32 %v553_v34  ;;  %v563_v41 = vand.u32 2147483647, %v553_v34 }
 0xe52   :  { %v566_v43 = vor.u32 1.1754944e-38, %v565_v40  ;;  %vm564_vm5 = vcmp.eq.f32.partialorder %v563_v41, 8.507059e+37 }
 0xe56   :  { %v1922_v35 = vpop.eup %1921 }
 0xe57   :  { %v555_v36 = vmul.f32 %v1922_v35, %v553_v34  ;;  %vm560_vm2 = vweird.f32 %v1922_v35 }
 0xe58   :  { %vm561_vm4 = vmor %vm559_vm3, %vm560_vm2 }
 0xe59   :  { %v556_v37 = vsub.f32 1.0, %v555_v36 }
 0xe5b   :  { %v557_v38 = vmul.f32 %v1922_v35, %v556_v37 }
 0xe5d   :  { %v558_v39 = vadd.f32 %v1922_v35, %v557_v38 }
 0xe5f   :  { %v562_v42 = vsel %vm561_vm4, %v1922_v35, %v558_v39 }
 0xe60   :  { %v567_v45 = vsel %vm564_vm5, %v566_v43, %v562_v42 }
 0xe61   :  { %v581_v62 = vsub.f32 1.0, %v567_v45 }
 0xe9f   :  { %v572_v44 = vpop.permute.xlu2 %571 }
 0xea0   :  { %v574_v46 = vmul.f32 %v572_v44, %v567_v45 }
 0xea2   :  { %576 = vrot.lane.b32.xlu1 %v574_v46, %s2010_s19 }
 0xea7   :  { %v732_v47 = vpop.permute.xlu2 %731 }
 0xea8   :  { %v734_v48 = vadd.f32 %v1833_v11, %v732_v47 }
 0xeaa   :  { %1923 = vtanh.f32 %v734_v48  ;;  %587 = vrot.lane.b32.xlu1 %v525_v10, %s2011_s4 }
 0xeb0   :  { %v1924_v49 = vpop.eup %1923 }
 0xeb1   :  { %738 = vrot.lane.b32.xlu2 %v1924_v49, %s2012_s21 }
 0xf0b   :  { %v739_v4 = vpop.permute.xlu2 %738 }
 0xf0c   :  { %v741_v9 = vmul.f32 %v739_v4, %v736_v6 }
 0xf14   :  { %v577_v50 = vpop.permute.xlu1 %576 }
 0xf15   :  { %v579_v51 = vadd.f32 %v1827_v30, %v577_v50 }
 0xf17   :  { %1925 = vtanh.f32 %v579_v51 }
 0xf1d   :  { %v1926_v52 = vpop.eup %1925 }
 0xf1e   :  { %583 = vrot.lane.b32.xlu0 %v1926_v52, %s2012_s21 }
 0xf26   :  { %742 = vrot.lane.b32.xlu0 %v2187_v61, %s2011_s4  ;;  %v588_v61 = vpop.permute.xlu1 %587 }
 0xf27   :  { %v590_v0 = vmul.f32 %v588_v61, %v567_v45 }
 0xf90   :  { %v584_v63 = vpop.permute.xlu0 %583 }
 0xf91   :  { %v586_v1 = vmul.f32 %v584_v63, %v581_v62 }
 0xf93   :  { %v591_v3 = vadd.f32 %v590_v0, %v586_v1 }
 0xf95   :  { %593 = vrot.lane.b32.xlu1 %v591_v3, %s2012_s21 }
 0xf98   :  { %v743_v8 = vpop.permute.xlu0 %742 }
 0xf99   :  { %v745_v10 = vmul.f32 %v743_v8, %v2207_v27 }
 0xf9b   :  { %v2251_v11 = vadd.f32 %v745_v10, %v741_v9 }
 0xf9d   :  { %748 = vrot.lane.b32.xlu2 %v2251_v11, %s2012_s21 }
 0xff7   :  { %v749_v16 = vpop.permute.xlu2 %748 }
 0xff8   :  { %751 = vst.msk [vmem:[#allocation3] sm:$0x3f] %vm58_vm0, %v749_v16  ;;  %1836 = vmatmul.msk.f32.vlgmr.msra.gmra.mxu1 %vm67_vm1, %v749_v16 }
 0xff9   :  { %1113 = vmatpush.msra.mxu1 %v2161_v56 }
 0xffb   :  { %1114 = vmatpush.msra.mxu1 %v2166_v57 }
 0xffd   :  { %1115 = vmatpush.msra.mxu1 %v2176_v59 }
 0xfff   :  { %1116 = vmatpush.msra.mxu1 %v2183_v60  ;;  %v2313_v20 = vld [vmem:[#allocation3] sm:$0x3f] }
0x1007   :  { %v594_v17 = vpop.permute.xlu1 %593 }
0x1008   :  { %596 = vst.msk [vmem:[#allocation2] sm:$0x3f] %vm58_vm0, %v594_v17 }
0x1009   :  { %598 = vst.msk [vmem:[#allocation4 + $0x30] sm:$0x3f] %vm58_vm0, %v594_v17 }
0x100f   :  { %v2299_v18 = vld [vmem:[#allocation2] sm:$0x3f] }
0x1010   :  { %1831 = vmatmul.msk.f32.vlgmr.msrb.gmra.mxu3 %vm67_vm1, %v2299_v18  ;;  %v2303_v19 = vld [vmem:[#allocation4 + $0x30] sm:$0x3f] }
0x1011   :  { %1842 = vmatmul.msk.f32.vlgmr.msrb.gmra.mxu1 %vm67_vm1, %v2303_v19  ;;  %1045 = vmatpush.msrb.mxu3 %v2223_v53 }
0x1012   :  { %1323 = vmatpush.msrb.mxu1 %v2223_v53 }
0x1013   :  { %1046 = vmatpush.msrb.mxu3 %v2228_v54 }
0x1014   :  { %1324 = vmatpush.msrb.mxu1 %v2228_v54 }
0x1015   :  { %1047 = vmatpush.msrb.mxu3 %v2235_v55 }
0x1016   :  { %1325 = vmatpush.msrb.mxu1 %v2235_v55 }
0x1017   :  { %1048 = vmatpush.msrb.mxu3 %v2242_v58 }
0x1018   :  { %1839 = vmatmul.msk.f32.vlgmr.msra.gmra.mxu3 %vm67_vm1, %v2313_v20  ;;  %1326 = vmatpush.msrb.mxu1 %v2242_v58 }
0x1019   :  { %1207 = vmatpush.msra.mxu3 %v2258_v12 }
0x101b   :  { %1208 = vmatpush.msra.mxu3 %v2263_v13 }
0x101d   :  { %1209 = vmatpush.msra.mxu3 %v2270_v14 }
0x101f   :  { %1210 = vmatpush.msra.mxu3 %v2278_v15 }
0x1093   :  { %v622_v21 = vpop.f32.mrf.mxu3 }
0x1094   :  { %v645_v22 = vadd.f32 %v622_v21, %v2089_v7  ;;  %v625_v26 = vadd.f32 %v1830_v25, %v622_v21 }
0x1096   :  { %647 = vrot.lane.b32.xlu0 %v645_v22, %s2010_s19  ;;  %v1832_v27 = vmul.f32 -1.442695, %v625_v26 }
0x1098   :  { %1927 = vpow2.f32 %v1832_v27 }
0x109b   :  { %v840_v23 = vpop.f32.mrf.mxu3 }
0x109c   :  { %v863_v24 = vadd.f32 %v840_v23, %v2195_v5  ;;  %v843_v29 = vadd.f32 %v1838_v28, %v840_v23 }
0x109e   :  { %865 = vrot.lane.b32.xlu1 %v863_v24, %s2010_s19  ;;  %v1840_v7 = vmul.f32 -1.442695, %v843_v29  ;;  %v1928_v30 = vpop.eup %1927 }
0x109f   :  { %v629_v31 = vadd.f32 1.0, %v1928_v30 }
0x10a0   :  { %1929 = vpow2.f32 %v1840_v7 }
0x10a1   :  { %1931 = vrcp.f32 %v629_v31  ;;  %v641_v42 = vand.u32 2147483648, %v629_v31  ;;  %vm635_vm7 = vweird.f32 %v629_v31  ;;  %v639_v43 = vand.u32 2147483647, %v629_v31 }
0x10a3   :  { %v642_v46 = vor.u32 1.1754944e-38, %v641_v42  ;;  %vm640_vm9 = vcmp.eq.f32.partialorder %v639_v43, 8.507059e+37 }
0x10a6   :  { %v1930_v32 = vpop.eup %1929 }
0x10a7   :  { %v847_v33 = vadd.f32 1.0, %v1930_v32  ;;  %v1932_v34 = vpop.eup %1931  ;;  %v2360_v32 = vld [vmem:[#allocation4 + $0x28] sm:$0x3f] }
0x10a8   :  { %v631_v35 = vmul.f32 %v1932_v34, %v629_v31  ;;  %vm636_vm6 = vweird.f32 %v1932_v34 }
0x10a9   :  { %1933 = vrcp.f32 %v847_v33  ;;  %vm637_vm8 = vmor %vm635_vm7, %vm636_vm6  ;;  %v859_v51 = vand.u32 2147483648, %v847_v33  ;;  %vm853_vm11 = vweird.f32 %v847_v33  ;;  %v857_v52 = vand.u32 2147483647, %v847_v33 }
0x10aa   :  { %v632_v36 = vsub.f32 1.0, %v631_v35 }
0x10ab   :  { %v860_v62 = vor.u32 1.1754944e-38, %v859_v51  ;;  %vm858_vm13 = vcmp.eq.f32.partialorder %v857_v52, 8.507059e+37 }
0x10ac   :  { %v633_v38 = vmul.f32 %v1932_v34, %v632_v36 }
0x10ae   :  { %v634_v40 = vadd.f32 %v1932_v34, %v633_v38 }
0x10af   :  { %v1934_v37 = vpop.eup %1933 }
0x10b0   :  { %v849_v39 = vmul.f32 %v1934_v37, %v847_v33  ;;  %v638_v44 = vsel %vm637_vm8, %v1932_v34, %v634_v40  ;;  %vm854_vm10 = vweird.f32 %v1934_v37  ;;  %v772_v33 = vpop.f32.mrf.mxu1 }
0x10b1   :  { %v643_v48 = vsel %vm640_vm9, %v642_v46, %v638_v44  ;;  %vm855_vm12 = vmor %vm853_vm11, %vm854_vm10 }
0x10b2   :  { %v850_v41 = vsub.f32 1.0, %v849_v39  ;;  %v657_v17 = vsub.f32 1.0, %v643_v48  ;;  %v802_v39 = vld [vmem:[#allocation5] sm:$0x3f] }
0x10b4   :  { %v851_v45 = vmul.f32 %v1934_v37, %v850_v41  ;;  %v805_v41 = vld [vmem:[#allocation6] sm:$0x3f] }
0x10b6   :  { %v852_v50 = vadd.f32 %v1934_v37, %v851_v45 }
0x10b8   :  { %v856_v61 = vsel %vm855_vm12, %v1934_v37, %v852_v50  ;;  %v934_v45 = vpop.f32.mrf.mxu1 }
0x10b9   :  { %v861_v0 = vsel %vm858_vm13, %v860_v62, %v856_v61 }
0x1108   :  { %v648_v47 = vpop.permute.xlu0 %647 }
0x1109   :  { %v650_v49 = vmul.f32 %v648_v47, %v643_v48 }
0x110b   :  { %652 = vrot.lane.b32.xlu2 %v650_v49, %s2010_s19 }
0x1110   :  { %v866_v63 = vpop.permute.xlu1 %865 }
0x1111   :  { %v868_v1 = vmul.f32 %v866_v63, %v861_v0 }
0x1113   :  { %870 = vrot.lane.b32.xlu0 %v868_v1, %s2010_s19  ;;  %663 = vrot.lane.b32.xlu2 %v2299_v18, %s2011_s4 }
0x1165   :  { %v653_v3 = vpop.permute.xlu2 %652 }
0x1166   :  { %v655_v4 = vadd.f32 %v1830_v25, %v653_v3  ;;  %v875_v25 = vsub.f32 1.0, %v861_v0 }
0x1168   :  { %1935 = vtanh.f32 %v655_v4  ;;  %v1843_v4 = vld [vmem:[%s2615_s1 + $0x28] sm:$0x3f] }
0x116d   :  { %v664_v16 = vpop.permute.xlu2 %663 }
0x116e   :  { %v1936_v6 = vpop.eup %1935  ;;  %v666_v22 = vmul.f32 %v664_v16, %v643_v48 }
0x116f   :  { %659 = vrot.lane.b32.xlu1 %v1936_v6, %s2012_s21 }
0x1177   :  { %881 = vrot.lane.b32.xlu1 %v2313_v20, %s2011_s4 }
0x1185   :  { %v871_v8 = vpop.permute.xlu0 %870 }
0x1186   :  { %v873_v9 = vadd.f32 %v1838_v28, %v871_v8 }
0x1188   :  { %1937 = vtanh.f32 %v873_v9 }
0x118e   :  { %v1938_v10 = vpop.eup %1937 }
0x118f   :  { %877 = vrot.lane.b32.xlu0 %v1938_v10, %s2012_s21 }
0x11e1   :  { %v660_v21 = vpop.permute.xlu1 %659 }
0x11e2   :  { %v662_v18 = vmul.f32 %v660_v21, %v657_v17 }
0x11e4   :  { %v667_v23 = vadd.f32 %v666_v22, %v662_v18 }
0x11e6   :  { %669 = vrot.lane.b32.xlu2 %v667_v23, %s2012_s21 }
0x11e9   :  { %v882_v24 = vpop.permute.xlu1 %881 }
0x11ea   :  { %v884_v27 = vmul.f32 %v882_v24, %v861_v0 }
0x1201   :  { %v878_v26 = vpop.permute.xlu0 %877 }
0x1202   :  { %v880_v29 = vmul.f32 %v878_v26, %v875_v25 }
0x1204   :  { %v2342_v20 = vadd.f32 %v884_v27, %v880_v29 }
0x1206   :  { %887 = vrot.lane.b32.xlu0 %v2342_v20, %s2012_s21 }
0x1240   :  { %v670_v28 = vpop.permute.xlu2 %669 }
0x1241   :  { %672 = vst.msk [vmem:[#allocation2] sm:$0x3f] %vm58_vm0, %v670_v28 }
0x1242   :  { %674 = vst.msk [vmem:[#allocation4 + $0x38] sm:$0x3f] %vm58_vm0, %v670_v28 }
0x1249   :  { %v752_v7 = vld [vmem:[#allocation4 + $0x38] sm:$0x3f] }
0x124a   :  { %1837 = vmatmul.msk.f32.vlgmr.msra.gmra.mxu2 %vm67_vm1, %v752_v7 }
0x124b   :  { %1184 = vmatpush.msra.mxu2 %v2223_v53 }
0x124d   :  { %1185 = vmatpush.msra.mxu2 %v2228_v54 }
0x124f   :  { %1186 = vmatpush.msra.mxu2 %v2235_v55 }
0x1251   :  { %1187 = vmatpush.msra.mxu2 %v2242_v58 }
0x1278   :  { %v888_v30 = vpop.permute.xlu0 %887 }
0x1279   :  { %890 = vst.msk [vmem:[#allocation3] sm:$0x3f] %vm58_vm0, %v888_v30  ;;  %1841 = vmatmul.msk.f32.vlgmr.msrb.gmra.mxu0 %vm67_vm1, %v888_v30 }
0x127a   :  { %1252 = vmatpush.msrb.mxu0 %v2161_v56 }
0x127c   :  { %1253 = vmatpush.msrb.mxu0 %v2166_v57 }
0x127e   :  { %1254 = vmatpush.msrb.mxu0 %v2176_v59 }
0x1280   :  { %v958_v31 = vld [vmem:[#allocation3] sm:$0x3f]  ;;  %1255 = vmatpush.msrb.mxu0 %v2183_v60 }
0x1281   :  { %1844 = vmatmul.msk.f32.vlgmr.msrb.gmra.mxu2 %vm67_vm1, %v958_v31  ;;  %1847 = vmatmul.msk.f32.vlgmr.msra.gmra.mxu0 %vm67_vm1, %v2360_v32 }
0x1282   :  { %1346 = vmatpush.msrb.mxu2 %v2258_v12  ;;  %1462 = vmatpush.msra.mxu0 %v2223_v53 }
0x1284   :  { %1347 = vmatpush.msrb.mxu2 %v2263_v13  ;;  %1463 = vmatpush.msra.mxu0 %v2228_v54 }
0x1286   :  { %1348 = vmatpush.msrb.mxu2 %v2270_v14  ;;  %1464 = vmatpush.msra.mxu0 %v2235_v55 }
0x1288   :  { %1349 = vmatpush.msrb.mxu2 %v2278_v15  ;;  %1465 = vmatpush.msra.mxu0 %v2242_v58 }
0x12cd   :  { %v795_v34 = vpop.f32.mrf.mxu2 }
0x12ce   :  { %v796_v35 = vadd.f32 %v795_v34, %v772_v33 }
0x12d0   :  { %v798_v36 = vadd.f32 %v2377_v2, %v796_v35 }
0x12d2   :  { %1939 = vtanh.f32 %v798_v36 }
0x12d8   :  { %v1940_v37 = vpop.eup %1939 }
0x12d9   :  { %v800_v38 = vmul.f32 1.442695, %v1940_v37 }
0x12db   :  { %1941 = vpow2.f32 %v800_v38 }
0x12e1   :  { %v2380_v40 = vpop.eup %1941 }
0x12e2   :  { %v803_v42 = vadd.f32 %v2380_v40, %v802_v39  ;;  %v806_v43 = vmul.f32 %v2380_v40, %v752_v7 }
0x12e4   :  { %804 = vst.msk [vmem:[#allocation5] sm:$0x3f] %vm61_vm14, %v803_v42  ;;  %v807_v44 = vadd.f32 %v806_v43, %v805_v41  ;;  %v2411_v41 = vld [vmem:[#allocation4 + $0x20] sm:$0x3f] }
0x12e6   :  { %808 = vst.msk [vmem:[#allocation6] sm:$0x3f] %vm58_vm0, %v807_v44 }
0x12eb   :  { %v941_v62 = vld [vmem:[#allocation5] sm:$0x3f] }
0x12ed   :  { %v944_v1 = vld [vmem:[#allocation6] sm:$0x3f] }
0x12f6   :  { %v911_v46 = vpop.f32.mrf.mxu0 }
0x12f7   :  { %v935_v47 = vadd.f32 %v934_v45, %v911_v46 }
0x12f9   :  { %v937_v48 = vadd.f32 %v2377_v2, %v935_v47 }
0x12fb   :  { %1943 = vtanh.f32 %v937_v48 }
0x12fe   :  { %v1073_v42 = vpop.f32.mrf.mxu0 }
0x1301   :  { %v1944_v49 = vpop.eup %1943 }
0x1302   :  { %v939_v50 = vmul.f32 1.442695, %v1944_v49 }
0x1304   :  { %1945 = vpow2.f32 %v939_v50  ;;  %v979_v51 = vpop.f32.mrf.mxu2 }
0x1305   :  { %v1002_v52 = vadd.f32 %v979_v51, %v2195_v5  ;;  %v982_v6 = vadd.f32 %v1843_v4, %v979_v51 }
0x1307   :  { %1004 = vrot.lane.b32.xlu1 %v1002_v52, %s2010_s19  ;;  %v1845_v8 = vmul.f32 -1.442695, %v982_v6 }
0x1309   :  { %1947 = vpow2.f32 %v1845_v8 }
0x130a   :  { %v2389_v61 = vpop.eup %1945 }
0x130b   :  { %v942_v63 = vadd.f32 %v2389_v61, %v941_v62  ;;  %v945_v0 = vmul.f32 %v2389_v61, %v2303_v19 }
0x130d   :  { %943 = vst.msk [vmem:[#allocation5] sm:$0x3f] %vm61_vm14, %v942_v63  ;;  %v946_v3 = vadd.f32 %v945_v0, %v944_v1  ;;  %v1848_v1 = vld [vmem:[%s2615_s1 + $0x20] sm:$0x3f] }
0x130f   :  { %947 = vst.msk [vmem:[#allocation6] sm:$0x3f] %vm58_vm0, %v946_v3  ;;  %1020 = vrot.lane.b32.xlu1 %v958_v31, %s2011_s4  ;;  %v1948_v9 = vpop.eup %1947 }
0x1310   :  { %v986_v10 = vadd.f32 1.0, %v1948_v9 }
0x1312   :  { %1949 = vrcp.f32 %v986_v10  ;;  %v998_v18 = vand.u32 2147483648, %v986_v10  ;;  %vm992_vm2 = vweird.f32 %v986_v10  ;;  %v996_v23 = vand.u32 2147483647, %v986_v10 }
0x1314   :  { %v999_v25 = vor.u32 1.1754944e-38, %v998_v18  ;;  %vm997_vm4 = vcmp.eq.f32.partialorder %v996_v23, 8.507059e+37  ;;  %v1080_v51 = vld [vmem:[#allocation5] sm:$0x3f] }
0x1316   :  { %v1083_v63 = vld [vmem:[#allocation6] sm:$0x3f] }
0x1318   :  { %v1950_v16 = vpop.eup %1949 }
0x1319   :  { %v988_v19 = vmul.f32 %v1950_v16, %v986_v10  ;;  %vm993_vm15 = vweird.f32 %v1950_v16 }
0x131a   :  { %vm994_vm3 = vmor %vm992_vm2, %vm993_vm15 }
0x131b   :  { %v989_v17 = vsub.f32 1.0, %v988_v19 }
0x131d   :  { %v990_v21 = vmul.f32 %v1950_v16, %v989_v17 }
0x131f   :  { %v991_v22 = vadd.f32 %v1950_v16, %v990_v21 }
0x1321   :  { %v995_v24 = vsel %vm994_vm3, %v1950_v16, %v991_v22 }
0x1322   :  { %v1000_v27 = vsel %vm997_vm4, %v999_v25, %v995_v24 }
0x1323   :  { %v1014_v33 = vsub.f32 1.0, %v1000_v27 }
0x1379   :  { %v1005_v26 = vpop.permute.xlu1 %1004 }
0x137a   :  { %v1007_v29 = vmul.f32 %v1005_v26, %v1000_v27 }
0x137c   :  { %1009 = vrot.lane.b32.xlu2 %v1007_v29, %s2010_s19 }
0x1381   :  { %v1021_v31 = vpop.permute.xlu1 %1020 }
0x1382   :  { %v1023_v35 = vmul.f32 %v1021_v31, %v1000_v27 }
0x13d6   :  { %v1010_v28 = vpop.permute.xlu2 %1009 }
0x13d7   :  { %v1012_v7 = vadd.f32 %v1843_v4, %v1010_v28 }
0x13d9   :  { %1951 = vtanh.f32 %v1012_v7 }
0x13df   :  { %v1952_v30 = vpop.eup %1951 }
0x13e0   :  { %1016 = vrot.lane.b32.xlu0 %v1952_v30, %s2012_s21 }
0x1452   :  { %v1017_v34 = vpop.permute.xlu0 %1016 }
0x1453   :  { %v1019_v36 = vmul.f32 %v1017_v34, %v1014_v33 }
0x1455   :  { %v2402_v37 = vadd.f32 %v1023_v35, %v1019_v36 }
0x1457   :  { %1026 = vrot.lane.b32.xlu2 %v2402_v37, %s2012_s21 }
0x14b1   :  { %v1027_v38 = vpop.permute.xlu2 %1026 }
0x14b2   :  { %1029 = vst.msk [vmem:[#allocation3] sm:$0x3f] %vm58_vm0, %v1027_v38  ;;  %1846 = vmatmul.msk.f32.vlgmr.msrb.gmra.mxu3 %vm67_vm1, %v1027_v38  ;;  %v2450_v38 = vld [vmem:[#allocation4 + $0x18] sm:$0x3f] }
0x14b3   :  { %1391 = vmatpush.msrb.mxu3 %v2161_v56 }
0x14b5   :  { %1392 = vmatpush.msrb.mxu3 %v2166_v57 }
0x14b7   :  { %1393 = vmatpush.msrb.mxu3 %v2176_v59 }
0x14b9   :  { %v1097_v39 = vld [vmem:[#allocation3] sm:$0x3f]  ;;  %1394 = vmatpush.msrb.mxu3 %v2183_v60 }
0x14ba   :  { %1849 = vmatmul.msk.f32.vlgmr.msra.gmra.mxu1 %vm67_vm1, %v1097_v39  ;;  %1852 = vmatmul.msk.f32.vlgmr.msra.gmra.mxu3 %vm67_vm1, %v2411_v41 }
0x14bb   :  { %1485 = vmatpush.msra.mxu1 %v2258_v12  ;;  %1601 = vmatpush.msra.mxu3 %v2223_v53 }
0x14bd   :  { %1486 = vmatpush.msra.mxu1 %v2263_v13  ;;  %1602 = vmatpush.msra.mxu3 %v2228_v54 }
0x14bf   :  { %1487 = vmatpush.msra.mxu1 %v2270_v14  ;;  %1603 = vmatpush.msra.mxu3 %v2235_v55 }
0x14c1   :  { %1488 = vmatpush.msra.mxu1 %v2278_v15  ;;  %1604 = vmatpush.msra.mxu3 %v2242_v58 }
0x1535   :  { %v1050_v43 = vpop.f32.mrf.mxu3 }
0x1536   :  { %v1074_v44 = vadd.f32 %v1073_v42, %v1050_v43 }
0x1537   :  { %v1118_v45 = vpop.f32.mrf.mxu1 }
0x1538   :  { %v1076_v46 = vadd.f32 %v2377_v2, %v1074_v44  ;;  %v1141_v47 = vadd.f32 %v1118_v45, %v2195_v5  ;;  %v1121_v3 = vadd.f32 %v1848_v1, %v1118_v45 }
0x153a   :  { %1953 = vtanh.f32 %v1076_v46  ;;  %1143 = vrot.lane.b32.xlu0 %v1141_v47, %s2010_s19  ;;  %v1850_v4 = vmul.f32 -1.442695, %v1121_v3 }
0x1540   :  { %v1954_v48 = vpop.eup %1953 }
0x1541   :  { %v1078_v49 = vmul.f32 1.442695, %v1954_v48 }
0x1542   :  { %1159 = vrot.lane.b32.xlu0 %v1097_v39, %s2011_s4  ;;  %v1212_v39 = vpop.f32.mrf.mxu3 }
0x1543   :  { %1955 = vpow2.f32 %v1078_v49 }
0x1544   :  { %1957 = vpow2.f32 %v1850_v4 }
0x1549   :  { %v2429_v50 = vpop.eup %1955 }
0x154a   :  { %v1081_v52 = vadd.f32 %v2429_v50, %v1080_v51  ;;  %v1084_v62 = vmul.f32 %v2429_v50, %v2360_v32  ;;  %v1958_v6 = vpop.eup %1957 }
0x154b   :  { %v1125_v8 = vadd.f32 1.0, %v1958_v6 }
0x154c   :  { %1082 = vst.msk [vmem:[#allocation5] sm:$0x3f] %vm61_vm14, %v1081_v52  ;;  %v1085_v0 = vadd.f32 %v1084_v62, %v1083_v63  ;;  %v1853_v52 = vld [vmem:[%s2615_s1 + $0x18] sm:$0x3f] }
0x154d   :  { %1959 = vrcp.f32 %v1125_v8  ;;  %v1137_v17 = vand.u32 2147483648, %v1125_v8  ;;  %vm1131_vm6 = vweird.f32 %v1125_v8  ;;  %v1135_v21 = vand.u32 2147483647, %v1125_v8 }
0x154e   :  { %1086 = vst.msk [vmem:[#allocation6] sm:$0x3f] %vm58_vm0, %v1085_v0 }
0x154f   :  { %v1138_v18 = vor.u32 1.1754944e-38, %v1137_v17  ;;  %vm1136_vm8 = vcmp.eq.f32.partialorder %v1135_v21, 8.507059e+37 }
0x1553   :  { %v1960_v9 = vpop.eup %1959  ;;  %v1219_v47 = vld [vmem:[#allocation5] sm:$0x3f] }
0x1554   :  { %v1127_v10 = vmul.f32 %v1960_v9, %v1125_v8  ;;  %vm1132_vm5 = vweird.f32 %v1960_v9 }
0x1555   :  { %vm1133_vm7 = vmor %vm1131_vm6, %vm1132_vm5  ;;  %v1222_v49 = vld [vmem:[#allocation6] sm:$0x3f] }
0x1556   :  { %v1128_v16 = vsub.f32 1.0, %v1127_v10 }
0x1558   :  { %v1129_v32 = vmul.f32 %v1960_v9, %v1128_v16 }
0x155a   :  { %v1130_v19 = vadd.f32 %v1960_v9, %v1129_v32 }
0x155c   :  { %v1134_v22 = vsel %vm1133_vm7, %v1960_v9, %v1130_v19 }
0x155d   :  { %v1139_v24 = vsel %vm1136_vm8, %v1138_v18, %v1134_v22 }
0x155e   :  { %v1153_v7 = vsub.f32 1.0, %v1139_v24 }
0x15ac   :  { %v1144_v23 = vpop.permute.xlu0 %1143 }
0x15ad   :  { %v1146_v25 = vmul.f32 %v1144_v23, %v1139_v24 }
0x15af   :  { %1148 = vrot.lane.b32.xlu1 %v1146_v25, %s2010_s19 }
0x15b4   :  { %v1160_v28 = vpop.permute.xlu0 %1159 }
0x15b5   :  { %v1162_v31 = vmul.f32 %v1160_v28, %v1139_v24 }
0x1621   :  { %v1149_v26 = vpop.permute.xlu1 %1148 }
0x1622   :  { %v1151_v27 = vadd.f32 %v1848_v1, %v1149_v26 }
0x1624   :  { %1961 = vtanh.f32 %v1151_v27 }
0x162a   :  { %v1962_v29 = vpop.eup %1961 }
0x162b   :  { %1155 = vrot.lane.b32.xlu2 %v1962_v29, %s2012_s21 }
0x1685   :  { %v1156_v30 = vpop.permute.xlu2 %1155 }
0x1686   :  { %v1158_v33 = vmul.f32 %v1156_v30, %v1153_v7 }
0x1688   :  { %v2441_v34 = vadd.f32 %v1162_v31, %v1158_v33  ;;  %v2489_v31 = vld [vmem:[#allocation4 + $0x10] sm:$0x3f] }
0x168a   :  { %1165 = vrot.lane.b32.xlu1 %v2441_v34, %s2012_s21 }
0x16fc   :  { %v1166_v35 = vpop.permute.xlu1 %1165 }
0x16fd   :  { %1168 = vst.msk [vmem:[#allocation3] sm:$0x3f] %vm58_vm0, %v1166_v35  ;;  %1851 = vmatmul.msk.f32.vlgmr.msra.gmra.mxu2 %vm67_vm1, %v1166_v35 }
0x16fe   :  { %1530 = vmatpush.msra.mxu2 %v2161_v56 }
0x1700   :  { %1531 = vmatpush.msra.mxu2 %v2166_v57 }
0x1702   :  { %1532 = vmatpush.msra.mxu2 %v2176_v59 }
0x1704   :  { %v1236_v36 = vld [vmem:[#allocation3] sm:$0x3f]  ;;  %1533 = vmatpush.msra.mxu2 %v2183_v60 }
0x1705   :  { %1854 = vmatmul.msk.f32.vlgmr.msrb.gmra.mxu0 %vm67_vm1, %v1236_v36  ;;  %1857 = vmatmul.msk.f32.vlgmr.msrb.gmra.mxu2 %vm67_vm1, %v2450_v38 }
0x1706   :  { %1624 = vmatpush.msrb.mxu0 %v2258_v12  ;;  %1739 = vmatpush.msrb.mxu2 %v2223_v53 }
0x1708   :  { %1625 = vmatpush.msrb.mxu0 %v2263_v13  ;;  %1740 = vmatpush.msrb.mxu2 %v2228_v54 }
0x170a   :  { %1626 = vmatpush.msrb.mxu0 %v2270_v14  ;;  %1741 = vmatpush.msrb.mxu2 %v2235_v55 }
0x170c   :  { %1627 = vmatpush.msrb.mxu0 %v2278_v15  ;;  %1742 = vmatpush.msrb.mxu2 %v2242_v58 }
0x1780   :  { %v1189_v42 = vpop.f32.mrf.mxu2 }
0x1781   :  { %v1213_v43 = vadd.f32 %v1212_v39, %v1189_v42 }
0x1782   :  { %v1257_v44 = vpop.f32.mrf.mxu0 }
0x1783   :  { %v1215_v45 = vadd.f32 %v2377_v2, %v1213_v43  ;;  %v1280_v53 = vadd.f32 %v1257_v44, %v2195_v5  ;;  %v1260_v62 = vadd.f32 %v1853_v52, %v1257_v44  ;;  %v1858_v44 = vld [vmem:[%s2615_s1 + $0x10] sm:$0x3f] }
0x1785   :  { %1963 = vtanh.f32 %v1215_v45  ;;  %1282 = vrot.lane.b32.xlu2 %v1280_v53, %s2010_s19  ;;  %v1855_v63 = vmul.f32 -1.442695, %v1260_v62 }
0x178b   :  { %v1964_v54 = vpop.eup %1963 }
0x178c   :  { %v1217_v46 = vmul.f32 1.442695, %v1964_v54 }
0x178d   :  { %1298 = vrot.lane.b32.xlu2 %v1236_v36, %s2011_s4 }
0x178e   :  { %1965 = vpow2.f32 %v1217_v46 }
0x178f   :  { %1967 = vpow2.f32 %v1855_v63 }
0x1794   :  { %v2468_v55 = vpop.eup %1965 }
0x1795   :  { %v1220_v58 = vadd.f32 %v2468_v55, %v1219_v47  ;;  %v1223_v48 = vmul.f32 %v2468_v55, %v2411_v41  ;;  %v1968_v0 = vpop.eup %1967 }
0x1796   :  { %v1264_v1 = vadd.f32 1.0, %v1968_v0 }
0x1797   :  { %1221 = vst.msk [vmem:[#allocation5] sm:$0x3f] %vm61_vm14, %v1220_v58  ;;  %v1224_v51 = vadd.f32 %v1223_v48, %v1222_v49 }
0x1798   :  { %1969 = vrcp.f32 %v1264_v1  ;;  %v1276_v9 = vand.u32 2147483648, %v1264_v1  ;;  %vm1270_vm10 = vweird.f32 %v1264_v1  ;;  %v1274_v10 = vand.u32 2147483647, %v1264_v1 }
0x1799   :  { %1225 = vst.msk [vmem:[#allocation6] sm:$0x3f] %vm58_vm0, %v1224_v51 }
0x179a   :  { %v1277_v32 = vor.u32 1.1754944e-38, %v1276_v9  ;;  %vm1275_vm12 = vcmp.eq.f32.partialorder %v1274_v10, 8.507059e+37 }
0x179e   :  { %v1970_v3 = vpop.eup %1969 }
0x179f   :  { %v1266_v4 = vmul.f32 %v1970_v3, %v1264_v1  ;;  %vm1271_vm9 = vweird.f32 %v1970_v3 }
0x17a0   :  { %vm1272_vm11 = vmor %vm1270_vm10, %vm1271_vm9  ;;  %v1361_v42 = vld [vmem:[#allocation6] sm:$0x3f] }
0x17a1   :  { %v1267_v6 = vsub.f32 1.0, %v1266_v4 }
0x17a3   :  { %v1268_v41 = vmul.f32 %v1970_v3, %v1267_v6 }
0x17a5   :  { %v1269_v8 = vadd.f32 %v1970_v3, %v1268_v41 }
0x17a7   :  { %v1273_v16 = vsel %vm1272_vm11, %v1970_v3, %v1269_v8 }
0x17a8   :  { %v1278_v17 = vsel %vm1275_vm12, %v1277_v32, %v1273_v16 }
0x17a9   :  { %v1292_v25 = vsub.f32 1.0, %v1278_v17 }
0x17df   :  { %v1283_v19 = vpop.permute.xlu2 %1282 }
0x17e0   :  { %v1285_v21 = vmul.f32 %v1283_v19, %v1278_v17 }
0x17e2   :  { %1287 = vrot.lane.b32.xlu0 %v1285_v21, %s2010_s19 }
0x17e7   :  { %v1299_v24 = vpop.permute.xlu2 %1298 }
0x17e8   :  { %v1301_v27 = vmul.f32 %v1299_v24, %v1278_v17 }
0x1854   :  { %v1288_v22 = vpop.permute.xlu0 %1287 }
0x1855   :  { %v1290_v18 = vadd.f32 %v1853_v52, %v1288_v22  ;;  %v2521_v22 = vld [vmem:[#allocation4 + $0x8] sm:$0x3f] }
0x1857   :  { %1971 = vtanh.f32 %v1290_v18 }
0x185d   :  { %v1972_v23 = vpop.eup %1971 }
0x185e   :  { %1294 = vrot.lane.b32.xlu1 %v1972_v23, %s2012_s21 }
0x18d0   :  { %v1295_v26 = vpop.permute.xlu1 %1294 }
0x18d1   :  { %v1297_v29 = vmul.f32 %v1295_v26, %v1292_v25 }
0x18d3   :  { %v2480_v28 = vadd.f32 %v1301_v27, %v1297_v29 }
0x18d5   :  { %1304 = vrot.lane.b32.xlu0 %v2480_v28, %s2012_s21 }
0x1947   :  { %v1305_v7 = vpop.permute.xlu0 %1304 }
0x1948   :  { %1307 = vst.msk [vmem:[#allocation3] sm:$0x3f] %vm58_vm0, %v1305_v7  ;;  %1856 = vmatmul.msk.f32.vlgmr.msrb.gmra.mxu1 %vm67_vm1, %v1305_v7 }
0x1949   :  { %1668 = vmatpush.msrb.mxu1 %v2161_v56  ;;  %v1351_v56 = vpop.f32.mrf.mxu2 }
0x194b   :  { %1669 = vmatpush.msrb.mxu1 %v2166_v57 }
0x194d   :  { %1670 = vmatpush.msrb.mxu1 %v2176_v59 }
0x194f   :  { %v1375_v30 = vld [vmem:[#allocation3] sm:$0x3f]  ;;  %1671 = vmatpush.msrb.mxu1 %v2183_v60 }
0x1950   :  { %1859 = vmatmul.msk.f32.vlgmr.msrb.gmra.mxu3 %vm67_vm1, %v1375_v30  ;;  %1862 = vmatmul.msk.f32.vlgmr.msra.gmra.mxu1 %vm67_vm1, %v2489_v31 }
0x1951   :  { %1762 = vmatpush.msrb.mxu3 %v2258_v12 }
0x1953   :  { %1763 = vmatpush.msrb.mxu3 %v2263_v13  ;;  %v1358_v13 = vld [vmem:[#allocation5] sm:$0x3f] }
0x1955   :  { %1764 = vmatpush.msrb.mxu3 %v2270_v14 }
0x1957   :  { %1765 = vmatpush.msrb.mxu3 %v2278_v15 }
0x19c5   :  { %v1328_v57 = vpop.f32.mrf.mxu1 }
0x19c6   :  { %v1352_v59 = vadd.f32 %v1351_v56, %v1328_v57 }
0x19c8   :  { %v1354_v33 = vadd.f32 %v2377_v2, %v1352_v59 }
0x19ca   :  { %1973 = vtanh.f32 %v1354_v33 }
0x19cd   :  { %v1490_v18 = vpop.f32.mrf.mxu1 }
0x19d0   :  { %v1974_v60 = vpop.eup %1973 }
0x19d1   :  { %v1356_v35 = vmul.f32 1.442695, %v1974_v60 }
0x19d3   :  { %1975 = vpow2.f32 %v1356_v35  ;;  %v1396_v36 = vpop.f32.mrf.mxu3  ;;  %v1863_v35 = vld [vmem:[%s2615_s1 + $0x8] sm:$0x3f] }
0x19d4   :  { %v1419_v39 = vadd.f32 %v1396_v36, %v2195_v5  ;;  %v1399_v45 = vadd.f32 %v1858_v44, %v1396_v36 }
0x19d6   :  { %1421 = vrot.lane.b32.xlu1 %v1419_v39, %s2010_s19  ;;  %v1860_v53 = vmul.f32 -1.442695, %v1399_v45 }
0x19d8   :  { %1977 = vpow2.f32 %v1860_v53 }
0x19d9   :  { %v2502_v12 = vpop.eup %1975 }
0x19da   :  { %v1359_v14 = vadd.f32 %v2502_v12, %v1358_v13  ;;  %v1362_v15 = vmul.f32 %v2502_v12, %v2450_v38 }
0x19dc   :  { %1360 = vst.msk [vmem:[#allocation5] sm:$0x3f] %vm61_vm14, %v1359_v14  ;;  %v1363_v43 = vadd.f32 %v1362_v15, %v1361_v42 }
0x19de   :  { %1364 = vst.msk [vmem:[#allocation6] sm:$0x3f] %vm58_vm0, %v1363_v43  ;;  %1437 = vrot.lane.b32.xlu1 %v1375_v30, %s2011_s4  ;;  %v1978_v54 = vpop.eup %1977 }
0x19df   :  { %v1403_v46 = vadd.f32 1.0, %v1978_v54 }
0x19e1   :  { %1979 = vrcp.f32 %v1403_v46  ;;  %v1415_v51 = vand.u32 2147483648, %v1403_v46  ;;  %vm1409_vm15 = vweird.f32 %v1403_v46  ;;  %v1413_v52 = vand.u32 2147483647, %v1403_v46 }
0x19e3   :  { %v1416_v63 = vor.u32 1.1754944e-38, %v1415_v51  ;;  %vm1414_vm3 = vcmp.eq.f32.partialorder %v1413_v52, 8.507059e+37  ;;  %v1497_v56 = vld [vmem:[#allocation5] sm:$0x3f] }
0x19e5   :  { %v1500_v33 = vld [vmem:[#allocation6] sm:$0x3f] }
0x19e7   :  { %v1980_v47 = vpop.eup %1979 }
0x19e8   :  { %v1405_v38 = vmul.f32 %v1980_v47, %v1403_v46  ;;  %vm1410_vm13 = vweird.f32 %v1980_v47 }
0x19e9   :  { %vm1411_vm2 = vmor %vm1409_vm15, %vm1410_vm13 }
0x19ea   :  { %v1406_v58 = vsub.f32 1.0, %v1405_v38 }
0x19ec   :  { %v1407_v48 = vmul.f32 %v1980_v47, %v1406_v58 }
0x19ee   :  { %v1408_v49 = vadd.f32 %v1980_v47, %v1407_v48 }
0x19f0   :  { %v1412_v62 = vsel %vm1411_vm2, %v1980_v47, %v1408_v49 }
0x19f1   :  { %v1417_v1 = vsel %vm1414_vm3, %v1416_v63, %v1412_v62 }
0x19f2   :  { %v1431_v9 = vsub.f32 1.0, %v1417_v1 }
0x1a48   :  { %v1422_v0 = vpop.permute.xlu1 %1421 }
0x1a49   :  { %v1424_v3 = vmul.f32 %v1422_v0, %v1417_v1 }
0x1a4b   :  { %1426 = vrot.lane.b32.xlu2 %v1424_v3, %s2010_s19 }
0x1a50   :  { %v1438_v8 = vpop.permute.xlu1 %1437 }
0x1a51   :  { %v1440_v16 = vmul.f32 %v1438_v8, %v1417_v1 }
0x1aa5   :  { %v1427_v4 = vpop.permute.xlu2 %1426 }
0x1aa6   :  { %v1429_v6 = vadd.f32 %v1858_v44, %v1427_v4 }
0x1aa8   :  { %1981 = vtanh.f32 %v1429_v6 }
0x1aae   :  { %v1982_v41 = vpop.eup %1981 }
0x1aaf   :  { %1433 = vrot.lane.b32.xlu0 %v1982_v41, %s2012_s21  ;;  %v2548_v41 = vld [vmem:[#allocation4] sm:$0x3f] }
0x1b21   :  { %v1434_v10 = vpop.permute.xlu0 %1433 }
0x1b22   :  { %v1436_v32 = vmul.f32 %v1434_v10, %v1431_v9 }
0x1b24   :  { %v2515_v19 = vadd.f32 %v1440_v16, %v1436_v32 }
0x1b26   :  { %1443 = vrot.lane.b32.xlu2 %v2515_v19, %s2012_s21 }
0x1b80   :  { %v1444_v17 = vpop.permute.xlu2 %1443 }
0x1b81   :  { %1446 = vst.msk [vmem:[#allocation3] sm:$0x3f] %vm58_vm0, %v1444_v17  ;;  %1861 = vmatmul.msk.f32.vlgmr.msra.gmra.mxu0 %vm67_vm1, %v1444_v17 }
0x1b88   :  { %v1514_v21 = vld [vmem:[#allocation3] sm:$0x3f] }
0x1b89   :  { %1864 = vmatmul.msk.f32.vlgmr.msra.gmra.mxu2 %vm67_vm1, %v1514_v21  ;;  %1867 = vmatmul.msk.f32.vlgmr.msrb.gmra.mxu0 %vm67_vm1, %v2521_v22 }
0x1bfe   :  { %v1467_v23 = vpop.f32.mrf.mxu0 }
0x1bff   :  { %v1491_v24 = vadd.f32 %v1490_v18, %v1467_v23  ;;  %v949_v23 = vmul.f32 %v2389_v61, %v2342_v20  ;;  %v1651_v20 = vld [vmem:[%s2615_s1] sm:$0x3f] }
0x1c01   :  { %v1493_v25 = vadd.f32 %v2377_v2, %v1491_v24 }
0x1c03   :  { %1983 = vtanh.f32 %v1493_v25 }
0x1c06   :  { %v1629_v8 = vpop.f32.mrf.mxu0 }
0x1c09   :  { %v1984_v26 = vpop.eup %1983 }
0x1c0a   :  { %v1495_v27 = vmul.f32 1.442695, %v1984_v26 }
0x1c0c   :  { %1985 = vpow2.f32 %v1495_v27  ;;  %v1535_v29 = vpop.f32.mrf.mxu2 }
0x1c0d   :  { %v1558_v7 = vadd.f32 %v1535_v29, %v2195_v5  ;;  %v1538_v36 = vadd.f32 %v1863_v35, %v1535_v29 }
0x1c0f   :  { %1560 = vrot.lane.b32.xlu0 %v1558_v7, %s2010_s19  ;;  %v1865_v39 = vmul.f32 -1.442695, %v1538_v36  ;;  %v1366_v7 = vmul.f32 %v2502_v12, %v2480_v28 }
0x1c11   :  { %1987 = vpow2.f32 %v1865_v39 }
0x1c12   :  { %v2529_v30 = vpop.eup %1985 }
0x1c13   :  { %v1498_v57 = vadd.f32 %v2529_v30, %v1497_v56  ;;  %v1501_v59 = vmul.f32 %v2529_v30, %v2489_v31 }
0x1c15   :  { %1499 = vst.msk [vmem:[#allocation5] sm:$0x3f] %vm61_vm14, %v1498_v57  ;;  %v1502_v60 = vadd.f32 %v1501_v59, %v1500_v33 }
0x1c17   :  { %1503 = vst.msk [vmem:[#allocation6] sm:$0x3f] %vm58_vm0, %v1502_v60  ;;  %1576 = vrot.lane.b32.xlu0 %v1514_v21, %s2011_s4  ;;  %v1988_v13 = vpop.eup %1987 }
0x1c18   :  { %v1542_v14 = vadd.f32 1.0, %v1988_v13 }
0x1c1a   :  { %1989 = vrcp.f32 %v1542_v14  ;;  %v1554_v45 = vand.u32 2147483648, %v1542_v14  ;;  %vm1548_vm5 = vweird.f32 %v1542_v14  ;;  %v1552_v53 = vand.u32 2147483647, %v1542_v14 }
0x1c1c   :  { %v1555_v46 = vor.u32 1.1754944e-38, %v1554_v45  ;;  %vm1553_vm7 = vcmp.eq.f32.partialorder %v1552_v53, 8.507059e+37  ;;  %v1636_v25 = vld [vmem:[#allocation5] sm:$0x3f]  ;;  %v810_v45 = vmul.f32 %v2380_v40, %v2251_v11  ;;  %v1227_v53 = vmul.f32 %v2468_v55, %v2441_v34  ;;  %v809_v11 = vld [vmem:[#allocation7] sm:$0x3f] }
0x1c1d   :  { %v1088_v34 = vmul.f32 %v2429_v50, %v2402_v37 }
0x1c1e   :  { %v1639_v29 = vld [vmem:[#allocation6] sm:$0x3f] }
0x1c20   :  { %v1990_v15 = vpop.eup %1989 }
0x1c21   :  { %v1544_v31 = vmul.f32 %v1990_v15, %v1542_v14  ;;  %vm1549_vm4 = vweird.f32 %v1990_v15 }
0x1c22   :  { %vm1550_vm6 = vmor %vm1548_vm5, %vm1549_vm4 }
0x1c23   :  { %v1545_v42 = vsub.f32 1.0, %v1544_v31 }
0x1c25   :  { %v1546_v43 = vmul.f32 %v1990_v15, %v1545_v42 }
0x1c27   :  { %v1547_v44 = vadd.f32 %v1990_v15, %v1546_v43 }
0x1c29   :  { %v1551_v54 = vsel %vm1550_vm6, %v1990_v15, %v1547_v44 }
0x1c2a   :  { %v1556_v38 = vsel %vm1553_vm7, %v1555_v46, %v1551_v54 }
0x1c2b   :  { %v1570_v62 = vsub.f32 1.0, %v1556_v38 }
0x1c81   :  { %v1561_v47 = vpop.permute.xlu0 %1560 }
0x1c82   :  { %v1563_v58 = vmul.f32 %v1561_v47, %v1556_v38 }
0x1c84   :  { %1565 = vrot.lane.b32.xlu1 %v1563_v58, %s2010_s19 }
0x1c89   :  { %v1577_v52 = vpop.permute.xlu0 %1576 }
0x1c8a   :  { %v1579_v0 = vmul.f32 %v1577_v52, %v1556_v38 }
0x1cf6   :  { %v1566_v48 = vpop.permute.xlu1 %1565 }
0x1cf7   :  { %v1568_v49 = vadd.f32 %v1863_v35, %v1566_v48 }
0x1cf9   :  { %1991 = vtanh.f32 %v1568_v49 }
0x1cff   :  { %v1992_v51 = vpop.eup %1991 }
0x1d00   :  { %1572 = vrot.lane.b32.xlu2 %v1992_v51, %s2012_s21 }
0x1d5a   :  { %v1573_v63 = vpop.permute.xlu2 %1572 }
0x1d5b   :  { %v1575_v1 = vmul.f32 %v1573_v63, %v1570_v62  ;;  %v1505_v63 = vmul.f32 %v2529_v30, %v2515_v19 }
0x1d5d   :  { %v2542_v3 = vadd.f32 %v1579_v0, %v1575_v1 }
0x1d5f   :  { %1582 = vrot.lane.b32.xlu1 %v2542_v3, %s2012_s21 }
0x1dd1   :  { %v1583_v4 = vpop.permute.xlu1 %1582 }
0x1dd2   :  { %1585 = vst.msk [vmem:[#allocation3] sm:$0x3f] %vm58_vm0, %v1583_v4  ;;  %1866 = vmatmul.msk.f32.vlgmr.msra.gmra.mxu3 %vm67_vm1, %v1583_v4 }
0x1dd9   :  { %v1652_v6 = vld [vmem:[#allocation3] sm:$0x3f] }
0x1dda   :  { %1868 = vmatmul.msk.f32.vlgmr.msrb.gmra.mxu1 %vm67_vm1, %v1652_v6  ;;  %1871 = vmatmul.msk.f32.vlgmr.msrb.gmra.mxu3 %vm67_vm1, %v2548_v41 }
0x1e55   :  { %v1606_v9 = vpop.f32.mrf.mxu3 }
0x1e56   :  { %v1630_v10 = vadd.f32 %v1629_v8, %v1606_v9 }
0x1e57   :  { %v1673_v16 = vpop.f32.mrf.mxu1 }
0x1e58   :  { %v1632_v32 = vadd.f32 %v2377_v2, %v1630_v10  ;;  %v1696_v17 = vadd.f32 %v1673_v16, %v2195_v5  ;;  %v1676_v61 = vadd.f32 %v1673_v16, %v1651_v20 }
0x1e5a   :  { %1993 = vtanh.f32 %v1632_v32  ;;  %1698 = vrot.lane.b32.xlu2 %v1696_v17, %s2010_s19  ;;  %v1869_v56 = vmul.f32 -1.442695, %v1676_v61 }
0x1e60   :  { %v1994_v21 = vpop.eup %1993 }
0x1e61   :  { %v1634_v18 = vmul.f32 1.442695, %v1994_v21 }
0x1e62   :  { %1714 = vrot.lane.b32.xlu2 %v1652_v6, %s2011_s4 }
0x1e63   :  { %1995 = vpow2.f32 %v1634_v18  ;;  %v1767_v18 = vpop.f32.mrf.mxu3 }
0x1e64   :  { %1997 = vpow2.f32 %v1869_v56 }
0x1e69   :  { %v1996_v24 = vpop.eup %1995 }
0x1e6a   :  { %v1637_v26 = vadd.f32 %v1996_v24, %v1636_v25  ;;  %v1640_v27 = vmul.f32 %v1996_v24, %v2521_v22  ;;  %951 = vrot.lane.b32.xlu2 %v949_v23, %s2012_s21  ;;  %v1998_v22 = vpop.eup %1997  ;;  %v1644_v54 = vmul.f32 %v1996_v24, %v2542_v3 }
0x1e6b   :  { %v1680_v57 = vadd.f32 1.0, %v1998_v22 }
0x1e6c   :  { %1638 = vst.msk [vmem:[#allocation5] sm:$0x3f] %vm61_vm14, %v1637_v26  ;;  %v1641_v5 = vadd.f32 %v1640_v27, %v1639_v29 }
0x1e6d   :  { %1999 = vrcp.f32 %v1680_v57  ;;  %v1692_v39 = vand.u32 2147483648, %v1680_v57  ;;  %vm1686_vm9 = vweird.f32 %v1680_v57  ;;  %v1690_v28 = vand.u32 2147483647, %v1680_v57 }
0x1e6e   :  { %1642 = vst.msk [vmem:[#allocation6] sm:$0x3f] %vm58_vm0, %v1641_v5 }
0x1e6f   :  { %v1693_v13 = vor.u32 1.1754944e-38, %v1692_v39  ;;  %vm1691_vm11 = vcmp.eq.f32.partialorder %v1690_v28, 8.507059e+37 }
0x1e72   :  { %1368 = vrot.lane.b32.xlu2 %v1366_v7, %s2012_s21 }
0x1e73   :  { %v2000_v59 = vpop.eup %1999  ;;  %v1774_v5 = vld [vmem:[#allocation5] sm:$0x3f] }
0x1e74   :  { %v1682_v33 = vmul.f32 %v2000_v59, %v1680_v57  ;;  %vm1687_vm8 = vweird.f32 %v2000_v59 }
0x1e75   :  { %vm1688_vm10 = vmor %vm1686_vm9, %vm1687_vm8  ;;  %v1777_v56 = vld [vmem:[#allocation6] sm:$0x3f] }
0x1e76   :  { %v1683_v60 = vsub.f32 1.0, %v1682_v33 }
0x1e78   :  { %v1684_v35 = vmul.f32 %v2000_v59, %v1683_v60 }
0x1e7a   :  { %v1685_v36 = vadd.f32 %v2000_v59, %v1684_v35 }
0x1e7c   :  { %v1689_v12 = vsel %vm1688_vm10, %v2000_v59, %v1685_v36 }
0x1e7d   :  { %v1694_v15 = vsel %vm1691_vm11, %v1693_v13, %v1689_v12 }
0x1e7e   :  { %v1708_v47 = vsub.f32 1.0, %v1694_v15 }
0x1eb4   :  { %v1699_v14 = vpop.permute.xlu2 %1698 }
0x1eb5   :  { %v1701_v31 = vmul.f32 %v1699_v14, %v1694_v15 }
0x1eb7   :  { %1703 = vrot.lane.b32.xlu0 %v1701_v31, %s2010_s19 }
0x1ebc   :  { %v1715_v46 = vpop.permute.xlu2 %1714 }
0x1ebd   :  { %v1717_v58 = vmul.f32 %v1715_v46, %v1694_v15 }
0x1ec4   :  { %v952_v55 = vpop.permute.xlu2 %951 }
0x1ecc   :  { %v1369_v19 = vpop.permute.xlu2 %1368 }
0x1f29   :  { %v1704_v42 = vpop.permute.xlu0 %1703 }
0x1f2a   :  { %v1706_v43 = vadd.f32 %v1704_v42, %v1651_v20 }
0x1f2c   :  { %2001 = vtanh.f32 %v1706_v43 }
0x1f32   :  { %v2002_v44 = vpop.eup %2001 }
0x1f33   :  { %1710 = vrot.lane.b32.xlu1 %v2002_v44, %s2012_s21 }
0x1f3b   :  { %812 = vrot.lane.b32.xlu1 %v810_v45, %s2012_s21 }
0x1f43   :  { %1229 = vrot.lane.b32.xlu1 %v1227_v53, %s2012_s21 }
0x1f4b   :  { %1646 = vrot.lane.b32.xlu1 %v1644_v54, %s2012_s21 }
0x1fa5   :  { %v1711_v38 = vpop.permute.xlu1 %1710 }
0x1fa6   :  { %v1713_v48 = vmul.f32 %v1711_v38, %v1708_v47 }
0x1fa8   :  { %v1718_v49 = vadd.f32 %v1717_v58, %v1713_v48 }
0x1faa   :  { %1720 = vrot.lane.b32.xlu0 %v1718_v49, %s2012_s21 }
0x1fad   :  { %v813_v40 = vpop.permute.xlu1 %812 }
0x1fae   :  { %v815_v51 = vadd.f32 %v813_v40, %v809_v11 }
0x1fb0   :  { %816 = vst.msk [vmem:[#allocation7] sm:$0x3f] %vm58_vm0, %v815_v51 }
0x1fb2   :  { %1090 = vrot.lane.b32.xlu0 %v1088_v34, %s2012_s21 }
0x1fb5   :  { %v1230_v50 = vpop.permute.xlu1 %1229 }
0x1fb7   :  { %v948_v52 = vld [vmem:[#allocation7] sm:$0x3f] }
0x1fb8   :  { %v954_v62 = vadd.f32 %v952_v55, %v948_v52 }
0x1fba   :  { %955 = vst.msk [vmem:[#allocation7] sm:$0x3f] %vm58_vm0, %v954_v62  ;;  %1507 = vrot.lane.b32.xlu0 %v1505_v63, %s2012_s21 }
0x1fbd   :  { %v1647_v32 = vpop.permute.xlu1 %1646 }
0x1fc1   :  { %v1087_v3 = vld [vmem:[#allocation7] sm:$0x3f] }
0x201c   :  { %v1721_v0 = vpop.permute.xlu0 %1720 }
0x201d   :  { %1723 = vst.msk [vmem:[#allocation3] sm:$0x3f] %vm58_vm0, %v1721_v0  ;;  %1870 = vmatmul.msk.f32.vlgmr.msrb.gmra.mxu2 %vm67_vm1, %v1721_v0  ;;  %vm1804_vm1 = vcmask 521472  }
0x2024   :  { %v1091_v1 = vpop.permute.xlu0 %1090 }
0x2025   :  { %v1093_v37 = vadd.f32 %v1091_v1, %v1087_v3 }
0x2027   :  { %1094 = vst.msk [vmem:[#allocation7] sm:$0x3f] %vm58_vm0, %v1093_v37 }
0x202c   :  { %v1508_v9 = vpop.permute.xlu0 %1507 }
0x202e   :  { %v1226_v4 = vld [vmem:[#allocation7] sm:$0x3f] }
0x202f   :  { %v1232_v6 = vadd.f32 %v1230_v50, %v1226_v4 }
0x2031   :  { %1233 = vst.msk [vmem:[#allocation7] sm:$0x3f] %vm58_vm0, %v1232_v6 }
0x2038   :  { %v1365_v30 = vld [vmem:[#allocation7] sm:$0x3f] }
0x2039   :  { %v1371_v8 = vadd.f32 %v1369_v19, %v1365_v30 }
0x203b   :  { %1372 = vst.msk [vmem:[#allocation7] sm:$0x3f] %vm58_vm0, %v1371_v8 }
0x2042   :  { %v1504_v10 = vld [vmem:[#allocation7] sm:$0x3f] }
0x2043   :  { %v1510_v16 = vadd.f32 %v1508_v9, %v1504_v10 }
0x2045   :  { %1511 = vst.msk [vmem:[#allocation7] sm:$0x3f] %vm58_vm0, %v1510_v16 }
0x204c   :  { %v1643_v17 = vld [vmem:[#allocation7] sm:$0x3f] }
0x204d   :  { %v1649_v21 = vadd.f32 %v1647_v32, %v1643_v17 }
0x204f   :  { %1650 = vst.msk [vmem:[#allocation7] sm:$0x3f] %vm58_vm0, %v1649_v21 }
0x2056   :  { %v1781_v60 = vld [vmem:[#allocation7] sm:$0x3f] }
0x20a0   :  { %v1744_v23 = vpop.f32.mrf.mxu2 }
0x20a1   :  { %v1768_v24 = vadd.f32 %v1767_v18, %v1744_v23 }
0x20a3   :  { %v1770_v25 = vadd.f32 %v2377_v2, %v1768_v24 }
0x20a5   :  { %2003 = vtanh.f32 %v1770_v25 }
0x20ab   :  { %v2004_v26 = vpop.eup %2003 }
0x20ac   :  { %v1772_v27 = vmul.f32 1.442695, %v2004_v26 }
0x20ae   :  { %2005 = vpow2.f32 %v1772_v27 }
0x20b4   :  { %v2006_v29 = vpop.eup %2005 }
0x20b5   :  { %v1775_v7 = vadd.f32 %v2006_v29, %v1774_v5  ;;  %v1778_v20 = vmul.f32 %v2006_v29, %v2548_v41  ;;  %v1782_v61 = vmul.f32 %v2006_v29, %v1718_v49 }
0x20b7   :  { %v1779_v22 = vadd.f32 %v1778_v20, %v1777_v56  ;;  %1776 = vst.msk [vmem:[#allocation5] sm:$0x3f] %vm61_vm14, %v1775_v7  ;;  %1784 = vrot.lane.b32.xlu2 %v1782_v61, %s2012_s21 }
0x20b9   :  { %1780 = vst.msk [vmem:[#allocation6] sm:$0x3f] %vm58_vm0, %v1779_v22 }
0x20be   :  { %v1789_v57 = vld [vmem:[#allocation5] sm:$0x3f] }
0x20bf   :  { %2007 = vrcp.f32 %v1789_v57 }
0x20c0   :  { %v1791_v59 = vld [vmem:[#allocation6] sm:$0x3f] }
0x20c5   :  { %v2008_v2 = vpop.eup %2007 }
0x20c6   :  { %1796 = vrot.lane.b32.xlu0 %v2008_v2, %s2012_s21  ;;  %v1792_v33 = vmul.f32 %v2008_v2, %v1791_v59 }
0x20c8   :  { %1793 = vst.msk [vmem:[%s2619_s9] sm:$0x3f] %vm58_vm0, %v1792_v33 }
0x2111   :  { %v1785_v41 = vpop.permute.xlu2 %1784 }
0x2112   :  { %v1787_v35 = vadd.f32 %v1785_v41, %v1781_v60 }
0x2114   :  { %1788 = vst.msk [vmem:[#allocation7] sm:$0x3f] %vm58_vm0, %v1787_v35 }
0x211b   :  { %v1794_v36 = vld [vmem:[#allocation7] sm:$0x3f] }
0x2138   :  { %v1797_v39 = vpop.permute.xlu0 %1796 }
0x2139   :  { %v1799_v28 = vmul.f32 %v1797_v39, %v1794_v36 }
0x213b   :  { %1801 = vrot.lane.b32.xlu1 %v1799_v28, %s2011_s4 }
0x21ad   :  { %v1802_v12 = vpop.permute.xlu1 %1801 }
0x21ae   :  { %1805 = vst.msk [vmem:[%s2619_s9] sm:$0x3f] %vm1804_vm1, %v1802_v12 }

</bundles_post_ra>
